<compile_context>
chip_gen: v7x
topology: tpu7x:2x2x1
jax: 0.10.0
libtpu: 0.0.40
codegen_flags: <defaults>
</compile_context>

<pallas_src>
import jax
import jax.numpy as jnp
from jax.experimental import pallas as pl
from jax.experimental.pallas import tpu as pltpu


# ----------------------------- Pallas kernels ------------------------------

def layer1_kernel(p_ref, w_ref, sh_ref, o_ref):
    """Fused conv1 + folded-BN + ReLU + 2x2 max-pool (batch folded into lanes).

    p_ref:  (4, 25, B*196) bf16  pool-grouped, K-major im2col patches
    w_ref:  (16, 25)       bf16  conv weight with BN scale folded in
    sh_ref: (16, 1)        f32   folded BN shift (includes conv bias)
    o_ref:  (16, B*196)    bf16  pooled activations, channel-major
    """
    w = w_ref[...]
    acc = jnp.dot(w, p_ref[0], preferred_element_type=jnp.float32)
    for q in range(1, 4):
        acc = jnp.maximum(
            acc, jnp.dot(w, p_ref[q], preferred_element_type=jnp.float32))
    # max_q relu(y_q + sh) == relu(max_q(y_q) + sh): one epilogue pass.
    o_ref[...] = jnp.maximum(acc + sh_ref[...], 0.0).astype(o_ref.dtype)


def layer2_fc_kernel(p_ref, w_ref, sh_ref, wfc_ref, seg_ref, bfc_ref, o_ref):
    """Fused conv2 + folded-BN + ReLU + 2x2 max-pool + Linear(1568 -> 10).

    p_ref:   (4, 400, B*49) bf16  pool-grouped, K-major im2col patches
    w_ref:   (32, 400)      bf16  conv weight with BN scale folded in
    sh_ref:  (32, 1)        f32   folded BN shift
    wfc_ref: (10, 32, B*49) f32   fc weight, batch-tiled along the lane axis
    seg_ref: (B*49, B)      f32   0/1 per-image segment-sum matrix
    bfc_ref: (10, 1)        f32   fc bias
    o_ref:   (10, B)        f32   logits (host transposes to (B, 10))
    """
    w = w_ref[...]
    acc = jnp.dot(w, p_ref[0], preferred_element_type=jnp.float32)
    for q in range(1, 4):
        acc = jnp.maximum(
            acc, jnp.dot(w, p_ref[q], preferred_element_type=jnp.float32))
    z = jnp.maximum(acc + sh_ref[...], 0.0)          # (32, B*49) f32, ch-major

    # FC, channel-first: 32 VPU FMAs into one (10, B*49) accumulator ...
    n_out, n_ch, n_lanes = wfc_ref.shape
    fc = jnp.zeros((n_out, n_lanes), jnp.float32)
    for c in range(n_ch):
        fc = fc + wfc_ref[:, c, :] * z[c:c + 1, :]   # (10,B*49) * (1,B*49) bcast
    # ... then ONE segmented lane reduction as a single MXU dot, plus bias.
    logits = jnp.dot(fc, seg_ref[...],
                     preferred_element_type=jnp.float32) + bfc_ref[...]
    o_ref[...] = logits.astype(o_ref.dtype)


# ----------------------------- Pallas wrappers ------------------------------

def conv_bn_relu_pool_l1(p, w, sh):
    Q, K, N = p.shape
    C = w.shape[0]
    return pl.pallas_call(
        layer1_kernel,
        out_shape=jax.ShapeDtypeStruct((C, N), jnp.bfloat16),
        grid=(1,),
        in_specs=[
            pl.BlockSpec((Q, K, N), lambda i: (0, 0, 0)),
            pl.BlockSpec((C, K), lambda i: (0, 0)),
            pl.BlockSpec((C, 1), lambda i: (0, 0)),
        ],
        out_specs=pl.BlockSpec((C, N), lambda i: (0, 0)),
        compiler_params=pltpu.CompilerParams(
            dimension_semantics=("arbitrary",)),
    )(p, w, sh)


def conv_bn_relu_pool_fc(p, w, sh, wfc_b, seg, bfc):
    Q, K, N = p.shape
    C = w.shape[0]
    O = wfc_b.shape[0]
    B = seg.shape[1]
    return pl.pallas_call(
        layer2_fc_kernel,
        out_shape=jax.ShapeDtypeStruct((O, B), jnp.float32),
        grid=(1,),
        in_specs=[
            pl.BlockSpec((Q, K, N), lambda i: (0, 0, 0)),
            pl.BlockSpec((C, K), lambda i: (0, 0)),
            pl.BlockSpec((C, 1), lambda i: (0, 0)),
            pl.BlockSpec((O, C, N), lambda i: (0, 0, 0)),
            pl.BlockSpec((N, B), lambda i: (0, 0)),
            pl.BlockSpec((O, 1), lambda i: (0, 0)),
        ],
        out_specs=pl.BlockSpec((O, B), lambda i: (0, 0)),
        compiler_params=pltpu.CompilerParams(
            dimension_semantics=("arbitrary",)),
    )(p, w, sh, wfc_b, seg, bfc)


# ------------------------------- JAX glue -----------------------------------

def im2col_pool_groups_batch_lanes(x_nchw, ksize=5, pad=2):
    """NCHW -> (4, Cin*k*k, B*(H//2)*(W//2)) pool-grouped, K-major patches.

    patches[a*2+bb, ci*25+kh*5+kw, b*(Hh*Wh)+i*Wh+j]
        = x_pad[b, ci, 2i+a+kh, 2j+bb+kw]
    i.e. the conv input at output pixel (2i+a, 2j+bb), with the batch folded
    into the lane axis (lane = b*Npix + pixel).
    """
    B, Cin, H, W = x_nchw.shape
    xp = jnp.pad(x_nchw, ((0, 0), (0, 0), (pad, pad), (pad, pad)))
    cols = []
    for kh in range(ksize):
        for kw in range(ksize):
            cols.append(xp[:, :, kh:kh + H, kw:kw + W])   # (B, Cin, H, W)
    p = jnp.stack(cols, axis=2)                           # (B, Cin, 25, H, W)
    K = Cin * ksize * ksize
    p = p.reshape(B, K, H, W)                             # k = ci*25 + kh*5 + kw
    Hh, Wh = H // 2, W // 2
    p = p.reshape(B, K, Hh, 2, Wh, 2)                     # (b, k, i, a, j, bb)
    p = p.transpose(3, 5, 1, 0, 2, 4)                     # (a, bb, k, b, i, j)
    return p.reshape(4, K, B * Hh * Wh)


def init_params(key):
    ks = jax.random.split(key, 12)
    # conv1: (16, 1, 5, 5) + bias(16) ; BN1 stats
    w1 = jax.random.normal(ks[0], (16, 1, 5, 5), jnp.float32) * 0.1
    b1 = jax.random.normal(ks[1], (16,), jnp.float32) * 0.1
    g1 = 1.0 + 0.1 * jax.random.normal(ks[2], (16,), jnp.float32)
    be1 = 0.1 * jax.random.normal(ks[3], (16,), jnp.float32)
    m1 = 0.1 * jax.random.normal(ks[4], (16,), jnp.float32)
    v1 = 1.0 + 0.1 * jnp.abs(jax.random.normal(ks[5], (16,), jnp.float32))
    # conv2: (32, 16, 5, 5) + bias(32) ; BN2 stats
    w2 = jax.random.normal(ks[6], (32, 16, 5, 5), jnp.float32) * 0.05
    b2 = jax.random.normal(ks[7], (32,), jnp.float32) * 0.1
    g2 = 1.0 + 0.1 * jax.random.normal(ks[8], (32,), jnp.float32)
    be2 = 0.1 * jax.random.normal(ks[9], (32,), jnp.float32)
    m2 = 0.1 * jax.random.normal(ks[10], (32,), jnp.float32)
    v2 = 1.0 + 0.1 * jnp.abs(jax.random.normal(ks[11], (32,), jnp.float32))
    # fc: (10, 1568) + bias(10)
    kfa, kfb = jax.random.split(jax.random.fold_in(key, 99))
    wfc = jax.random.normal(kfa, (10, 7 * 7 * 32), jnp.float32) * 0.02
    bfc = jax.random.normal(kfb, (10,), jnp.float32) * 0.1

    eps = 1e-5
    s1 = g1 / jnp.sqrt(v1 + eps)
    s2 = g2 / jnp.sqrt(v2 + eps)

    p = {}
    # Channel-major conv weights with the BN scale folded in, bf16 for the MXU.
    p["w1"] = (w1.reshape(16, 25) * s1[:, None]).astype(jnp.bfloat16)       # (16, 25)
    p["sh1"] = ((b1 - m1) * s1 + be1).reshape(16, 1).astype(jnp.float32)    # (16, 1)
    p["w2"] = (w2.reshape(32, 16 * 25) * s2[:, None]).astype(jnp.bfloat16)  # (32, 400)
    p["sh2"] = ((b2 - m2) * s2 + be2).reshape(32, 1).astype(jnp.float32)    # (32, 1)
    # FC weight pre-reshaped to consume channel-major pooled activations:
    # flat index c*49 + (h*7+w) == PyTorch's (C,H,W) flatten order.
    p["wfc"] = wfc.reshape(10, 32, 49).astype(jnp.float32)                  # (10, 32, 49)
    p["bfc"] = bfc.reshape(10, 1).astype(jnp.float32)                       # (10, 1)
    return p


@jax.jit
def cnn_forward(x, params):
    """x: NCHW (B, 1, 28, 28) float32 -> logits (B, 10) float32."""
    B = x.shape[0]
    # layer1: conv(1->16,k5,p2)+BN+ReLU+pool2, batch folded into lanes.
    p1 = im2col_pool_groups_batch_lanes(x.astype(jnp.bfloat16))     # (4, 25, B*196)
    y1 = conv_bn_relu_pool_l1(p1, params["w1"], params["sh1"])      # (16, B*196)
    # Channel-major -> NCHW for layer2's im2col (tiny XLA transpose).
    x2 = y1.reshape(y1.shape[0], B, 14, 14).transpose(1, 0, 2, 3)   # (B, 16, 14, 14)
    # layer2 + FC fused: conv(16->32,k5,p2)+BN+ReLU+pool2 + Linear(1568->10).
    p2 = im2col_pool_groups_batch_lanes(x2)                         # (4, 400, B*49)
    wfc_b = jnp.tile(params["wfc"], (1, 1, B))                      # (10, 32, B*49)
    seg = jnp.repeat(jnp.eye(B, dtype=jnp.float32), 49, axis=0)     # (B*49, B)
    out = conv_bn_relu_pool_fc(p2, params["w2"], params["sh2"],
                               wfc_b, seg, params["bfc"])           # (10, B)
    return out.T                                                    # (B, 10)


if __name__ == "__main__":
    key = jax.random.PRNGKey(0)
    kx, kp = jax.random.split(key)
    # Spatial size 28 is required so that 7*7*32 matches the fc layer.
    x = jax.random.normal(kx, (2, 1, 28, 28), jnp.float32)
    params = init_params(kp)

    out = cnn_forward(x, params)
    out = jax.block_until_ready(out)
    assert out.shape == (2, 10) and out.dtype == jnp.float32
    print("KERNEL_OK")
</pallas_src>

<mosaic_0001>
module attributes {stable_mosaic.version = 11 : i64} {
  func.func @layer1_kernel(%arg0: i32, %arg1: memref<4x25x392xbf16, #tpu.memory_space<vmem>>, %arg2: memref<16x25xbf16, #tpu.memory_space<vmem>>, %arg3: memref<16x1xf32, #tpu.memory_space<vmem>>, %arg4: memref<16x392xbf16, #tpu.memory_space<vmem>>) attributes {dimension_semantics = [#tpu.dimension_semantics<arbitrary>], iteration_bounds = array<i64: 1>, scalar_prefetch = 0 : i64, scratch_operands = 0 : i64, tpu.core_type = #tpu.core_type<tc>, window_params = [{pipeline_mode = #tpu.pipeline_mode<synchronous>, transform_indices = @transform_0, window_bounds = array<i64: 4, 25, 392>}, {pipeline_mode = #tpu.pipeline_mode<synchronous>, transform_indices = @transform_1, window_bounds = array<i64: 16, 25>}, {pipeline_mode = #tpu.pipeline_mode<synchronous>, transform_indices = @transform_2, window_bounds = array<i64: 16, 1>}, {pipeline_mode = #tpu.pipeline_mode<synchronous>, transform_indices = @transform_3, window_bounds = array<i64: 16, 392>}]} {
    %c0 = arith.constant 0 : index
    %c0_0 = arith.constant 0 : index
    %0 = vector.load %arg2[%c0, %c0_0] : memref<16x25xbf16, #tpu.memory_space<vmem>>, vector<16x25xbf16>
    %c0_1 = arith.constant 0 : index
    %c0_2 = arith.constant 0 : index
    %c0_3 = arith.constant 0 : index
    %1 = vector.load %arg1[%c0_1, %c0_2, %c0_3] : memref<4x25x392xbf16, #tpu.memory_space<vmem>>, vector<1x25x392xbf16>
    %2 = vector.shape_cast %1 : vector<1x25x392xbf16> to vector<25x392xbf16>
    %cst = arith.constant dense<0.000000e+00> : vector<16x392xf32>
    %3 = tpu.matmul %0, %2, %cst {dimension_numbers = #tpu.dot_dimension_numbers<[1], [0], [0], [1], [0, 0, 1, 1], [], []>} : vector<16x25xbf16>, vector<25x392xbf16>, vector<16x392xf32> -> vector<16x392xf32>
    %c1 = arith.constant 1 : index
    %c0_4 = arith.constant 0 : index
    %c0_5 = arith.constant 0 : index
    %4 = vector.load %arg1[%c1, %c0_4, %c0_5] : memref<4x25x392xbf16, #tpu.memory_space<vmem>>, vector<1x25x392xbf16>
    %5 = vector.shape_cast %4 : vector<1x25x392xbf16> to vector<25x392xbf16>
    %cst_6 = arith.constant dense<0.000000e+00> : vector<16x392xf32>
    %6 = tpu.matmul %0, %5, %cst_6 {dimension_numbers = #tpu.dot_dimension_numbers<[1], [0], [0], [1], [0, 0, 1, 1], [], []>} : vector<16x25xbf16>, vector<25x392xbf16>, vector<16x392xf32> -> vector<16x392xf32>
    %7 = arith.maximumf %3, %6 : vector<16x392xf32>
    %c2 = arith.constant 2 : index
    %c0_7 = arith.constant 0 : index
    %c0_8 = arith.constant 0 : index
    %8 = vector.load %arg1[%c2, %c0_7, %c0_8] : memref<4x25x392xbf16, #tpu.memory_space<vmem>>, vector<1x25x392xbf16>
    %9 = vector.shape_cast %8 : vector<1x25x392xbf16> to vector<25x392xbf16>
    %cst_9 = arith.constant dense<0.000000e+00> : vector<16x392xf32>
    %10 = tpu.matmul %0, %9, %cst_9 {dimension_numbers = #tpu.dot_dimension_numbers<[1], [0], [0], [1], [0, 0, 1, 1], [], []>} : vector<16x25xbf16>, vector<25x392xbf16>, vector<16x392xf32> -> vector<16x392xf32>
    %11 = arith.maximumf %7, %10 : vector<16x392xf32>
    %c3 = arith.constant 3 : index
    %c0_10 = arith.constant 0 : index
    %c0_11 = arith.constant 0 : index
    %12 = vector.load %arg1[%c3, %c0_10, %c0_11] : memref<4x25x392xbf16, #tpu.memory_space<vmem>>, vector<1x25x392xbf16>
    %13 = vector.shape_cast %12 : vector<1x25x392xbf16> to vector<25x392xbf16>
    %cst_12 = arith.constant dense<0.000000e+00> : vector<16x392xf32>
    %14 = tpu.matmul %0, %13, %cst_12 {dimension_numbers = #tpu.dot_dimension_numbers<[1], [0], [0], [1], [0, 0, 1, 1], [], []>} : vector<16x25xbf16>, vector<25x392xbf16>, vector<16x392xf32> -> vector<16x392xf32>
    %15 = arith.maximumf %11, %14 : vector<16x392xf32>
    %c0_13 = arith.constant 0 : index
    %c0_14 = arith.constant 0 : index
    %16 = vector.load %arg3[%c0_13, %c0_14] : memref<16x1xf32, #tpu.memory_space<vmem>>, vector<16x1xf32>
    %17 = vector.broadcast %16 : vector<16x1xf32> to vector<16x392xf32>
    %18 = arith.addf %15, %17 : vector<16x392xf32>
    %cst_15 = arith.constant 0.000000e+00 : f32
    %19 = vector.broadcast %cst_15 : f32 to vector<16x392xf32>
    %20 = arith.maximumf %18, %19 : vector<16x392xf32>
    %21 = arith.truncf %20 : vector<16x392xf32> to vector<16x392xbf16>
    %c0_16 = arith.constant 0 : index
    %c0_17 = arith.constant 0 : index
    %22 = vector.load %arg4[%c0_16, %c0_17] : memref<16x392xbf16, #tpu.memory_space<vmem>>, vector<16x392xbf16>
    tpu.vector_store %arg4[%c0_16, %c0_17], %21 {strides = array<i32>} : memref<16x392xbf16, #tpu.memory_space<vmem>>, vector<16x392xbf16>,
    return
  }
  func.func @transform_0(%arg0: i32) -> (i32, i32, i32) {
    %c0_i32 = arith.constant 0 : i32
    %c0_i32_0 = arith.constant 0 : i32
    %c0_i32_1 = arith.constant 0 : i32
    %c0_i32_2 = arith.constant 0 : i32
    return %c0_i32, %c0_i32_0, %c0_i32_1 : i32, i32, i32
  }
  func.func @transform_1(%arg0: i32) -> (i32, i32) {
    %c0_i32 = arith.constant 0 : i32
    %c0_i32_0 = arith.constant 0 : i32
    %c0_i32_1 = arith.constant 0 : i32
    return %c0_i32, %c0_i32_0 : i32, i32
  }
  func.func @transform_2(%arg0: i32) -> (i32, i32) {
    %c0_i32 = arith.constant 0 : i32
    %c0_i32_0 = arith.constant 0 : i32
    %c0_i32_1 = arith.constant 0 : i32
    return %c0_i32, %c0_i32_0 : i32, i32
  }
  func.func @transform_3(%arg0: i32) -> (i32, i32) {
    %c0_i32 = arith.constant 0 : i32
    %c0_i32_0 = arith.constant 0 : i32
    %c0_i32_1 = arith.constant 0 : i32
    return %c0_i32, %c0_i32_0 : i32, i32
  }
}

module attributes {stable_mosaic.version = 11 : i64} {
  func.func @layer2_fc_kernel(%arg0: i32, %arg1: memref<4x400x98xbf16, #tpu.memory_space<vmem>>, %arg2: memref<32x400xbf16, #tpu.memory_space<vmem>>, %arg3: memref<32x1xf32, #tpu.memory_space<vmem>>, %arg4: memref<10x32x98xf32, #tpu.memory_space<vmem>>, %arg5: memref<98x2xf32, #tpu.memory_space<vmem>>, %arg6: memref<10x1xf32, #tpu.memory_space<vmem>>, %arg7: memref<10x2xf32, #tpu.memory_space<vmem>>) attributes {dimension_semantics = [#tpu.dimension_semantics<arbitrary>], iteration_bounds = array<i64: 1>, scalar_prefetch = 0 : i64, scratch_operands = 0 : i64, tpu.core_type = #tpu.core_type<tc>, window_params = [{pipeline_mode = #tpu.pipeline_mode<synchronous>, transform_indices = @transform_0, window_bounds = array<i64: 4, 400, 98>}, {pipeline_mode = #tpu.pipeline_mode<synchronous>, transform_indices = @transform_1, window_bounds = array<i64: 32, 400>}, {pipeline_mode = #tpu.pipeline_mode<synchronous>, transform_indices = @transform_2, window_bounds = array<i64: 32, 1>}, {pipeline_mode = #tpu.pipeline_mode<synchronous>, transform_indices = @transform_3, window_bounds = array<i64: 10, 32, 98>}, {pipeline_mode = #tpu.pipeline_mode<synchronous>, transform_indices = @transform_4, window_bounds = array<i64: 98, 2>}, {pipeline_mode = #tpu.pipeline_mode<synchronous>, transform_indices = @transform_5, window_bounds = array<i64: 10, 1>}, {pipeline_mode = #tpu.pipeline_mode<synchronous>, transform_indices = @transform_6, window_bounds = array<i64: 10, 2>}]} {
    %c0 = arith.constant 0 : index
    %c0_0 = arith.constant 0 : index
    %0 = vector.load %arg2[%c0, %c0_0] : memref<32x400xbf16, #tpu.memory_space<vmem>>, vector<32x400xbf16>
    %c0_1 = arith.constant 0 : index
    %c0_2 = arith.constant 0 : index
    %c0_3 = arith.constant 0 : index
    %1 = vector.load %arg1[%c0_1, %c0_2, %c0_3] : memref<4x400x98xbf16, #tpu.memory_space<vmem>>, vector<1x400x98xbf16>
    %2 = vector.shape_cast %1 : vector<1x400x98xbf16> to vector<400x98xbf16>
    %cst = arith.constant dense<0.000000e+00> : vector<32x98xf32>
    %3 = tpu.matmul %0, %2, %cst {dimension_numbers = #tpu.dot_dimension_numbers<[1], [0], [0], [1], [0, 0, 1, 1], [], []>} : vector<32x400xbf16>, vector<400x98xbf16>, vector<32x98xf32> -> vector<32x98xf32>
    %c1 = arith.constant 1 : index
    %c0_4 = arith.constant 0 : index
    %c0_5 = arith.constant 0 : index
    %4 = vector.load %arg1[%c1, %c0_4, %c0_5] : memref<4x400x98xbf16, #tpu.memory_space<vmem>>, vector<1x400x98xbf16>
    %5 = vector.shape_cast %4 : vector<1x400x98xbf16> to vector<400x98xbf16>
    %cst_6 = arith.constant dense<0.000000e+00> : vector<32x98xf32>
    %6 = tpu.matmul %0, %5, %cst_6 {dimension_numbers = #tpu.dot_dimension_numbers<[1], [0], [0], [1], [0, 0, 1, 1], [], []>} : vector<32x400xbf16>, vector<400x98xbf16>, vector<32x98xf32> -> vector<32x98xf32>
    %7 = arith.maximumf %3, %6 : vector<32x98xf32>
    %c2 = arith.constant 2 : index
    %c0_7 = arith.constant 0 : index
    %c0_8 = arith.constant 0 : index
    %8 = vector.load %arg1[%c2, %c0_7, %c0_8] : memref<4x400x98xbf16, #tpu.memory_space<vmem>>, vector<1x400x98xbf16>
    %9 = vector.shape_cast %8 : vector<1x400x98xbf16> to vector<400x98xbf16>
    %cst_9 = arith.constant dense<0.000000e+00> : vector<32x98xf32>
    %10 = tpu.matmul %0, %9, %cst_9 {dimension_numbers = #tpu.dot_dimension_numbers<[1], [0], [0], [1], [0, 0, 1, 1], [], []>} : vector<32x400xbf16>, vector<400x98xbf16>, vector<32x98xf32> -> vector<32x98xf32>
    %11 = arith.maximumf %7, %10 : vector<32x98xf32>
    %c3 = arith.constant 3 : index
    %c0_10 = arith.constant 0 : index
    %c0_11 = arith.constant 0 : index
    %12 = vector.load %arg1[%c3, %c0_10, %c0_11] : memref<4x400x98xbf16, #tpu.memory_space<vmem>>, vector<1x400x98xbf16>
    %13 = vector.shape_cast %12 : vector<1x400x98xbf16> to vector<400x98xbf16>
    %cst_12 = arith.constant dense<0.000000e+00> : vector<32x98xf32>
    %14 = tpu.matmul %0, %13, %cst_12 {dimension_numbers = #tpu.dot_dimension_numbers<[1], [0], [0], [1], [0, 0, 1, 1], [], []>} : vector<32x400xbf16>, vector<400x98xbf16>, vector<32x98xf32> -> vector<32x98xf32>
    %15 = arith.maximumf %11, %14 : vector<32x98xf32>
    %c0_13 = arith.constant 0 : index
    %c0_14 = arith.constant 0 : index
    %16 = vector.load %arg3[%c0_13, %c0_14] : memref<32x1xf32, #tpu.memory_space<vmem>>, vector<32x1xf32>
    %17 = vector.broadcast %16 : vector<32x1xf32> to vector<32x98xf32>
    %18 = arith.addf %15, %17 : vector<32x98xf32>
    %cst_15 = arith.constant 0.000000e+00 : f32
    %19 = vector.broadcast %cst_15 : f32 to vector<32x98xf32>
    %20 = arith.maximumf %18, %19 : vector<32x98xf32>
    %cst_16 = arith.constant 0.000000e+00 : f32
    %21 = vector.broadcast %cst_16 : f32 to vector<10x98xf32>
    %c0_17 = arith.constant 0 : index
    %c0_18 = arith.constant 0 : index
    %c0_19 = arith.constant 0 : index
    %22 = vector.load %arg4[%c0_17, %c0_18, %c0_19] : memref<10x32x98xf32, #tpu.memory_space<vmem>>, vector<10x1x98xf32>
    %23 = vector.shape_cast %22 : vector<10x1x98xf32> to vector<10x98xf32>
    %24 = vector.extract_strided_slice %20 {offsets = [0, 0], sizes = [1, 98], strides = [1, 1]} : vector<32x98xf32> to vector<1x98xf32>
    %25 = vector.broadcast %24 : vector<1x98xf32> to vector<10x98xf32>
    %26 = arith.mulf %23, %25 : vector<10x98xf32>
    %27 = arith.addf %21, %26 : vector<10x98xf32>
    %c0_20 = arith.constant 0 : index
    %c1_21 = arith.constant 1 : index
    %c0_22 = arith.constant 0 : index
    %28 = vector.load %arg4[%c0_20, %c1_21, %c0_22] : memref<10x32x98xf32, #tpu.memory_space<vmem>>, vector<10x1x98xf32>
    %29 = vector.shape_cast %28 : vector<10x1x98xf32> to vector<10x98xf32>
    %30 = vector.extract_strided_slice %20 {offsets = [1, 0], sizes = [1, 98], strides = [1, 1]} : vector<32x98xf32> to vector<1x98xf32>
    %31 = vector.broadcast %30 : vector<1x98xf32> to vector<10x98xf32>
    %32 = arith.mulf %29, %31 : vector<10x98xf32>
    %33 = arith.addf %27, %32 : vector<10x98xf32>
    %c0_23 = arith.constant 0 : index
    %c2_24 = arith.constant 2 : index
    %c0_25 = arith.constant 0 : index
    %34 = vector.load %arg4[%c0_23, %c2_24, %c0_25] : memref<10x32x98xf32, #tpu.memory_space<vmem>>, vector<10x1x98xf32>
    %35 = vector.shape_cast %34 : vector<10x1x98xf32> to vector<10x98xf32>
    %36 = vector.extract_strided_slice %20 {offsets = [2, 0], sizes = [1, 98], strides = [1, 1]} : vector<32x98xf32> to vector<1x98xf32>
    %37 = vector.broadcast %36 : vector<1x98xf32> to vector<10x98xf32>
    %38 = arith.mulf %35, %37 : vector<10x98xf32>
    %39 = arith.addf %33, %38 : vector<10x98xf32>
    %c0_26 = arith.constant 0 : index
    %c3_27 = arith.constant 3 : index
    %c0_28 = arith.constant 0 : index
    %40 = vector.load %arg4[%c0_26, %c3_27, %c0_28] : memref<10x32x98xf32, #tpu.memory_space<vmem>>, vector<10x1x98xf32>
    %41 = vector.shape_cast %40 : vector<10x1x98xf32> to vector<10x98xf32>
    %42 = vector.extract_strided_slice %20 {offsets = [3, 0], sizes = [1, 98], strides = [1, 1]} : vector<32x98xf32> to vector<1x98xf32>
    %43 = vector.broadcast %42 : vector<1x98xf32> to vector<10x98xf32>
    %44 = arith.mulf %41, %43 : vector<10x98xf32>
    %45 = arith.addf %39, %44 : vector<10x98xf32>
    %c0_29 = arith.constant 0 : index
    %c4 = arith.constant 4 : index
    %c0_30 = arith.constant 0 : index
    %46 = vector.load %arg4[%c0_29, %c4, %c0_30] : memref<10x32x98xf32, #tpu.memory_space<vmem>>, vector<10x1x98xf32>
    %47 = vector.shape_cast %46 : vector<10x1x98xf32> to vector<10x98xf32>
    %48 = vector.extract_strided_slice %20 {offsets = [4, 0], sizes = [1, 98], strides = [1, 1]} : vector<32x98xf32> to vector<1x98xf32>
    %49 = vector.broadcast %48 : vector<1x98xf32> to vector<10x98xf32>
    %50 = arith.mulf %47, %49 : vector<10x98xf32>
    %51 = arith.addf %45, %50 : vector<10x98xf32>
    %c0_31 = arith.constant 0 : index
    %c5 = arith.constant 5 : index
    %c0_32 = arith.constant 0 : index
    %52 = vector.load %arg4[%c0_31, %c5, %c0_32] : memref<10x32x98xf32, #tpu.memory_space<vmem>>, vector<10x1x98xf32>
    %53 = vector.shape_cast %52 : vector<10x1x98xf32> to vector<10x98xf32>
    %54 = vector.extract_strided_slice %20 {offsets = [5, 0], sizes = [1, 98], strides = [1, 1]} : vector<32x98xf32> to vector<1x98xf32>
    %55 = vector.broadcast %54 : vector<1x98xf32> to vector<10x98xf32>
    %56 = arith.mulf %53, %55 : vector<10x98xf32>
    %57 = arith.addf %51, %56 : vector<10x98xf32>
    %c0_33 = arith.constant 0 : index
    %c6 = arith.constant 6 : index
    %c0_34 = arith.constant 0 : index
    %58 = vector.load %arg4[%c0_33, %c6, %c0_34] : memref<10x32x98xf32, #tpu.memory_space<vmem>>, vector<10x1x98xf32>
    %59 = vector.shape_cast %58 : vector<10x1x98xf32> to vector<10x98xf32>
    %60 = vector.extract_strided_slice %20 {offsets = [6, 0], sizes = [1, 98], strides = [1, 1]} : vector<32x98xf32> to vector<1x98xf32>
    %61 = vector.broadcast %60 : vector<1x98xf32> to vector<10x98xf32>
    %62 = arith.mulf %59, %61 : vector<10x98xf32>
    %63 = arith.addf %57, %62 : vector<10x98xf32>
    %c0_35 = arith.constant 0 : index
    %c7 = arith.constant 7 : index
    %c0_36 = arith.constant 0 : index
    %64 = vector.load %arg4[%c0_35, %c7, %c0_36] : memref<10x32x98xf32, #tpu.memory_space<vmem>>, vector<10x1x98xf32>
    %65 = vector.shape_cast %64 : vector<10x1x98xf32> to vector<10x98xf32>
    %66 = vector.extract_strided_slice %20 {offsets = [7, 0], sizes = [1, 98], strides = [1, 1]} : vector<32x98xf32> to vector<1x98xf32>
    %67 = vector.broadcast %66 : vector<1x98xf32> to vector<10x98xf32>
    %68 = arith.mulf %65, %67 : vector<10x98xf32>
    %69 = arith.addf %63, %68 : vector<10x98xf32>
    %c0_37 = arith.constant 0 : index
    %c8 = arith.constant 8 : index
    %c0_38 = arith.constant 0 : index
    %70 = vector.load %arg4[%c0_37, %c8, %c0_38] : memref<10x32x98xf32, #tpu.memory_space<vmem>>, vector<10x1x98xf32>
    %71 = vector.shape_cast %70 : vector<10x1x98xf32> to vector<10x98xf32>
    %72 = vector.extract_strided_slice %20 {offsets = [8, 0], sizes = [1, 98], strides = [1, 1]} : vector<32x98xf32> to vector<1x98xf32>
    %73 = vector.broadcast %72 : vector<1x98xf32> to vector<10x98xf32>
    %74 = arith.mulf %71, %73 : vector<10x98xf32>
    %75 = arith.addf %69, %74 : vector<10x98xf32>
    %c0_39 = arith.constant 0 : index
    %c9 = arith.constant 9 : index
    %c0_40 = arith.constant 0 : index
    %76 = vector.load %arg4[%c0_39, %c9, %c0_40] : memref<10x32x98xf32, #tpu.memory_space<vmem>>, vector<10x1x98xf32>
    %77 = vector.shape_cast %76 : vector<10x1x98xf32> to vector<10x98xf32>
    %78 = vector.extract_strided_slice %20 {offsets = [9, 0], sizes = [1, 98], strides = [1, 1]} : vector<32x98xf32> to vector<1x98xf32>
    %79 = vector.broadcast %78 : vector<1x98xf32> to vector<10x98xf32>
    %80 = arith.mulf %77, %79 : vector<10x98xf32>
    %81 = arith.addf %75, %80 : vector<10x98xf32>
    %c0_41 = arith.constant 0 : index
    %c10 = arith.constant 10 : index
    %c0_42 = arith.constant 0 : index
    %82 = vector.load %arg4[%c0_41, %c10, %c0_42] : memref<10x32x98xf32, #tpu.memory_space<vmem>>, vector<10x1x98xf32>
    %83 = vector.shape_cast %82 : vector<10x1x98xf32> to vector<10x98xf32>
    %84 = vector.extract_strided_slice %20 {offsets = [10, 0], sizes = [1, 98], strides = [1, 1]} : vector<32x98xf32> to vector<1x98xf32>
    %85 = vector.broadcast %84 : vector<1x98xf32> to vector<10x98xf32>
    %86 = arith.mulf %83, %85 : vector<10x98xf32>
    %87 = arith.addf %81, %86 : vector<10x98xf32>
    %c0_43 = arith.constant 0 : index
    %c11 = arith.constant 11 : index
    %c0_44 = arith.constant 0 : index
    %88 = vector.load %arg4[%c0_43, %c11, %c0_44] : memref<10x32x98xf32, #tpu.memory_space<vmem>>, vector<10x1x98xf32>
    %89 = vector.shape_cast %88 : vector<10x1x98xf32> to vector<10x98xf32>
    %90 = vector.extract_strided_slice %20 {offsets = [11, 0], sizes = [1, 98], strides = [1, 1]} : vector<32x98xf32> to vector<1x98xf32>
    %91 = vector.broadcast %90 : vector<1x98xf32> to vector<10x98xf32>
    %92 = arith.mulf %89, %91 : vector<10x98xf32>
    %93 = arith.addf %87, %92 : vector<10x98xf32>
    %c0_45 = arith.constant 0 : index
    %c12 = arith.constant 12 : index
    %c0_46 = arith.constant 0 : index
    %94 = vector.load %arg4[%c0_45, %c12, %c0_46] : memref<10x32x98xf32, #tpu.memory_space<vmem>>, vector<10x1x98xf32>
    %95 = vector.shape_cast %94 : vector<10x1x98xf32> to vector<10x98xf32>
    %96 = vector.extract_strided_slice %20 {offsets = [12, 0], sizes = [1, 98], strides = [1, 1]} : vector<32x98xf32> to vector<1x98xf32>
    %97 = vector.broadcast %96 : vector<1x98xf32> to vector<10x98xf32>
    %98 = arith.mulf %95, %97 : vector<10x98xf32>
    %99 = arith.addf %93, %98 : vector<10x98xf32>
    %c0_47 = arith.constant 0 : index
    %c13 = arith.constant 13 : index
    %c0_48 = arith.constant 0 : index
    %100 = vector.load %arg4[%c0_47, %c13, %c0_48] : memref<10x32x98xf32, #tpu.memory_space<vmem>>, vector<10x1x98xf32>
    %101 = vector.shape_cast %100 : vector<10x1x98xf32> to vector<10x98xf32>
    %102 = vector.extract_strided_slice %20 {offsets = [13, 0], sizes = [1, 98], strides = [1, 1]} : vector<32x98xf32> to vector<1x98xf32>
    %103 = vector.broadcast %102 : vector<1x98xf32> to vector<10x98xf32>
    %104 = arith.mulf %101, %103 : vector<10x98xf32>
    %105 = arith.addf %99, %104 : vector<10x98xf32>
    %c0_49 = arith.constant 0 : index
    %c14 = arith.constant 14 : index
    %c0_50 = arith.constant 0 : index
    %106 = vector.load %arg4[%c0_49, %c14, %c0_50] : memref<10x32x98xf32, #tpu.memory_space<vmem>>, vector<10x1x98xf32>
    %107 = vector.shape_cast %106 : vector<10x1x98xf32> to vector<10x98xf32>
    %108 = vector.extract_strided_slice %20 {offsets = [14, 0], sizes = [1, 98], strides = [1, 1]} : vector<32x98xf32> to vector<1x98xf32>
    %109 = vector.broadcast %108 : vector<1x98xf32> to vector<10x98xf32>
    %110 = arith.mulf %107, %109 : vector<10x98xf32>
    %111 = arith.addf %105, %110 : vector<10x98xf32>
    %c0_51 = arith.constant 0 : index
    %c15 = arith.constant 15 : index
    %c0_52 = arith.constant 0 : index
    %112 = vector.load %arg4[%c0_51, %c15, %c0_52] : memref<10x32x98xf32, #tpu.memory_space<vmem>>, vector<10x1x98xf32>
    %113 = vector.shape_cast %112 : vector<10x1x98xf32> to vector<10x98xf32>
    %114 = vector.extract_strided_slice %20 {offsets = [15, 0], sizes = [1, 98], strides = [1, 1]} : vector<32x98xf32> to vector<1x98xf32>
    %115 = vector.broadcast %114 : vector<1x98xf32> to vector<10x98xf32>
    %116 = arith.mulf %113, %115 : vector<10x98xf32>
    %117 = arith.addf %111, %116 : vector<10x98xf32>
    %c0_53 = arith.constant 0 : index
    %c16 = arith.constant 16 : index
    %c0_54 = arith.constant 0 : index
    %118 = vector.load %arg4[%c0_53, %c16, %c0_54] : memref<10x32x98xf32, #tpu.memory_space<vmem>>, vector<10x1x98xf32>
    %119 = vector.shape_cast %118 : vector<10x1x98xf32> to vector<10x98xf32>
    %120 = vector.extract_strided_slice %20 {offsets = [16, 0], sizes = [1, 98], strides = [1, 1]} : vector<32x98xf32> to vector<1x98xf32>
    %121 = vector.broadcast %120 : vector<1x98xf32> to vector<10x98xf32>
    %122 = arith.mulf %119, %121 : vector<10x98xf32>
    %123 = arith.addf %117, %122 : vector<10x98xf32>
    %c0_55 = arith.constant 0 : index
    %c17 = arith.constant 17 : index
    %c0_56 = arith.constant 0 : index
    %124 = vector.load %arg4[%c0_55, %c17, %c0_56] : memref<10x32x98xf32, #tpu.memory_space<vmem>>, vector<10x1x98xf32>
    %125 = vector.shape_cast %124 : vector<10x1x98xf32> to vector<10x98xf32>
    %126 = vector.extract_strided_slice %20 {offsets = [17, 0], sizes = [1, 98], strides = [1, 1]} : vector<32x98xf32> to vector<1x98xf32>
    %127 = vector.broadcast %126 : vector<1x98xf32> to vector<10x98xf32>
    %128 = arith.mulf %125, %127 : vector<10x98xf32>
    %129 = arith.addf %123, %128 : vector<10x98xf32>
    %c0_57 = arith.constant 0 : index
    %c18 = arith.constant 18 : index
    %c0_58 = arith.constant 0 : index
    %130 = vector.load %arg4[%c0_57, %c18, %c0_58] : memref<10x32x98xf32, #tpu.memory_space<vmem>>, vector<10x1x98xf32>
    %131 = vector.shape_cast %130 : vector<10x1x98xf32> to vector<10x98xf32>
    %132 = vector.extract_strided_slice %20 {offsets = [18, 0], sizes = [1, 98], strides = [1, 1]} : vector<32x98xf32> to vector<1x98xf32>
    %133 = vector.broadcast %132 : vector<1x98xf32> to vector<10x98xf32>
    %134 = arith.mulf %131, %133 : vector<10x98xf32>
    %135 = arith.addf %129, %134 : vector<10x98xf32>
    %c0_59 = arith.constant 0 : index
    %c19 = arith.constant 19 : index
    %c0_60 = arith.constant 0 : index
    %136 = vector.load %arg4[%c0_59, %c19, %c0_60] : memref<10x32x98xf32, #tpu.memory_space<vmem>>, vector<10x1x98xf32>
    %137 = vector.shape_cast %136 : vector<10x1x98xf32> to vector<10x98xf32>
    %138 = vector.extract_strided_slice %20 {offsets = [19, 0], sizes = [1, 98], strides = [1, 1]} : vector<32x98xf32> to vector<1x98xf32>
    %139 = vector.broadcast %138 : vector<1x98xf32> to vector<10x98xf32>
    %140 = arith.mulf %137, %139 : vector<10x98xf32>
    %141 = arith.addf %135, %140 : vector<10x98xf32>
    %c0_61 = arith.constant 0 : index
    %c20 = arith.constant 20 : index
    %c0_62 = arith.constant 0 : index
    %142 = vector.load %arg4[%c0_61, %c20, %c0_62] : memref<10x32x98xf32, #tpu.memory_space<vmem>>, vector<10x1x98xf32>
    %143 = vector.shape_cast %142 : vector<10x1x98xf32> to vector<10x98xf32>
    %144 = vector.extract_strided_slice %20 {offsets = [20, 0], sizes = [1, 98], strides = [1, 1]} : vector<32x98xf32> to vector<1x98xf32>
    %145 = vector.broadcast %144 : vector<1x98xf32> to vector<10x98xf32>
    %146 = arith.mulf %143, %145 : vector<10x98xf32>
    %147 = arith.addf %141, %146 : vector<10x98xf32>
    %c0_63 = arith.constant 0 : index
    %c21 = arith.constant 21 : index
    %c0_64 = arith.constant 0 : index
    %148 = vector.load %arg4[%c0_63, %c21, %c0_64] : memref<10x32x98xf32, #tpu.memory_space<vmem>>, vector<10x1x98xf32>
    %149 = vector.shape_cast %148 : vector<10x1x98xf32> to vector<10x98xf32>
    %150 = vector.extract_strided_slice %20 {offsets = [21, 0], sizes = [1, 98], strides = [1, 1]} : vector<32x98xf32> to vector<1x98xf32>
    %151 = vector.broadcast %150 : vector<1x98xf32> to vector<10x98xf32>
    %152 = arith.mulf %149, %151 : vector<10x98xf32>
    %153 = arith.addf %147, %152 : vector<10x98xf32>
    %c0_65 = arith.constant 0 : index
    %c22 = arith.constant 22 : index
    %c0_66 = arith.constant 0 : index
    %154 = vector.load %arg4[%c0_65, %c22, %c0_66] : memref<10x32x98xf32, #tpu.memory_space<vmem>>, vector<10x1x98xf32>
    %155 = vector.shape_cast %154 : vector<10x1x98xf32> to vector<10x98xf32>
    %156 = vector.extract_strided_slice %20 {offsets = [22, 0], sizes = [1, 98], strides = [1, 1]} : vector<32x98xf32> to vector<1x98xf32>
    %157 = vector.broadcast %156 : vector<1x98xf32> to vector<10x98xf32>
    %158 = arith.mulf %155, %157 : vector<10x98xf32>
    %159 = arith.addf %153, %158 : vector<10x98xf32>
    %c0_67 = arith.constant 0 : index
    %c23 = arith.constant 23 : index
    %c0_68 = arith.constant 0 : index
    %160 = vector.load %arg4[%c0_67, %c23, %c0_68] : memref<10x32x98xf32, #tpu.memory_space<vmem>>, vector<10x1x98xf32>
    %161 = vector.shape_cast %160 : vector<10x1x98xf32> to vector<10x98xf32>
    %162 = vector.extract_strided_slice %20 {offsets = [23, 0], sizes = [1, 98], strides = [1, 1]} : vector<32x98xf32> to vector<1x98xf32>
    %163 = vector.broadcast %162 : vector<1x98xf32> to vector<10x98xf32>
    %164 = arith.mulf %161, %163 : vector<10x98xf32>
    %165 = arith.addf %159, %164 : vector<10x98xf32>
    %c0_69 = arith.constant 0 : index
    %c24 = arith.constant 24 : index
    %c0_70 = arith.constant 0 : index
    %166 = vector.load %arg4[%c0_69, %c24, %c0_70] : memref<10x32x98xf32, #tpu.memory_space<vmem>>, vector<10x1x98xf32>
    %167 = vector.shape_cast %166 : vector<10x1x98xf32> to vector<10x98xf32>
    %168 = vector.extract_strided_slice %20 {offsets = [24, 0], sizes = [1, 98], strides = [1, 1]} : vector<32x98xf32> to vector<1x98xf32>
    %169 = vector.broadcast %168 : vector<1x98xf32> to vector<10x98xf32>
    %170 = arith.mulf %167, %169 : vector<10x98xf32>
    %171 = arith.addf %165, %170 : vector<10x98xf32>
    %c0_71 = arith.constant 0 : index
    %c25 = arith.constant 25 : index
    %c0_72 = arith.constant 0 : index
    %172 = vector.load %arg4[%c0_71, %c25, %c0_72] : memref<10x32x98xf32, #tpu.memory_space<vmem>>, vector<10x1x98xf32>
    %173 = vector.shape_cast %172 : vector<10x1x98xf32> to vector<10x98xf32>
    %174 = vector.extract_strided_slice %20 {offsets = [25, 0], sizes = [1, 98], strides = [1, 1]} : vector<32x98xf32> to vector<1x98xf32>
    %175 = vector.broadcast %174 : vector<1x98xf32> to vector<10x98xf32>
    %176 = arith.mulf %173, %175 : vector<10x98xf32>
    %177 = arith.addf %171, %176 : vector<10x98xf32>
    %c0_73 = arith.constant 0 : index
    %c26 = arith.constant 26 : index
    %c0_74 = arith.constant 0 : index
    %178 = vector.load %arg4[%c0_73, %c26, %c0_74] : memref<10x32x98xf32, #tpu.memory_space<vmem>>, vector<10x1x98xf32>
    %179 = vector.shape_cast %178 : vector<10x1x98xf32> to vector<10x98xf32>
    %180 = vector.extract_strided_slice %20 {offsets = [26, 0], sizes = [1, 98], strides = [1, 1]} : vector<32x98xf32> to vector<1x98xf32>
    %181 = vector.broadcast %180 : vector<1x98xf32> to vector<10x98xf32>
    %182 = arith.mulf %179, %181 : vector<10x98xf32>
    %183 = arith.addf %177, %182 : vector<10x98xf32>
    %c0_75 = arith.constant 0 : index
    %c27 = arith.constant 27 : index
    %c0_76 = arith.constant 0 : index
    %184 = vector.load %arg4[%c0_75, %c27, %c0_76] : memref<10x32x98xf32, #tpu.memory_space<vmem>>, vector<10x1x98xf32>
    %185 = vector.shape_cast %184 : vector<10x1x98xf32> to vector<10x98xf32>
    %186 = vector.extract_strided_slice %20 {offsets = [27, 0], sizes = [1, 98], strides = [1, 1]} : vector<32x98xf32> to vector<1x98xf32>
    %187 = vector.broadcast %186 : vector<1x98xf32> to vector<10x98xf32>
    %188 = arith.mulf %185, %187 : vector<10x98xf32>
    %189 = arith.addf %183, %188 : vector<10x98xf32>
    %c0_77 = arith.constant 0 : index
    %c28 = arith.constant 28 : index
    %c0_78 = arith.constant 0 : index
    %190 = vector.load %arg4[%c0_77, %c28, %c0_78] : memref<10x32x98xf32, #tpu.memory_space<vmem>>, vector<10x1x98xf32>
    %191 = vector.shape_cast %190 : vector<10x1x98xf32> to vector<10x98xf32>
    %192 = vector.extract_strided_slice %20 {offsets = [28, 0], sizes = [1, 98], strides = [1, 1]} : vector<32x98xf32> to vector<1x98xf32>
    %193 = vector.broadcast %192 : vector<1x98xf32> to vector<10x98xf32>
    %194 = arith.mulf %191, %193 : vector<10x98xf32>
    %195 = arith.addf %189, %194 : vector<10x98xf32>
    %c0_79 = arith.constant 0 : index
    %c29 = arith.constant 29 : index
    %c0_80 = arith.constant 0 : index
    %196 = vector.load %arg4[%c0_79, %c29, %c0_80] : memref<10x32x98xf32, #tpu.memory_space<vmem>>, vector<10x1x98xf32>
    %197 = vector.shape_cast %196 : vector<10x1x98xf32> to vector<10x98xf32>
    %198 = vector.extract_strided_slice %20 {offsets = [29, 0], sizes = [1, 98], strides = [1, 1]} : vector<32x98xf32> to vector<1x98xf32>
    %199 = vector.broadcast %198 : vector<1x98xf32> to vector<10x98xf32>
    %200 = arith.mulf %197, %199 : vector<10x98xf32>
    %201 = arith.addf %195, %200 : vector<10x98xf32>
    %c0_81 = arith.constant 0 : index
    %c30 = arith.constant 30 : index
    %c0_82 = arith.constant 0 : index
    %202 = vector.load %arg4[%c0_81, %c30, %c0_82] : memref<10x32x98xf32, #tpu.memory_space<vmem>>, vector<10x1x98xf32>
    %203 = vector.shape_cast %202 : vector<10x1x98xf32> to vector<10x98xf32>
    %204 = vector.extract_strided_slice %20 {offsets = [30, 0], sizes = [1, 98], strides = [1, 1]} : vector<32x98xf32> to vector<1x98xf32>
    %205 = vector.broadcast %204 : vector<1x98xf32> to vector<10x98xf32>
    %206 = arith.mulf %203, %205 : vector<10x98xf32>
    %207 = arith.addf %201, %206 : vector<10x98xf32>
    %c0_83 = arith.constant 0 : index
    %c31 = arith.constant 31 : index
    %c0_84 = arith.constant 0 : index
    %208 = vector.load %arg4[%c0_83, %c31, %c0_84] : memref<10x32x98xf32, #tpu.memory_space<vmem>>, vector<10x1x98xf32>
    %209 = vector.shape_cast %208 : vector<10x1x98xf32> to vector<10x98xf32>
    %210 = vector.extract_strided_slice %20 {offsets = [31, 0], sizes = [1, 98], strides = [1, 1]} : vector<32x98xf32> to vector<1x98xf32>
    %211 = vector.broadcast %210 : vector<1x98xf32> to vector<10x98xf32>
    %212 = arith.mulf %209, %211 : vector<10x98xf32>
    %213 = arith.addf %207, %212 : vector<10x98xf32>
    %c0_85 = arith.constant 0 : index
    %c0_86 = arith.constant 0 : index
    %214 = vector.load %arg5[%c0_85, %c0_86] : memref<98x2xf32, #tpu.memory_space<vmem>>, vector<98x2xf32>
    %cst_87 = arith.constant dense<0.000000e+00> : vector<10x2xf32>
    %215 = tpu.matmul %213, %214, %cst_87 {dimension_numbers = #tpu.dot_dimension_numbers<[1], [0], [0], [1], [0, 0, 1, 1], [], []>} : vector<10x98xf32>, vector<98x2xf32>, vector<10x2xf32> -> vector<10x2xf32>
    %c0_88 = arith.constant 0 : index
    %c0_89 = arith.constant 0 : index
    %216 = vector.load %arg6[%c0_88, %c0_89] : memref<10x1xf32, #tpu.memory_space<vmem>>, vector<10x1xf32>
    %217 = vector.broadcast %216 : vector<10x1xf32> to vector<10x2xf32>
    %218 = arith.addf %215, %217 : vector<10x2xf32>
    %c0_90 = arith.constant 0 : index
    %c0_91 = arith.constant 0 : index
    %219 = vector.load %arg7[%c0_90, %c0_91] : memref<10x2xf32, #tpu.memory_space<vmem>>, vector<10x2xf32>
    tpu.vector_store %arg7[%c0_90, %c0_91], %218 {strides = array<i32>} : memref<10x2xf32, #tpu.memory_space<vmem>>, vector<10x2xf32>,
    return
  }
  func.func @transform_0(%arg0: i32) -> (i32, i32, i32) {
    %c0_i32 = arith.constant 0 : i32
    %c0_i32_0 = arith.constant 0 : i32
    %c0_i32_1 = arith.constant 0 : i32
    %c0_i32_2 = arith.constant 0 : i32
    return %c0_i32, %c0_i32_0, %c0_i32_1 : i32, i32, i32
  }
  func.func @transform_1(%arg0: i32) -> (i32, i32) {
    %c0_i32 = arith.constant 0 : i32
    %c0_i32_0 = arith.constant 0 : i32
    %c0_i32_1 = arith.constant 0 : i32
    return %c0_i32, %c0_i32_0 : i32, i32
  }
  func.func @transform_2(%arg0: i32) -> (i32, i32) {
    %c0_i32 = arith.constant 0 : i32
    %c0_i32_0 = arith.constant 0 : i32
    %c0_i32_1 = arith.constant 0 : i32
    return %c0_i32, %c0_i32_0 : i32, i32
  }
  func.func @transform_3(%arg0: i32) -> (i32, i32, i32) {
    %c0_i32 = arith.constant 0 : i32
    %c0_i32_0 = arith.constant 0 : i32
    %c0_i32_1 = arith.constant 0 : i32
    %c0_i32_2 = arith.constant 0 : i32
    return %c0_i32, %c0_i32_0, %c0_i32_1 : i32, i32, i32
  }
  func.func @transform_4(%arg0: i32) -> (i32, i32) {
    %c0_i32 = arith.constant 0 : i32
    %c0_i32_0 = arith.constant 0 : i32
    %c0_i32_1 = arith.constant 0 : i32
    return %c0_i32, %c0_i32_0 : i32, i32
  }
  func.func @transform_5(%arg0: i32) -> (i32, i32) {
    %c0_i32 = arith.constant 0 : i32
    %c0_i32_0 = arith.constant 0 : i32
    %c0_i32_1 = arith.constant 0 : i32
    return %c0_i32, %c0_i32_0 : i32, i32
  }
  func.func @transform_6(%arg0: i32) -> (i32, i32) {
    %c0_i32 = arith.constant 0 : i32
    %c0_i32_0 = arith.constant 0 : i32
    %c0_i32_1 = arith.constant 0 : i32
    return %c0_i32, %c0_i32_0 : i32, i32
  }
}

</mosaic_0001>

<bundles_post_ra>
// kernel: cnn_forward.2
= control target key start
LH: loop header
LB: loop body
LE: loop exit
PB: predicated region body
PF: predicated region fallthrough
CT: control target
= control target key end

     0   :  { %vm70_vm0 = vcmask 1043456   ;;  %vm71_vm1 = vcmask 1044480   ;;  %v812_v1 = vmov 65535   ;;  %v813_v3 = vmov 0   ;;  %s999_s0 = inlined_call_operand.vmem [shape: bf16[4,25,392], index: 0, kind: input, shape index: {}]   ;;  %s1000_s1 = inlined_call_operand.vmem [shape: bf16[16,25], index: 1, kind: input, shape index: {}]   ;;  %s1001_s2 = inlined_call_operand.vmem [shape: f32[16,1], index: 2, kind: input, shape index: {}]   ;;  %s1002_s3 = inlined_call_operand.vmem [shape: bf16[16,392], index: 3, kind: output, shape index: {}]  }
   0x1   :  { %v763_v0 = vld [vmem:[%s999_s0 + $0x4] ss:$16 sps:$4 sm:$0xff]   ;;  %v72_v2 = vsel %vm70_vm0, 4294967295, %v812_v1  ;;  %118 = vmatprep.mubr.bf16.mxu0 %v813_v3  ;;  %161 = vmatprep.mubr.bf16.mxu1 %v813_v3  ;;  %v765_v4 = vld [vmem:[%s999_s0 + $0xc] ss:$16 sps:$4 sm:$0xff]   ;;  %vm66_vm2 = vcmask 203776  }
   0x2   :  { %762 = vset.pattern.permute.xlu0 %v813_v3  ;;  %86 = vmatprep.subr.bf16.mxu0 %v763_v0  ;;  %v767_v5 = vld [vmem:[%s999_s0] ss:$16 sps:$4 sm:$0xff]   ;;  %v768_v6 = vld [vmem:[%s999_s0 + $0x8] ss:$16 sps:$4 sm:$0xff]   ;;  %v850_v7 = vsel %vm71_vm1, %v72_v2, 0  ;;  %vm678_vm3 = vcmask 64516  }
   0x3   :  { %129 = vmatprep.subr.bf16.mxu1 %v765_v4  ;;  %v769_v8 = vld [vmem:[%s999_s0 + $0x24] ss:$16 sps:$4 sm:$0x1f]   ;;  %87 = vmatpush1.bf16.msra.mxu0 %v767_v5  ;;  %v771_v9 = vld [vmem:[%s999_s0 + $0x2c] ss:$16 sps:$4 sm:$0x1f]   ;;  %vm679_vm4 = vmor %vm678_vm3, %vm70_vm0 }
   0x4   :  { %130 = vmatpush1.bf16.msra.mxu1 %v768_v6  ;;  %v78_v10 = vand.u32 %v769_v8, %v850_v7  ;;  %v773_v11 = vld [vmem:[%s999_s0 + $0x20] ss:$16 sps:$4 sm:$0x1f]   ;;  %v774_v12 = vld [vmem:[%s999_s0 + $0x28] ss:$16 sps:$4 sm:$0x1f]   ;;  %v84_v13 = vand.u32 %v771_v9, %v850_v7 }
   0x5   :  { %v869_v14 = vld [vmem:[%s1000_s1] sm:$0xff]   ;;  %v75_v15 = vand.u32 %v773_v11, %v850_v7  ;;  %v81_v16 = vand.u32 %v774_v12, %v850_v7  ;;  %v779_v19 = vld [vmem:[%s999_s0 + $0x48] ss:$16 sps:$4 sm:$0xff]   ;;  %v781_v20 = vld [vmem:[%s999_s0 + $0x4c] ss:$16 sps:$4 sm:$0xff]  }
   0x6   :  { %88 = vmatprep.subr.bf16.mxu0 %v78_v10  ;;  %v776_v17 = vld [vmem:[%s999_s0 + $0x40] ss:$16 sps:$4 sm:$0xff]   ;;  %v778_v18 = vld [vmem:[%s999_s0 + $0x44] ss:$16 sps:$4 sm:$0xff]   ;;  %131 = vmatprep.subr.bf16.mxu1 %v84_v13  ;;  %v793_v30 = vld [vmem:[%s999_s0 + $0x8c] ss:$16 sps:$4 sm:$0xff]  }
   0x7   :  { %89 = vmatpush1.bf16.msra.mxu0 %v75_v15  ;;  %v782_v21 = vld [vmem:[%s999_s0 + $0x60] ss:$16 sps:$4 sm:$0x1f]   ;;  %v784_v22 = vld [vmem:[%s999_s0 + $0x64] ss:$16 sps:$4 sm:$0x1f]  }
   0x8   :  { %132 = vmatpush1.bf16.msra.mxu1 %v81_v16  ;;  %229 = vmatprep.subr.bf16.mxu0 %v778_v18  ;;  %v785_v23 = vld [vmem:[%s999_s0 + $0x68] ss:$16 sps:$4 sm:$0x1f]   ;;  %v221_v24 = vand.u32 %v784_v22, %v850_v7  ;;  %v787_v25 = vld [vmem:[%s999_s0 + $0x6c] ss:$16 sps:$4 sm:$0x1f]   ;;  %v218_v26 = vand.u32 %v782_v21, %v850_v7 }
   0x9   :  { %272 = vmatprep.subr.bf16.mxu1 %v781_v20  ;;  %v224_v27 = vand.u32 %v785_v23, %v850_v7  ;;  %v227_v28 = vand.u32 %v787_v25, %v850_v7  ;;  %v790_v29 = vld [vmem:[%s999_s0 + $0x84] ss:$16 sps:$4 sm:$0xff]   ;;  %v788_v31 = vld [vmem:[%s999_s0 + $0x80] ss:$16 sps:$4 sm:$0xff]   ;;  %v791_v32 = vld [vmem:[%s999_s0 + $0x88] ss:$16 sps:$4 sm:$0xff]  }
   0xa   :  { %696 = vmatmul.mubr.msk.bf16.vlgmr.msra.gmra.mrb[0].mxu0 %vm66_vm2, %v869_v14  ;;  %v794_v33 = vld [vmem:[%s999_s0 + $0xa0] ss:$16 sps:$4 sm:$0x1f]   ;;  %v796_v34 = vld [vmem:[%s999_s0 + $0xa4] ss:$16 sps:$4 sm:$0x1f]  }
   0xb   :  { %697 = vmatmul.mubr.msk.bf16.vlgmr.msra.gmra.mrb[0].mxu1 %vm66_vm2, %v869_v14  ;;  %230 = vmatpush1.bf16.msra.mxu0 %v776_v17  ;;  %v797_v35 = vld [vmem:[%s999_s0 + $0xa8] ss:$16 sps:$4 sm:$0x1f]   ;;  %v799_v36 = vld [vmem:[%s999_s0 + $0xac] ss:$16 sps:$4 sm:$0x1f]   ;;  %v372_v37 = vand.u32 %v796_v34, %v850_v7  ;;  %v369_v40 = vand.u32 %v794_v33, %v850_v7 }
   0xc   :  { %273 = vmatpush1.bf16.msra.mxu1 %v779_v19  ;;  %231 = vmatprep.subr.bf16.mxu0 %v221_v24  ;;  %v378_v38 = vand.u32 %v799_v36, %v850_v7  ;;  %v802_v39 = vld [vmem:[%s999_s0 + $0xc4] ss:$16 sps:$4 sm:$0xff]   ;;  %v375_v41 = vand.u32 %v797_v35, %v850_v7  ;;  %v805_v42 = vld [vmem:[%s999_s0 + $0xcc] ss:$16 sps:$4 sm:$0xff]   ;;  %v800_v46 = vld [vmem:[%s999_s0 + $0xc0] ss:$16 sps:$4 sm:$0xff]  }
   0xd   :  { %261 = vmatprep.mubr.bf16.mxu0 %v813_v3  ;;  %304 = vmatprep.mubr.bf16.mxu1 %v813_v3  ;;  %v808_v43 = vld [vmem:[%s999_s0 + $0xe4] ss:$16 sps:$4 sm:$0x1f]   ;;  %v811_v45 = vld [vmem:[%s999_s0 + $0xec] ss:$16 sps:$4 sm:$0x1f]  }
   0xe   :  { %274 = vmatprep.subr.bf16.mxu1 %v227_v28  ;;  %v625_v44 = vld [vmem:[%s1001_s2] sm:$0xff]  ;;  %v803_v47 = vld [vmem:[%s999_s0 + $0xc8] ss:$16 sps:$4 sm:$0xff]   ;;  %v523_v50 = vand.u32 %v808_v43, %v850_v7  ;;  %v529_v51 = vand.u32 %v811_v45, %v850_v7 }
   0xf   :  { %232 = vmatpush1.bf16.msra.mxu0 %v218_v26  ;;  %629 = vperm.xlu0 %762, %v625_v44   ;;  %v806_v48 = vld [vmem:[%s999_s0 + $0xe0] ss:$16 sps:$4 sm:$0x1f]   ;;  %v809_v49 = vld [vmem:[%s999_s0 + $0xe8] ss:$16 sps:$4 sm:$0x1f]  }
  0x10   :  { %275 = vmatpush1.bf16.msra.mxu1 %v224_v27  ;;  %380 = vmatprep.subr.bf16.mxu0 %v790_v29  ;;  %v520_v52 = vand.u32 %v806_v48, %v850_v7  ;;  %v526_v53 = vand.u32 %v809_v49, %v850_v7  ;;  %v626_v54 = vld [vmem:[%s1001_s2 + $0x8] sm:$0xff] }
  0x11   :  { %423 = vmatprep.subr.bf16.mxu1 %v793_v30 }
  0x12   :  { %714 = vmatmul.mubr.msk.bf16.vlgmr.msra.gmra.mrb[4].mxu0 %vm66_vm2, %v869_v14 }
  0x13   :  { %715 = vmatmul.mubr.msk.bf16.vlgmr.msra.gmra.mrb[4].mxu1 %vm66_vm2, %v869_v14  ;;  %381 = vmatpush1.bf16.msra.mxu0 %v788_v31 }
  0x14   :  { %424 = vmatpush1.bf16.msra.mxu1 %v791_v32  ;;  %382 = vmatprep.subr.bf16.mxu0 %v372_v37 }
  0x15   :  { %425 = vmatprep.subr.bf16.mxu1 %v378_v38  ;;  %412 = vmatprep.mubr.bf16.mxu0 %v813_v3 }
  0x16   :  { %455 = vmatprep.mubr.bf16.mxu1 %v813_v3  ;;  %634 = vperm.xlu0 %762, %v626_v54  }
  0x17   :  { %383 = vmatpush1.bf16.msra.mxu0 %v369_v40 }
  0x18   :  { %426 = vmatpush1.bf16.msra.mxu1 %v375_v41  ;;  %531 = vmatprep.subr.bf16.mxu0 %v802_v39 }
  0x19   :  { %574 = vmatprep.subr.bf16.mxu1 %v805_v42 }
  0x1a   :  { %732 = vmatmul.mubr.msk.bf16.vlgmr.msra.gmra.mrb[8].mxu0 %vm66_vm2, %v869_v14 }
  0x1b   :  { %733 = vmatmul.mubr.msk.bf16.vlgmr.msra.gmra.mrb[8].mxu1 %vm66_vm2, %v869_v14  ;;  %532 = vmatpush1.bf16.msra.mxu0 %v800_v46 }
  0x1c   :  { %575 = vmatpush1.bf16.msra.mxu1 %v803_v47  ;;  %533 = vmatprep.subr.bf16.mxu0 %v523_v50 }
  0x1d   :  { %576 = vmatprep.subr.bf16.mxu1 %v529_v51  ;;  %563 = vmatprep.mubr.bf16.mxu0 %v813_v3 }
  0x1e   :  { %606 = vmatprep.mubr.bf16.mxu1 %v813_v3 }
  0x1f   :  { %534 = vmatpush1.bf16.msra.mxu0 %v520_v52 }
  0x20   :  { %577 = vmatpush1.bf16.msra.mxu1 %v526_v53 }
  0x22   :  { %750 = vmatmul.mubr.msk.bf16.vlgmr.msra.gmra.mrb[12].mxu0 %vm66_vm2, %v869_v14 }
  0x23   :  { %751 = vmatmul.mubr.msk.bf16.vlgmr.msra.gmra.mrb[12].mxu1 %vm66_vm2, %v869_v14 }
  0x8e   :  { %v630_v31 = vpop.permute.xlu0 %629 }
  0x95   :  { %v635_v50 = vpop.permute.xlu0 %634 }
  0xdd   :  { %v120_v55 = vpop.f32.mrb[0].mxu0 }
  0xde   :  { %v163_v56 = vpop.f32.mrb[0].mxu1  ;;  %v122_v57 = vpop.f32.mrb[1].mxu0 }
  0xdf   :  { %v165_v58 = vpop.f32.mrb[1].mxu1  ;;  %v124_v59 = vpop.f32.mrb[2].mxu0 }
  0xe0   :  { %v167_v60 = vpop.f32.mrb[2].mxu1  ;;  %v126_v61 = vpop.f32.mrb[3].mxu0 }
  0xe1   :  { %v169_v62 = vpop.f32.mrb[3].mxu1 }
  0xe5   :  { %v263_v63 = vpop.f32.mrb[4].mxu0 }
  0xe6   :  { %v306_v0 = vpop.f32.mrb[4].mxu1  ;;  %v315_v1 = vmax.f32 %v120_v55, %v263_v63  ;;  %v265_v3 = vpop.f32.mrb[5].mxu0 }
  0xe7   :  { %v317_v2 = vmax.f32 %v163_v56, %v306_v0  ;;  %v308_v4 = vpop.f32.mrb[5].mxu1  ;;  %v316_v5 = vmax.f32 %v122_v57, %v265_v3  ;;  %v267_v7 = vpop.f32.mrb[6].mxu0 }
  0xe8   :  { %v318_v6 = vmax.f32 %v165_v58, %v308_v4  ;;  %v310_v8 = vpop.f32.mrb[6].mxu1  ;;  %v319_v9 = vmax.f32 %v124_v59, %v267_v7  ;;  %v269_v11 = vpop.f32.mrb[7].mxu0 }
  0xe9   :  { %v321_v10 = vmax.f32 %v167_v60, %v310_v8  ;;  %v312_v12 = vpop.f32.mrb[7].mxu1  ;;  %v320_v13 = vmax.f32 %v126_v61, %v269_v11 }
  0xea   :  { %v322_v14 = vmax.f32 %v169_v62, %v312_v12 }
  0xed   :  { %v414_v15 = vpop.f32.mrb[8].mxu0 }
  0xee   :  { %v457_v16 = vpop.f32.mrb[8].mxu1  ;;  %v466_v17 = vmax.f32 %v315_v1, %v414_v15  ;;  %v416_v19 = vpop.f32.mrb[9].mxu0 }
  0xef   :  { %v468_v18 = vmax.f32 %v317_v2, %v457_v16  ;;  %v459_v20 = vpop.f32.mrb[9].mxu1  ;;  %v467_v21 = vmax.f32 %v316_v5, %v416_v19  ;;  %v418_v23 = vpop.f32.mrb[10].mxu0 }
  0xf0   :  { %v469_v22 = vmax.f32 %v318_v6, %v459_v20  ;;  %v461_v24 = vpop.f32.mrb[10].mxu1  ;;  %v470_v25 = vmax.f32 %v319_v9, %v418_v23  ;;  %v420_v27 = vpop.f32.mrb[11].mxu0 }
  0xf1   :  { %v472_v26 = vmax.f32 %v321_v10, %v461_v24  ;;  %v463_v28 = vpop.f32.mrb[11].mxu1  ;;  %v471_v29 = vmax.f32 %v320_v13, %v420_v27 }
  0xf2   :  { %v473_v30 = vmax.f32 %v322_v14, %v463_v28 }
  0xf5   :  { %v565_v32 = vpop.f32.mrb[12].mxu0 }
  0xf6   :  { %v608_v33 = vpop.f32.mrb[12].mxu1  ;;  %v617_v34 = vmax.f32 %v466_v17, %v565_v32  ;;  %v567_v36 = vpop.f32.mrb[13].mxu0 }
  0xf7   :  { %v619_v35 = vmax.f32 %v468_v18, %v608_v33  ;;  %v610_v37 = vpop.f32.mrb[13].mxu1  ;;  %v618_v38 = vmax.f32 %v467_v21, %v567_v36  ;;  %v569_v40 = vpop.f32.mrb[14].mxu0 }
  0xf8   :  { %v620_v39 = vmax.f32 %v469_v22, %v610_v37  ;;  %v612_v41 = vpop.f32.mrb[14].mxu1  ;;  %v637_v42 = vadd.f32 %v630_v31, %v617_v34  ;;  %v621_v44 = vmax.f32 %v470_v25, %v569_v40  ;;  %v571_v46 = vpop.f32.mrb[15].mxu0 }
  0xf9   :  { %v639_v43 = vadd.f32 %v630_v31, %v619_v35  ;;  %v623_v45 = vmax.f32 %v472_v26, %v612_v41  ;;  %v614_v47 = vpop.f32.mrb[15].mxu1  ;;  %v638_v48 = vadd.f32 %v630_v31, %v618_v38  ;;  %v622_v51 = vmax.f32 %v471_v29, %v571_v46 }
  0xfa   :  { %v640_v49 = vadd.f32 %v630_v31, %v620_v39  ;;  %v624_v52 = vmax.f32 %v473_v30, %v614_v47  ;;  %v645_v53 = vmax.f32 %v637_v42, 0.0  ;;  %v641_v55 = vadd.f32 %v635_v50, %v621_v44 }
  0xfb   :  { %v647_v54 = vmax.f32 %v639_v43, 0.0  ;;  %v643_v56 = vadd.f32 %v635_v50, %v623_v45  ;;  %v646_v57 = vmax.f32 %v638_v48, 0.0  ;;  %v642_v59 = vadd.f32 %v635_v50, %v622_v51 }
  0xfc   :  { %v648_v58 = vmax.f32 %v640_v49, 0.0  ;;  %v644_v60 = vadd.f32 %v635_v50, %v624_v52  ;;  %v649_v61 = vmax.f32 %v641_v55, 0.0 }
  0xfd   :  { %v651_v62 = vmax.f32 %v643_v56, 0.0  ;;  %v756_v63 = vpack.c.bf16 %v646_v57, %v645_v53  ;;  %v650_v1 = vmax.f32 %v642_v59, 0.0 }
  0xfe   :  { %v757_v0 = vpack.c.bf16 %v648_v58, %v647_v54  ;;  %v652_v2 = vmax.f32 %v644_v60, 0.0 }
  0xff   :  { %677 = vst [vmem:[%s1002_s3] sm:$0xff] %v756_v63  ;;  %v758_v3 = vpack.c.bf16 %v650_v1, %v649_v61 }
 0x100   :  { %680 = vst.msk [vmem:[%s1002_s3 + $0x8] sm:$0xff] %vm679_vm4, %v757_v0  ;;  %v759_v4 = vpack.c.bf16 %v652_v2, %v651_v62 }
 0x101   :  { %681 = vst [vmem:[%s1002_s3 + $0x10] sm:$0xff] %v758_v3 }
 0x102   :  { %682 = vst.msk [vmem:[%s1002_s3 + $0x18] sm:$0xff] %vm679_vm4, %v759_v4 }

// kernel: tile.9
= control target key start
LH: loop header
LB: loop body
LE: loop exit
PB: predicated region body
PF: predicated region fallthrough
CT: control target
= control target key end

     0   :  { %vm1602_vm0 = vcmask 1047556   ;;  %s3112_s10 = smov 49   ;;  %vm1604_vm1 = vcmask 400384   ;;  %vm1965_vm2 = vcmask 802184   ;;  %s4550_s0 = inlined_call_operand.vmem [shape: f32[10,32,2,49], index: 0, kind: input, shape index: {}]   ;;  %s4551_s1 = inlined_call_operand.vmem [shape: f32[10,32,98], index: 1, kind: output, shape index: {}]  }
   0x1   :  { %v3026_v0 = vld [vmem:[%s4550_s0 + $0xe] sm:$0x3]  ;;  %v3027_v1 = vld [vmem:[%s4550_s0 + $0xc] sm:$0x3]  ;;  %v3028_v2 = vld [vmem:[%s4550_s0 + $0xa] sm:$0x3] }
   0x2   :  { %1568 = vst [vmem:[#allocation0 + $0x38] sm:$0x3] %v3026_v0  ;;  %1573 = vst [vmem:[#allocation0 + $0x30] sm:$0x3] %v3027_v1  ;;  %v3029_v3 = vld [vmem:[%s4550_s0 + $0x8] sm:$0x3] }
   0x3   :  { %1578 = vst [vmem:[#allocation0 + $0x28] sm:$0x3] %v3028_v2  ;;  %v3030_v4 = vld [vmem:[%s4550_s0 + $0x6] sm:$0x3]  ;;  %v3031_v5 = vld [vmem:[%s4550_s0 + $0x4] sm:$0x3] }
   0x4   :  { %1583 = vst [vmem:[#allocation0 + $0x20] sm:$0x3] %v3029_v3  ;;  %1588 = vst [vmem:[#allocation0 + $0x18] sm:$0x3] %v3030_v4  ;;  %v3032_v6 = vld [vmem:[%s4550_s0 + $0x2] sm:$0x3] }
   0x5   :  { %1593 = vst [vmem:[#allocation0 + $0x10] sm:$0x3] %v3031_v5  ;;  %v1598_v7 = vld [vmem:[%s4550_s0] sm:$0x3]  ;;  %1597 = vst [vmem:[#allocation0 + $0x8] sm:$0x3] %v3032_v6 }
   0x6   :  { %1599 = vst [vmem:[#allocation0] sm:$0x3] %v1598_v7  ;;  %v2962_v8 = vld [vmem:[%s4550_s0 + $0x8e] sm:$0x3]  ;;  %v2963_v9 = vld [vmem:[%s4550_s0 + $0x8c] sm:$0x3] }
   0x7   :  { %v2964_v10 = vld [vmem:[%s4550_s0 + $0x8a] sm:$0x3]  ;;  %1248 = vst [vmem:[#allocation0 + $0x238] sm:$0x3] %v2962_v8  ;;  %1253 = vst [vmem:[#allocation0 + $0x230] sm:$0x3] %v2963_v9 }
   0x8   :  { %1258 = vst [vmem:[#allocation0 + $0x228] sm:$0x3] %v2964_v10  ;;  %v2965_v11 = vld [vmem:[%s4550_s0 + $0x88] sm:$0x3]  ;;  %v2966_v12 = vld [vmem:[%s4550_s0 + $0x86] sm:$0x3] }
   0x9   :  { %v2967_v13 = vld [vmem:[%s4550_s0 + $0x84] sm:$0x3]  ;;  %1263 = vst [vmem:[#allocation0 + $0x220] sm:$0x3] %v2965_v11  ;;  %1268 = vst [vmem:[#allocation0 + $0x218] sm:$0x3] %v2966_v12 }
   0xa   :  { %1273 = vst [vmem:[#allocation0 + $0x210] sm:$0x3] %v2967_v13  ;;  %v2968_v14 = vld [vmem:[%s4550_s0 + $0x82] sm:$0x3]  ;;  %v2969_v15 = vld [vmem:[%s4550_s0 + $0x80] sm:$0x3] }
   0xb   :  { %v2994_v16 = vld [vmem:[%s4550_s0 + $0x4e] sm:$0x3]  ;;  %1278 = vst [vmem:[#allocation0 + $0x208] sm:$0x3] %v2968_v14  ;;  %1283 = vst [vmem:[#allocation0 + $0x200] sm:$0x3] %v2969_v15 }
   0xc   :  { %1408 = vst [vmem:[#allocation0 + $0x138] sm:$0x3] %v2994_v16  ;;  %v2995_v17 = vld [vmem:[%s4550_s0 + $0x4c] sm:$0x3]  ;;  %v2996_v18 = vld [vmem:[%s4550_s0 + $0x4a] sm:$0x3] }
   0xd   :  { %v2997_v19 = vld [vmem:[%s4550_s0 + $0x48] sm:$0x3]  ;;  %1413 = vst [vmem:[#allocation0 + $0x130] sm:$0x3] %v2995_v17  ;;  %1418 = vst [vmem:[#allocation0 + $0x128] sm:$0x3] %v2996_v18 }
   0xe   :  { %1423 = vst [vmem:[#allocation0 + $0x120] sm:$0x3] %v2997_v19  ;;  %v2998_v20 = vld [vmem:[%s4550_s0 + $0x46] sm:$0x3]  ;;  %v2999_v21 = vld [vmem:[%s4550_s0 + $0x44] sm:$0x3] }
   0xf   :  { %v3000_v22 = vld [vmem:[%s4550_s0 + $0x42] sm:$0x3]  ;;  %1428 = vst [vmem:[#allocation0 + $0x118] sm:$0x3] %v2998_v20  ;;  %1433 = vst [vmem:[#allocation0 + $0x110] sm:$0x3] %v2999_v21 }
  0x10   :  { %1438 = vst [vmem:[#allocation0 + $0x108] sm:$0x3] %v3000_v22  ;;  %v3001_v23 = vld [vmem:[%s4550_s0 + $0x40] sm:$0x3]  ;;  %v2930_v24 = vld [vmem:[%s4550_s0 + $0xce] sm:$0x3] }
  0x11   :  { %v2931_v25 = vld [vmem:[%s4550_s0 + $0xcc] sm:$0x3]  ;;  %v1960_v26 = vld [vmem:[#allocation0 + $0x1] ss:$8 sm:$0xf0]  }
  0x12   :  { %1443 = vst [vmem:[#allocation0 + $0x100] sm:$0x3] %v3001_v23  ;;  %1088 = vst [vmem:[#allocation0 + $0x338] sm:$0x3] %v2930_v24  ;;  %v2932_v27 = vld [vmem:[%s4550_s0 + $0xca] sm:$0x3] }
  0x13   :  { %1093 = vst [vmem:[#allocation0 + $0x330] sm:$0x3] %v2931_v25  ;;  %v1958_v28 = vld [vmem:[#allocation0 + $0x1] ss:$8 sm:$0xf]  }
  0x14   :  { %1098 = vst [vmem:[#allocation0 + $0x328] sm:$0x3] %v2932_v27  ;;  %v2933_v29 = vld [vmem:[%s4550_s0 + $0xc8] sm:$0x3]  ;;  %v1962_v30 = vsel %vm1602_vm0, %v1960_v26, %v1958_v28  ;;  %v2934_v31 = vld [vmem:[%s4550_s0 + $0xc6] sm:$0x3] }
  0x15   :  { %1103 = vst [vmem:[#allocation0 + $0x320] sm:$0x3] %v2933_v29  ;;  %v2935_v32 = vld [vmem:[%s4550_s0 + $0xc4] sm:$0x3]  ;;  %v2936_v33 = vld [vmem:[%s4550_s0 + $0xc2] sm:$0x3]  ;;  %1963 = vrot.lane.b32.xlu0 %v1962_v30, %s3112_s10 }
  0x16   :  { %v1981_v34 = vld [vmem:[#allocation0 + $0x201] ss:$8 sm:$0xf0]   ;;  %1108 = vst [vmem:[#allocation0 + $0x318] sm:$0x3] %v2934_v31 }
  0x17   :  { %1113 = vst [vmem:[#allocation0 + $0x310] sm:$0x3] %v2935_v32  ;;  %1118 = vst [vmem:[#allocation0 + $0x308] sm:$0x3] %v2936_v33  ;;  %v2937_v35 = vld [vmem:[%s4550_s0 + $0xc0] sm:$0x3] }
  0x18   :  { %v1979_v36 = vld [vmem:[#allocation0 + $0x201] ss:$8 sm:$0xf]   ;;  %1123 = vst [vmem:[#allocation0 + $0x300] sm:$0x3] %v2937_v35 }
  0x19   :  { %v2898_v37 = vld [vmem:[%s4550_s0 + $0x10e] sm:$0x3]  ;;  %v1983_v38 = vsel %vm1602_vm0, %v1981_v34, %v1979_v36  ;;  %v1970_v39 = vld [vmem:[#allocation0 + $0x101] ss:$8 sm:$0xf0]  }
  0x1a   :  { %928 = vst [vmem:[#allocation0 + $0x438] sm:$0x3] %v2898_v37  ;;  %v2899_v40 = vld [vmem:[%s4550_s0 + $0x10c] sm:$0x3]  ;;  %1984 = vrot.lane.b32.xlu1 %v1983_v38, %s3112_s10  ;;  %v2900_v41 = vld [vmem:[%s4550_s0 + $0x10a] sm:$0x3] }
  0x1b   :  { %933 = vst [vmem:[#allocation0 + $0x430] sm:$0x3] %v2899_v40  ;;  %v2901_v42 = vld [vmem:[%s4550_s0 + $0x108] sm:$0x3]  ;;  %v2902_v43 = vld [vmem:[%s4550_s0 + $0x106] sm:$0x3] }
  0x1c   :  { %v1968_v44 = vld [vmem:[#allocation0 + $0x101] ss:$8 sm:$0xf]   ;;  %938 = vst [vmem:[#allocation0 + $0x428] sm:$0x3] %v2900_v41 }
  0x1d   :  { %943 = vst [vmem:[#allocation0 + $0x420] sm:$0x3] %v2901_v42  ;;  %948 = vst [vmem:[#allocation0 + $0x418] sm:$0x3] %v2902_v43  ;;  %v2903_v45 = vld [vmem:[%s4550_s0 + $0x104] sm:$0x3]  ;;  %v1972_v46 = vsel %vm1602_vm0, %v1970_v39, %v1968_v44 }
  0x1e   :  { %953 = vst [vmem:[#allocation0 + $0x410] sm:$0x3] %v2903_v45  ;;  %v2904_v47 = vld [vmem:[%s4550_s0 + $0x102] sm:$0x3]  ;;  %v2905_v48 = vld [vmem:[%s4550_s0 + $0x100] sm:$0x3]  ;;  %1973 = vrot.lane.b32.xlu0 %v1972_v46, %s3112_s10 }
  0x1f   :  { %v2866_v49 = vld [vmem:[%s4550_s0 + $0x14e] sm:$0x3]  ;;  %v1992_v50 = vld [vmem:[#allocation0 + $0x301] ss:$8 sm:$0xf0]  }
  0x20   :  { %958 = vst [vmem:[#allocation0 + $0x408] sm:$0x3] %v2904_v47  ;;  %963 = vst [vmem:[#allocation0 + $0x400] sm:$0x3] %v2905_v48  ;;  %v2867_v51 = vld [vmem:[%s4550_s0 + $0x14c] sm:$0x3] }
  0x21   :  { %768 = vst [vmem:[#allocation0 + $0x538] sm:$0x3] %v2866_v49  ;;  %773 = vst [vmem:[#allocation0 + $0x530] sm:$0x3] %v2867_v51  ;;  %v2868_v52 = vld [vmem:[%s4550_s0 + $0x14a] sm:$0x3] }
  0x22   :  { %v2869_v53 = vld [vmem:[%s4550_s0 + $0x148] sm:$0x3]  ;;  %v2870_v54 = vld [vmem:[%s4550_s0 + $0x146] sm:$0x3]  ;;  %778 = vst [vmem:[#allocation0 + $0x528] sm:$0x3] %v2868_v52 }
  0x23   :  { %v1990_v55 = vld [vmem:[#allocation0 + $0x301] ss:$8 sm:$0xf]   ;;  %783 = vst [vmem:[#allocation0 + $0x520] sm:$0x3] %v2869_v53 }
  0x24   :  { %788 = vst [vmem:[#allocation0 + $0x518] sm:$0x3] %v2870_v54  ;;  %v2871_v56 = vld [vmem:[%s4550_s0 + $0x144] sm:$0x3]  ;;  %v1994_v57 = vsel %vm1602_vm0, %v1992_v50, %v1990_v55  ;;  %v2872_v58 = vld [vmem:[%s4550_s0 + $0x142] sm:$0x3] }
  0x25   :  { %793 = vst [vmem:[#allocation0 + $0x510] sm:$0x3] %v2871_v56  ;;  %v2873_v59 = vld [vmem:[%s4550_s0 + $0x140] sm:$0x3]  ;;  %v2834_v60 = vld [vmem:[%s4550_s0 + $0x18e] sm:$0x3]  ;;  %1995 = vrot.lane.b32.xlu1 %v1994_v57, %s3112_s10 }
  0x26   :  { %798 = vst [vmem:[#allocation0 + $0x508] sm:$0x3] %v2872_v58  ;;  %803 = vst [vmem:[#allocation0 + $0x500] sm:$0x3] %v2873_v59  ;;  %v2835_v61 = vld [vmem:[%s4550_s0 + $0x18c] sm:$0x3] }
  0x27   :  { %608 = vst [vmem:[#allocation0 + $0x638] sm:$0x3] %v2834_v60  ;;  %v2836_v62 = vld [vmem:[%s4550_s0 + $0x18a] sm:$0x3]  ;;  %v2837_v63 = vld [vmem:[%s4550_s0 + $0x188] sm:$0x3] }
  0x28   :  { %v2003_v0 = vld [vmem:[#allocation0 + $0x401] ss:$8 sm:$0xf0]   ;;  %613 = vst [vmem:[#allocation0 + $0x630] sm:$0x3] %v2835_v61 }
  0x29   :  { %618 = vst [vmem:[#allocation0 + $0x628] sm:$0x3] %v2836_v62  ;;  %623 = vst [vmem:[#allocation0 + $0x620] sm:$0x3] %v2837_v63  ;;  %v2838_v1 = vld [vmem:[%s4550_s0 + $0x186] sm:$0x3] }
  0x2a   :  { %628 = vst [vmem:[#allocation0 + $0x618] sm:$0x3] %v2838_v1  ;;  %v2839_v2 = vld [vmem:[%s4550_s0 + $0x184] sm:$0x3]  ;;  %v2840_v3 = vld [vmem:[%s4550_s0 + $0x182] sm:$0x3] }
  0x2b   :  { %v2841_v4 = vld [vmem:[%s4550_s0 + $0x180] sm:$0x3]  ;;  %633 = vst [vmem:[#allocation0 + $0x610] sm:$0x3] %v2839_v2  ;;  %638 = vst [vmem:[#allocation0 + $0x608] sm:$0x3] %v2840_v3 }
  0x2c   :  { %v2001_v5 = vld [vmem:[#allocation0 + $0x401] ss:$8 sm:$0xf]   ;;  %643 = vst [vmem:[#allocation0 + $0x600] sm:$0x3] %v2841_v4 }
  0x2d   :  { %v2802_v6 = vld [vmem:[%s4550_s0 + $0x1ce] sm:$0x3]  ;;  %v2005_v7 = vsel %vm1602_vm0, %v2003_v0, %v2001_v5  ;;  %v2803_v8 = vld [vmem:[%s4550_s0 + $0x1cc] sm:$0x3]  ;;  %v2804_v9 = vld [vmem:[%s4550_s0 + $0x1ca] sm:$0x3] }
  0x2e   :  { %448 = vst [vmem:[#allocation0 + $0x738] sm:$0x3] %v2802_v6  ;;  %v2805_v10 = vld [vmem:[%s4550_s0 + $0x1c8] sm:$0x3]  ;;  %2006 = vrot.lane.b32.xlu0 %v2005_v7, %s3112_s10  ;;  %453 = vst [vmem:[#allocation0 + $0x730] sm:$0x3] %v2803_v8 }
  0x2f   :  { %v2014_v11 = vld [vmem:[#allocation0 + $0x501] ss:$8 sm:$0xf0]   ;;  %458 = vst [vmem:[#allocation0 + $0x728] sm:$0x3] %v2804_v9 }
  0x30   :  { %463 = vst [vmem:[#allocation0 + $0x720] sm:$0x3] %v2805_v10  ;;  %v2806_v12 = vld [vmem:[%s4550_s0 + $0x1c6] sm:$0x3]  ;;  %v2807_v13 = vld [vmem:[%s4550_s0 + $0x1c4] sm:$0x3] }
  0x31   :  { %468 = vst [vmem:[#allocation0 + $0x718] sm:$0x3] %v2806_v12  ;;  %v2808_v14 = vld [vmem:[%s4550_s0 + $0x1c2] sm:$0x3]  ;;  %v2809_v15 = vld [vmem:[%s4550_s0 + $0x1c0] sm:$0x3] }
  0x32   :  { %v2012_v16 = vld [vmem:[#allocation0 + $0x501] ss:$8 sm:$0xf]   ;;  %473 = vst [vmem:[#allocation0 + $0x710] sm:$0x3] %v2807_v13 }
  0x33   :  { %478 = vst [vmem:[#allocation0 + $0x708] sm:$0x3] %v2808_v14  ;;  %483 = vst [vmem:[#allocation0 + $0x700] sm:$0x3] %v2809_v15  ;;  %v2770_v17 = vld [vmem:[%s4550_s0 + $0x20e] sm:$0x3]  ;;  %v2016_v18 = vsel %vm1602_vm0, %v2014_v11, %v2012_v16 }
  0x34   :  { %v2025_v19 = vld [vmem:[#allocation0 + $0x601] ss:$8 sm:$0xf0]   ;;  %288 = vst [vmem:[#allocation0 + $0x838] sm:$0x3] %v2770_v17  ;;  %2017 = vrot.lane.b32.xlu1 %v2016_v18, %s3112_s10 }
  0x35   :  { %v2771_v20 = vld [vmem:[%s4550_s0 + $0x20c] sm:$0x3]  ;;  %v2772_v21 = vld [vmem:[%s4550_s0 + $0x20a] sm:$0x3]  ;;  %v2773_v22 = vld [vmem:[%s4550_s0 + $0x208] sm:$0x3] }
  0x36   :  { %293 = vst [vmem:[#allocation0 + $0x830] sm:$0x3] %v2771_v20  ;;  %v2774_v23 = vld [vmem:[%s4550_s0 + $0x206] sm:$0x3]  ;;  %298 = vst [vmem:[#allocation0 + $0x828] sm:$0x3] %v2772_v21 }
  0x37   :  { %v2023_v24 = vld [vmem:[#allocation0 + $0x601] ss:$8 sm:$0xf]   ;;  %303 = vst [vmem:[#allocation0 + $0x820] sm:$0x3] %v2773_v22 }
  0x38   :  { %308 = vst [vmem:[#allocation0 + $0x818] sm:$0x3] %v2774_v23  ;;  %v2775_v25 = vld [vmem:[%s4550_s0 + $0x204] sm:$0x3]  ;;  %v2027_v26 = vsel %vm1602_vm0, %v2025_v19, %v2023_v24  ;;  %v2776_v27 = vld [vmem:[%s4550_s0 + $0x202] sm:$0x3] }
  0x39   :  { %313 = vst [vmem:[#allocation0 + $0x810] sm:$0x3] %v2775_v25  ;;  %v2777_v28 = vld [vmem:[%s4550_s0 + $0x200] sm:$0x3]  ;;  %v2738_v29 = vld [vmem:[%s4550_s0 + $0x24e] sm:$0x3]  ;;  %2028 = vrot.lane.b32.xlu0 %v2027_v26, %s3112_s10 }
  0x3a   :  { %v2036_v30 = vld [vmem:[#allocation0 + $0x701] ss:$8 sm:$0xf0]   ;;  %318 = vst [vmem:[#allocation0 + $0x808] sm:$0x3] %v2776_v27 }
  0x3b   :  { %323 = vst [vmem:[#allocation0 + $0x800] sm:$0x3] %v2777_v28  ;;  %128 = vst [vmem:[#allocation0 + $0x938] sm:$0x3] %v2738_v29  ;;  %v2739_v31 = vld [vmem:[%s4550_s0 + $0x24c] sm:$0x3] }
  0x3c   :  { %133 = vst [vmem:[#allocation0 + $0x930] sm:$0x3] %v2739_v31  ;;  %v2740_v32 = vld [vmem:[%s4550_s0 + $0x24a] sm:$0x3]  ;;  %v2741_v33 = vld [vmem:[%s4550_s0 + $0x248] sm:$0x3] }
  0x3d   :  { %v2742_v34 = vld [vmem:[%s4550_s0 + $0x246] sm:$0x3]  ;;  %v2034_v35 = vld [vmem:[#allocation0 + $0x701] ss:$8 sm:$0xf]  }
  0x3e   :  { %138 = vst [vmem:[#allocation0 + $0x928] sm:$0x3] %v2740_v32  ;;  %143 = vst [vmem:[#allocation0 + $0x920] sm:$0x3] %v2741_v33  ;;  %v2743_v36 = vld [vmem:[%s4550_s0 + $0x244] sm:$0x3]  ;;  %v2038_v37 = vsel %vm1602_vm0, %v2036_v30, %v2034_v35 }
  0x3f   :  { %148 = vst [vmem:[#allocation0 + $0x918] sm:$0x3] %v2742_v34  ;;  %153 = vst [vmem:[#allocation0 + $0x910] sm:$0x3] %v2743_v36  ;;  %v2744_v38 = vld [vmem:[%s4550_s0 + $0x242] sm:$0x3]  ;;  %2039 = vrot.lane.b32.xlu1 %v2038_v37, %s3112_s10 }
  0x40   :  { %v2745_v39 = vld [vmem:[%s4550_s0 + $0x240] sm:$0x3]  ;;  %v3018_v40 = vld [vmem:[%s4550_s0 + $0x1e] sm:$0x3]  ;;  %158 = vst [vmem:[#allocation0 + $0x908] sm:$0x3] %v2744_v38 }
  0x41   :  { %163 = vst [vmem:[#allocation0 + $0x900] sm:$0x3] %v2745_v39  ;;  %1528 = vst [vmem:[#allocation0 + $0x78] sm:$0x3] %v3018_v40  ;;  %v3019_v41 = vld [vmem:[%s4550_s0 + $0x1c] sm:$0x3] }
  0x42   :  { %v3020_v42 = vld [vmem:[%s4550_s0 + $0x1a] sm:$0x3]  ;;  %v3021_v43 = vld [vmem:[%s4550_s0 + $0x18] sm:$0x3]  ;;  %1533 = vst [vmem:[#allocation0 + $0x70] sm:$0x3] %v3019_v41 }
  0x43   :  { %v2047_v44 = vld [vmem:[#allocation0 + $0x801] ss:$8 sm:$0xf0]   ;;  %1538 = vst [vmem:[#allocation0 + $0x68] sm:$0x3] %v3020_v42 }
  0x44   :  { %1543 = vst [vmem:[#allocation0 + $0x60] sm:$0x3] %v3021_v43  ;;  %v3022_v45 = vld [vmem:[%s4550_s0 + $0x16] sm:$0x3]  ;;  %v3023_v46 = vld [vmem:[%s4550_s0 + $0x14] sm:$0x3] }
  0x45   :  { %1548 = vst [vmem:[#allocation0 + $0x58] sm:$0x3] %v3022_v45  ;;  %v3024_v47 = vld [vmem:[%s4550_s0 + $0x12] sm:$0x3]  ;;  %v3025_v48 = vld [vmem:[%s4550_s0 + $0x10] sm:$0x3] }
  0x46   :  { %v2045_v49 = vld [vmem:[#allocation0 + $0x801] ss:$8 sm:$0xf]   ;;  %1553 = vst [vmem:[#allocation0 + $0x50] sm:$0x3] %v3023_v46 }
  0x47   :  { %1558 = vst [vmem:[#allocation0 + $0x48] sm:$0x3] %v3024_v47  ;;  %1563 = vst [vmem:[#allocation0 + $0x40] sm:$0x3] %v3025_v48  ;;  %v2986_v50 = vld [vmem:[%s4550_s0 + $0x5e] sm:$0x3]  ;;  %v2049_v51 = vsel %vm1602_vm0, %v2047_v44, %v2045_v49 }
  0x48   :  { %1368 = vst [vmem:[#allocation0 + $0x178] sm:$0x3] %v2986_v50  ;;  %v2987_v52 = vld [vmem:[%s4550_s0 + $0x5c] sm:$0x3]  ;;  %v2988_v53 = vld [vmem:[%s4550_s0 + $0x5a] sm:$0x3]  ;;  %2050 = vrot.lane.b32.xlu0 %v2049_v51, %s3112_s10 }
  0x49   :  { %v2989_v54 = vld [vmem:[%s4550_s0 + $0x58] sm:$0x3]  ;;  %1373 = vst [vmem:[#allocation0 + $0x170] sm:$0x3] %v2987_v52  ;;  %1378 = vst [vmem:[#allocation0 + $0x168] sm:$0x3] %v2988_v53 }
  0x4a   :  { %v2058_v55 = vld [vmem:[#allocation0 + $0x901] ss:$8 sm:$0xf0]   ;;  %1383 = vst [vmem:[#allocation0 + $0x160] sm:$0x3] %v2989_v54 }
  0x4b   :  { %v2990_v56 = vld [vmem:[%s4550_s0 + $0x56] sm:$0x3]  ;;  %v2991_v57 = vld [vmem:[%s4550_s0 + $0x54] sm:$0x3]  ;;  %v2992_v58 = vld [vmem:[%s4550_s0 + $0x52] sm:$0x3] }
  0x4c   :  { %1388 = vst [vmem:[#allocation0 + $0x158] sm:$0x3] %v2990_v56  ;;  %v2993_v59 = vld [vmem:[%s4550_s0 + $0x50] sm:$0x3]  ;;  %1393 = vst [vmem:[#allocation0 + $0x150] sm:$0x3] %v2991_v57 }
  0x4d   :  { %v2056_v60 = vld [vmem:[#allocation0 + $0x901] ss:$8 sm:$0xf]   ;;  %1398 = vst [vmem:[#allocation0 + $0x148] sm:$0x3] %v2992_v58 }
  0x4e   :  { %1403 = vst [vmem:[#allocation0 + $0x140] sm:$0x3] %v2993_v59  ;;  %v2954_v61 = vld [vmem:[%s4550_s0 + $0x9e] sm:$0x3]  ;;  %v2060_v62 = vsel %vm1602_vm0, %v2058_v55, %v2056_v60  ;;  %v2955_v0 = vld [vmem:[%s4550_s0 + $0x9c] sm:$0x3] }
  0x4f   :  { %v2069_v63 = vld [vmem:[#allocation0 + $0x41] ss:$8 sm:$0xf0]   ;;  %1208 = vst [vmem:[#allocation0 + $0x278] sm:$0x3] %v2954_v61  ;;  %2061 = vrot.lane.b32.xlu1 %v2060_v62, %s3112_s10 }
  0x50   :  { %1213 = vst [vmem:[#allocation0 + $0x270] sm:$0x3] %v2955_v0  ;;  %v2956_v1 = vld [vmem:[%s4550_s0 + $0x9a] sm:$0x3]  ;;  %v2957_v2 = vld [vmem:[%s4550_s0 + $0x98] sm:$0x3] }
  0x51   :  { %v2958_v3 = vld [vmem:[%s4550_s0 + $0x96] sm:$0x3]  ;;  %v2067_v4 = vld [vmem:[#allocation0 + $0x41] ss:$8 sm:$0xf]  }
  0x52   :  { %1218 = vst [vmem:[#allocation0 + $0x268] sm:$0x3] %v2956_v1  ;;  %1223 = vst [vmem:[#allocation0 + $0x260] sm:$0x3] %v2957_v2  ;;  %v2959_v5 = vld [vmem:[%s4550_s0 + $0x94] sm:$0x3]  ;;  %v2071_v6 = vsel %vm1602_vm0, %v2069_v63, %v2067_v4 }
  0x53   :  { %1228 = vst [vmem:[#allocation0 + $0x258] sm:$0x3] %v2958_v3  ;;  %1233 = vst [vmem:[#allocation0 + $0x250] sm:$0x3] %v2959_v5  ;;  %v2960_v7 = vld [vmem:[%s4550_s0 + $0x92] sm:$0x3]  ;;  %2072 = vrot.lane.b32.xlu0 %v2071_v6, %s3112_s10 }
  0x54   :  { %v2961_v8 = vld [vmem:[%s4550_s0 + $0x90] sm:$0x3]  ;;  %v2922_v9 = vld [vmem:[%s4550_s0 + $0xde] sm:$0x3]  ;;  %1238 = vst [vmem:[#allocation0 + $0x248] sm:$0x3] %v2960_v7 }
  0x55   :  { %v2080_v10 = vld [vmem:[#allocation0 + $0x141] ss:$8 sm:$0xf0]   ;;  %1243 = vst [vmem:[#allocation0 + $0x240] sm:$0x3] %v2961_v8 }
  0x56   :  { %1048 = vst [vmem:[#allocation0 + $0x378] sm:$0x3] %v2922_v9  ;;  %v2923_v11 = vld [vmem:[%s4550_s0 + $0xdc] sm:$0x3]  ;;  %v2924_v12 = vld [vmem:[%s4550_s0 + $0xda] sm:$0x3] }
  0x57   :  { %1053 = vst [vmem:[#allocation0 + $0x370] sm:$0x3] %v2923_v11  ;;  %v2925_v13 = vld [vmem:[%s4550_s0 + $0xd8] sm:$0x3]  ;;  %v2926_v14 = vld [vmem:[%s4550_s0 + $0xd6] sm:$0x3] }
  0x58   :  { %v2078_v15 = vld [vmem:[#allocation0 + $0x141] ss:$8 sm:$0xf]   ;;  %1058 = vst [vmem:[#allocation0 + $0x368] sm:$0x3] %v2924_v12 }
  0x59   :  { %1063 = vst [vmem:[#allocation0 + $0x360] sm:$0x3] %v2925_v13  ;;  %1068 = vst [vmem:[#allocation0 + $0x358] sm:$0x3] %v2926_v14  ;;  %v2927_v16 = vld [vmem:[%s4550_s0 + $0xd4] sm:$0x3]  ;;  %v2082_v17 = vsel %vm1602_vm0, %v2080_v10, %v2078_v15 }
  0x5a   :  { %1073 = vst [vmem:[#allocation0 + $0x350] sm:$0x3] %v2927_v16  ;;  %v2928_v18 = vld [vmem:[%s4550_s0 + $0xd2] sm:$0x3]  ;;  %v2929_v19 = vld [vmem:[%s4550_s0 + $0xd0] sm:$0x3]  ;;  %2083 = vrot.lane.b32.xlu1 %v2082_v17, %s3112_s10 }
  0x5b   :  { %v2890_v20 = vld [vmem:[%s4550_s0 + $0x11e] sm:$0x3]  ;;  %1078 = vst [vmem:[#allocation0 + $0x348] sm:$0x3] %v2928_v18  ;;  %1083 = vst [vmem:[#allocation0 + $0x340] sm:$0x3] %v2929_v19 }
  0x5c   :  { %888 = vst [vmem:[#allocation0 + $0x478] sm:$0x3] %v2890_v20  ;;  %v2891_v21 = vld [vmem:[%s4550_s0 + $0x11c] sm:$0x3]  ;;  %v2892_v22 = vld [vmem:[%s4550_s0 + $0x11a] sm:$0x3] }
  0x5d   :  { %v2893_v23 = vld [vmem:[%s4550_s0 + $0x118] sm:$0x3]  ;;  %893 = vst [vmem:[#allocation0 + $0x470] sm:$0x3] %v2891_v21  ;;  %898 = vst [vmem:[#allocation0 + $0x468] sm:$0x3] %v2892_v22 }
  0x5e   :  { %v2091_v24 = vld [vmem:[#allocation0 + $0x241] ss:$8 sm:$0xf0]   ;;  %903 = vst [vmem:[#allocation0 + $0x460] sm:$0x3] %v2893_v23 }
  0x5f   :  { %v2894_v25 = vld [vmem:[%s4550_s0 + $0x116] sm:$0x3]  ;;  %v2895_v26 = vld [vmem:[%s4550_s0 + $0x114] sm:$0x3]  ;;  %v2896_v27 = vld [vmem:[%s4550_s0 + $0x112] sm:$0x3] }
  0x60   :  { %908 = vst [vmem:[#allocation0 + $0x458] sm:$0x3] %v2894_v25  ;;  %v2897_v28 = vld [vmem:[%s4550_s0 + $0x110] sm:$0x3]  ;;  %913 = vst [vmem:[#allocation0 + $0x450] sm:$0x3] %v2895_v26 }
  0x61   :  { %v2089_v29 = vld [vmem:[#allocation0 + $0x241] ss:$8 sm:$0xf]   ;;  %918 = vst [vmem:[#allocation0 + $0x448] sm:$0x3] %v2896_v27 }
  0x62   :  { %923 = vst [vmem:[#allocation0 + $0x440] sm:$0x3] %v2897_v28  ;;  %v2858_v30 = vld [vmem:[%s4550_s0 + $0x15e] sm:$0x3]  ;;  %v2093_v31 = vsel %vm1602_vm0, %v2091_v24, %v2089_v29  ;;  %v2859_v32 = vld [vmem:[%s4550_s0 + $0x15c] sm:$0x3] }
  0x63   :  { %728 = vst [vmem:[#allocation0 + $0x578] sm:$0x3] %v2858_v30  ;;  %v2860_v33 = vld [vmem:[%s4550_s0 + $0x15a] sm:$0x3]  ;;  %v2861_v34 = vld [vmem:[%s4550_s0 + $0x158] sm:$0x3]  ;;  %2094 = vrot.lane.b32.xlu0 %v2093_v31, %s3112_s10 }
  0x64   :  { %v2102_v35 = vld [vmem:[#allocation0 + $0x341] ss:$8 sm:$0xf0]   ;;  %733 = vst [vmem:[#allocation0 + $0x570] sm:$0x3] %v2859_v32 }
  0x65   :  { %738 = vst [vmem:[#allocation0 + $0x568] sm:$0x3] %v2860_v33  ;;  %743 = vst [vmem:[#allocation0 + $0x560] sm:$0x3] %v2861_v34  ;;  %v2862_v36 = vld [vmem:[%s4550_s0 + $0x156] sm:$0x3] }
  0x66   :  { %748 = vst [vmem:[#allocation0 + $0x558] sm:$0x3] %v2862_v36  ;;  %v2863_v37 = vld [vmem:[%s4550_s0 + $0x154] sm:$0x3]  ;;  %v2864_v38 = vld [vmem:[%s4550_s0 + $0x152] sm:$0x3] }
  0x67   :  { %v2865_v39 = vld [vmem:[%s4550_s0 + $0x150] sm:$0x3]  ;;  %753 = vst [vmem:[#allocation0 + $0x550] sm:$0x3] %v2863_v37  ;;  %758 = vst [vmem:[#allocation0 + $0x548] sm:$0x3] %v2864_v38 }
  0x68   :  { %v2100_v40 = vld [vmem:[#allocation0 + $0x341] ss:$8 sm:$0xf]   ;;  %763 = vst [vmem:[#allocation0 + $0x540] sm:$0x3] %v2865_v39 }
  0x69   :  { %v2826_v41 = vld [vmem:[%s4550_s0 + $0x19e] sm:$0x3]  ;;  %v2104_v42 = vsel %vm1602_vm0, %v2102_v35, %v2100_v40  ;;  %v2113_v43 = vld [vmem:[#allocation0 + $0x441] ss:$8 sm:$0xf0]  }
  0x6a   :  { %568 = vst [vmem:[#allocation0 + $0x678] sm:$0x3] %v2826_v41  ;;  %v2827_v44 = vld [vmem:[%s4550_s0 + $0x19c] sm:$0x3]  ;;  %2105 = vrot.lane.b32.xlu1 %v2104_v42, %s3112_s10  ;;  %v2828_v45 = vld [vmem:[%s4550_s0 + $0x19a] sm:$0x3] }
  0x6b   :  { %573 = vst [vmem:[#allocation0 + $0x670] sm:$0x3] %v2827_v44  ;;  %v2829_v46 = vld [vmem:[%s4550_s0 + $0x198] sm:$0x3]  ;;  %v2830_v47 = vld [vmem:[%s4550_s0 + $0x196] sm:$0x3] }
  0x6c   :  { %v2111_v48 = vld [vmem:[#allocation0 + $0x441] ss:$8 sm:$0xf]   ;;  %578 = vst [vmem:[#allocation0 + $0x668] sm:$0x3] %v2828_v45 }
  0x6d   :  { %583 = vst [vmem:[#allocation0 + $0x660] sm:$0x3] %v2829_v46  ;;  %588 = vst [vmem:[#allocation0 + $0x658] sm:$0x3] %v2830_v47  ;;  %v2831_v49 = vld [vmem:[%s4550_s0 + $0x194] sm:$0x3]  ;;  %v2115_v50 = vsel %vm1602_vm0, %v2113_v43, %v2111_v48 }
  0x6e   :  { %593 = vst [vmem:[#allocation0 + $0x650] sm:$0x3] %v2831_v49  ;;  %v2832_v51 = vld [vmem:[%s4550_s0 + $0x192] sm:$0x3]  ;;  %v2833_v52 = vld [vmem:[%s4550_s0 + $0x190] sm:$0x3]  ;;  %2116 = vrot.lane.b32.xlu0 %v2115_v50, %s3112_s10 }
  0x6f   :  { %v2794_v53 = vld [vmem:[%s4550_s0 + $0x1de] sm:$0x3]  ;;  %v2124_v54 = vld [vmem:[#allocation0 + $0x541] ss:$8 sm:$0xf0]  }
  0x70   :  { %598 = vst [vmem:[#allocation0 + $0x648] sm:$0x3] %v2832_v51  ;;  %603 = vst [vmem:[#allocation0 + $0x640] sm:$0x3] %v2833_v52  ;;  %v2795_v55 = vld [vmem:[%s4550_s0 + $0x1dc] sm:$0x3] }
  0x71   :  { %408 = vst [vmem:[#allocation0 + $0x778] sm:$0x3] %v2794_v53  ;;  %413 = vst [vmem:[#allocation0 + $0x770] sm:$0x3] %v2795_v55  ;;  %v2796_v56 = vld [vmem:[%s4550_s0 + $0x1da] sm:$0x3] }
  0x72   :  { %v2797_v57 = vld [vmem:[%s4550_s0 + $0x1d8] sm:$0x3]  ;;  %v2798_v58 = vld [vmem:[%s4550_s0 + $0x1d6] sm:$0x3]  ;;  %418 = vst [vmem:[#allocation0 + $0x768] sm:$0x3] %v2796_v56 }
  0x73   :  { %v2122_v59 = vld [vmem:[#allocation0 + $0x541] ss:$8 sm:$0xf]   ;;  %423 = vst [vmem:[#allocation0 + $0x760] sm:$0x3] %v2797_v57 }
  0x74   :  { %428 = vst [vmem:[#allocation0 + $0x758] sm:$0x3] %v2798_v58  ;;  %v2799_v60 = vld [vmem:[%s4550_s0 + $0x1d4] sm:$0x3]  ;;  %v2126_v61 = vsel %vm1602_vm0, %v2124_v54, %v2122_v59  ;;  %v2800_v62 = vld [vmem:[%s4550_s0 + $0x1d2] sm:$0x3] }
  0x75   :  { %433 = vst [vmem:[#allocation0 + $0x750] sm:$0x3] %v2799_v60  ;;  %v2801_v63 = vld [vmem:[%s4550_s0 + $0x1d0] sm:$0x3]  ;;  %v2762_v0 = vld [vmem:[%s4550_s0 + $0x21e] sm:$0x3]  ;;  %2127 = vrot.lane.b32.xlu1 %v2126_v61, %s3112_s10 }
  0x76   :  { %438 = vst [vmem:[#allocation0 + $0x748] sm:$0x3] %v2800_v62  ;;  %443 = vst [vmem:[#allocation0 + $0x740] sm:$0x3] %v2801_v63  ;;  %v2763_v1 = vld [vmem:[%s4550_s0 + $0x21c] sm:$0x3] }
  0x77   :  { %248 = vst [vmem:[#allocation0 + $0x878] sm:$0x3] %v2762_v0  ;;  %v2764_v2 = vld [vmem:[%s4550_s0 + $0x21a] sm:$0x3]  ;;  %v2765_v3 = vld [vmem:[%s4550_s0 + $0x218] sm:$0x3] }
  0x78   :  { %v2135_v4 = vld [vmem:[#allocation0 + $0x641] ss:$8 sm:$0xf0]   ;;  %253 = vst [vmem:[#allocation0 + $0x870] sm:$0x3] %v2763_v1 }
  0x79   :  { %258 = vst [vmem:[#allocation0 + $0x868] sm:$0x3] %v2764_v2  ;;  %263 = vst [vmem:[#allocation0 + $0x860] sm:$0x3] %v2765_v3  ;;  %v2766_v5 = vld [vmem:[%s4550_s0 + $0x216] sm:$0x3] }
  0x7a   :  { %268 = vst [vmem:[#allocation0 + $0x858] sm:$0x3] %v2766_v5  ;;  %v2767_v6 = vld [vmem:[%s4550_s0 + $0x214] sm:$0x3]  ;;  %v2768_v7 = vld [vmem:[%s4550_s0 + $0x212] sm:$0x3] }
  0x7b   :  { %v2769_v8 = vld [vmem:[%s4550_s0 + $0x210] sm:$0x3]  ;;  %273 = vst [vmem:[#allocation0 + $0x850] sm:$0x3] %v2767_v6  ;;  %278 = vst [vmem:[#allocation0 + $0x848] sm:$0x3] %v2768_v7 }
  0x7c   :  { %v2133_v9 = vld [vmem:[#allocation0 + $0x641] ss:$8 sm:$0xf]   ;;  %283 = vst [vmem:[#allocation0 + $0x840] sm:$0x3] %v2769_v8 }
  0x7d   :  { %v2730_v10 = vld [vmem:[%s4550_s0 + $0x25e] sm:$0x3]  ;;  %v2137_v11 = vsel %vm1602_vm0, %v2135_v4, %v2133_v9  ;;  %v2731_v12 = vld [vmem:[%s4550_s0 + $0x25c] sm:$0x3]  ;;  %v2732_v13 = vld [vmem:[%s4550_s0 + $0x25a] sm:$0x3] }
  0x7e   :  { %88 = vst [vmem:[#allocation0 + $0x978] sm:$0x3] %v2730_v10  ;;  %v2733_v14 = vld [vmem:[%s4550_s0 + $0x258] sm:$0x3]  ;;  %2138 = vrot.lane.b32.xlu0 %v2137_v11, %s3112_s10  ;;  %93 = vst [vmem:[#allocation0 + $0x970] sm:$0x3] %v2731_v12 }
  0x7f   :  { %v2146_v15 = vld [vmem:[#allocation0 + $0x741] ss:$8 sm:$0xf0]   ;;  %98 = vst [vmem:[#allocation0 + $0x968] sm:$0x3] %v2732_v13 }
  0x80   :  { %103 = vst [vmem:[#allocation0 + $0x960] sm:$0x3] %v2733_v14  ;;  %v2734_v16 = vld [vmem:[%s4550_s0 + $0x256] sm:$0x3]  ;;  %v2735_v17 = vld [vmem:[%s4550_s0 + $0x254] sm:$0x3] }
  0x81   :  { %108 = vst [vmem:[#allocation0 + $0x958] sm:$0x3] %v2734_v16  ;;  %v2736_v18 = vld [vmem:[%s4550_s0 + $0x252] sm:$0x3]  ;;  %v2737_v19 = vld [vmem:[%s4550_s0 + $0x250] sm:$0x3] }
  0x82   :  { %v2144_v20 = vld [vmem:[#allocation0 + $0x741] ss:$8 sm:$0xf]   ;;  %113 = vst [vmem:[#allocation0 + $0x950] sm:$0x3] %v2735_v17 }
  0x83   :  { %118 = vst [vmem:[#allocation0 + $0x948] sm:$0x3] %v2736_v18  ;;  %123 = vst [vmem:[#allocation0 + $0x940] sm:$0x3] %v2737_v19  ;;  %v3010_v21 = vld [vmem:[%s4550_s0 + $0x2e] sm:$0x3]  ;;  %v2148_v22 = vsel %vm1602_vm0, %v2146_v15, %v2144_v20 }
  0x84   :  { %v2157_v23 = vld [vmem:[#allocation0 + $0x841] ss:$8 sm:$0xf0]   ;;  %1488 = vst [vmem:[#allocation0 + $0xb8] sm:$0x3] %v3010_v21  ;;  %2149 = vrot.lane.b32.xlu1 %v2148_v22, %s3112_s10 }
  0x85   :  { %v3011_v24 = vld [vmem:[%s4550_s0 + $0x2c] sm:$0x3]  ;;  %v3012_v25 = vld [vmem:[%s4550_s0 + $0x2a] sm:$0x3]  ;;  %v3013_v26 = vld [vmem:[%s4550_s0 + $0x28] sm:$0x3] }
  0x86   :  { %1493 = vst [vmem:[#allocation0 + $0xb0] sm:$0x3] %v3011_v24  ;;  %v3014_v27 = vld [vmem:[%s4550_s0 + $0x26] sm:$0x3]  ;;  %1498 = vst [vmem:[#allocation0 + $0xa8] sm:$0x3] %v3012_v25 }
  0x87   :  { %v2155_v28 = vld [vmem:[#allocation0 + $0x841] ss:$8 sm:$0xf]   ;;  %1503 = vst [vmem:[#allocation0 + $0xa0] sm:$0x3] %v3013_v26 }
  0x88   :  { %1508 = vst [vmem:[#allocation0 + $0x98] sm:$0x3] %v3014_v27  ;;  %v3015_v29 = vld [vmem:[%s4550_s0 + $0x24] sm:$0x3]  ;;  %v2159_v30 = vsel %vm1602_vm0, %v2157_v23, %v2155_v28  ;;  %v3016_v31 = vld [vmem:[%s4550_s0 + $0x22] sm:$0x3] }
  0x89   :  { %1513 = vst [vmem:[#allocation0 + $0x90] sm:$0x3] %v3015_v29  ;;  %v3017_v32 = vld [vmem:[%s4550_s0 + $0x20] sm:$0x3]  ;;  %v2978_v33 = vld [vmem:[%s4550_s0 + $0x6e] sm:$0x3]  ;;  %2160 = vrot.lane.b32.xlu0 %v2159_v30, %s3112_s10 }
  0x8a   :  { %v2168_v34 = vld [vmem:[#allocation0 + $0x941] ss:$8 sm:$0xf0]   ;;  %1518 = vst [vmem:[#allocation0 + $0x88] sm:$0x3] %v3016_v31 }
  0x8b   :  { %1523 = vst [vmem:[#allocation0 + $0x80] sm:$0x3] %v3017_v32  ;;  %1328 = vst [vmem:[#allocation0 + $0x1b8] sm:$0x3] %v2978_v33  ;;  %v2979_v35 = vld [vmem:[%s4550_s0 + $0x6c] sm:$0x3] }
  0x8c   :  { %1333 = vst [vmem:[#allocation0 + $0x1b0] sm:$0x3] %v2979_v35  ;;  %v2980_v36 = vld [vmem:[%s4550_s0 + $0x6a] sm:$0x3]  ;;  %v2981_v37 = vld [vmem:[%s4550_s0 + $0x68] sm:$0x3] }
  0x8d   :  { %v2982_v38 = vld [vmem:[%s4550_s0 + $0x66] sm:$0x3]  ;;  %v2166_v39 = vld [vmem:[#allocation0 + $0x941] ss:$8 sm:$0xf]  }
  0x8e   :  { %1338 = vst [vmem:[#allocation0 + $0x1a8] sm:$0x3] %v2980_v36  ;;  %1343 = vst [vmem:[#allocation0 + $0x1a0] sm:$0x3] %v2981_v37  ;;  %v2983_v40 = vld [vmem:[%s4550_s0 + $0x64] sm:$0x3]  ;;  %v2170_v41 = vsel %vm1602_vm0, %v2168_v34, %v2166_v39 }
  0x8f   :  { %1348 = vst [vmem:[#allocation0 + $0x198] sm:$0x3] %v2982_v38  ;;  %1353 = vst [vmem:[#allocation0 + $0x190] sm:$0x3] %v2983_v40  ;;  %v2984_v42 = vld [vmem:[%s4550_s0 + $0x62] sm:$0x3]  ;;  %2171 = vrot.lane.b32.xlu1 %v2170_v41, %s3112_s10 }
  0x90   :  { %v2985_v43 = vld [vmem:[%s4550_s0 + $0x60] sm:$0x3]  ;;  %v2946_v44 = vld [vmem:[%s4550_s0 + $0xae] sm:$0x3]  ;;  %1358 = vst [vmem:[#allocation0 + $0x188] sm:$0x3] %v2984_v42 }
  0x91   :  { %1363 = vst [vmem:[#allocation0 + $0x180] sm:$0x3] %v2985_v43  ;;  %1168 = vst [vmem:[#allocation0 + $0x2b8] sm:$0x3] %v2946_v44  ;;  %v2947_v45 = vld [vmem:[%s4550_s0 + $0xac] sm:$0x3] }
  0x92   :  { %v2948_v46 = vld [vmem:[%s4550_s0 + $0xaa] sm:$0x3]  ;;  %v2949_v47 = vld [vmem:[%s4550_s0 + $0xa8] sm:$0x3]  ;;  %1173 = vst [vmem:[#allocation0 + $0x2b0] sm:$0x3] %v2947_v45 }
  0x93   :  { %v2179_v48 = vld [vmem:[#allocation0 + $0x81] ss:$8 sm:$0xf0]   ;;  %1178 = vst [vmem:[#allocation0 + $0x2a8] sm:$0x3] %v2948_v46 }
  0x94   :  { %1183 = vst [vmem:[#allocation0 + $0x2a0] sm:$0x3] %v2949_v47  ;;  %v2950_v49 = vld [vmem:[%s4550_s0 + $0xa6] sm:$0x3]  ;;  %v2951_v50 = vld [vmem:[%s4550_s0 + $0xa4] sm:$0x3] }
  0x95   :  { %1188 = vst [vmem:[#allocation0 + $0x298] sm:$0x3] %v2950_v49  ;;  %v2952_v51 = vld [vmem:[%s4550_s0 + $0xa2] sm:$0x3]  ;;  %v2953_v52 = vld [vmem:[%s4550_s0 + $0xa0] sm:$0x3] }
  0x96   :  { %v2177_v53 = vld [vmem:[#allocation0 + $0x81] ss:$8 sm:$0xf]   ;;  %1193 = vst [vmem:[#allocation0 + $0x290] sm:$0x3] %v2951_v50 }
  0x97   :  { %1198 = vst [vmem:[#allocation0 + $0x288] sm:$0x3] %v2952_v51  ;;  %1203 = vst [vmem:[#allocation0 + $0x280] sm:$0x3] %v2953_v52  ;;  %v2914_v54 = vld [vmem:[%s4550_s0 + $0xee] sm:$0x3]  ;;  %v2181_v55 = vsel %vm1602_vm0, %v2179_v48, %v2177_v53 }
  0x98   :  { %1008 = vst [vmem:[#allocation0 + $0x3b8] sm:$0x3] %v2914_v54  ;;  %v2915_v56 = vld [vmem:[%s4550_s0 + $0xec] sm:$0x3]  ;;  %v2916_v57 = vld [vmem:[%s4550_s0 + $0xea] sm:$0x3]  ;;  %2182 = vrot.lane.b32.xlu0 %v2181_v55, %s3112_s10 }
  0x99   :  { %v2917_v58 = vld [vmem:[%s4550_s0 + $0xe8] sm:$0x3]  ;;  %1013 = vst [vmem:[#allocation0 + $0x3b0] sm:$0x3] %v2915_v56  ;;  %1018 = vst [vmem:[#allocation0 + $0x3a8] sm:$0x3] %v2916_v57 }
  0x9a   :  { %v2190_v59 = vld [vmem:[#allocation0 + $0x181] ss:$8 sm:$0xf0]   ;;  %1023 = vst [vmem:[#allocation0 + $0x3a0] sm:$0x3] %v2917_v58 }
  0x9b   :  { %v2918_v60 = vld [vmem:[%s4550_s0 + $0xe6] sm:$0x3]  ;;  %v2919_v61 = vld [vmem:[%s4550_s0 + $0xe4] sm:$0x3]  ;;  %v2920_v62 = vld [vmem:[%s4550_s0 + $0xe2] sm:$0x3] }
  0x9c   :  { %1028 = vst [vmem:[#allocation0 + $0x398] sm:$0x3] %v2918_v60  ;;  %v2921_v63 = vld [vmem:[%s4550_s0 + $0xe0] sm:$0x3]  ;;  %1033 = vst [vmem:[#allocation0 + $0x390] sm:$0x3] %v2919_v61 }
  0x9d   :  { %v2188_v0 = vld [vmem:[#allocation0 + $0x181] ss:$8 sm:$0xf]   ;;  %1038 = vst [vmem:[#allocation0 + $0x388] sm:$0x3] %v2920_v62 }
  0x9e   :  { %1043 = vst [vmem:[#allocation0 + $0x380] sm:$0x3] %v2921_v63  ;;  %v2882_v1 = vld [vmem:[%s4550_s0 + $0x12e] sm:$0x3]  ;;  %v2192_v2 = vsel %vm1602_vm0, %v2190_v59, %v2188_v0  ;;  %v2883_v4 = vld [vmem:[%s4550_s0 + $0x12c] sm:$0x3] }
  0x9f   :  { %v2201_v3 = vld [vmem:[#allocation0 + $0x281] ss:$8 sm:$0xf0]   ;;  %848 = vst [vmem:[#allocation0 + $0x4b8] sm:$0x3] %v2882_v1  ;;  %2193 = vrot.lane.b32.xlu1 %v2192_v2, %s3112_s10 }
  0xa0   :  { %853 = vst [vmem:[#allocation0 + $0x4b0] sm:$0x3] %v2883_v4  ;;  %v2884_v5 = vld [vmem:[%s4550_s0 + $0x12a] sm:$0x3]  ;;  %v2885_v6 = vld [vmem:[%s4550_s0 + $0x128] sm:$0x3] }
  0xa1   :  { %v2886_v7 = vld [vmem:[%s4550_s0 + $0x126] sm:$0x3]  ;;  %v2199_v8 = vld [vmem:[#allocation0 + $0x281] ss:$8 sm:$0xf]  }
  0xa2   :  { %858 = vst [vmem:[#allocation0 + $0x4a8] sm:$0x3] %v2884_v5  ;;  %863 = vst [vmem:[#allocation0 + $0x4a0] sm:$0x3] %v2885_v6  ;;  %v2887_v9 = vld [vmem:[%s4550_s0 + $0x124] sm:$0x3]  ;;  %v2203_v10 = vsel %vm1602_vm0, %v2201_v3, %v2199_v8 }
  0xa3   :  { %868 = vst [vmem:[#allocation0 + $0x498] sm:$0x3] %v2886_v7  ;;  %873 = vst [vmem:[#allocation0 + $0x490] sm:$0x3] %v2887_v9  ;;  %v2888_v11 = vld [vmem:[%s4550_s0 + $0x122] sm:$0x3]  ;;  %2204 = vrot.lane.b32.xlu0 %v2203_v10, %s3112_s10 }
  0xa4   :  { %v2889_v12 = vld [vmem:[%s4550_s0 + $0x120] sm:$0x3]  ;;  %v2850_v13 = vld [vmem:[%s4550_s0 + $0x16e] sm:$0x3]  ;;  %878 = vst [vmem:[#allocation0 + $0x488] sm:$0x3] %v2888_v11 }
  0xa5   :  { %v2212_v14 = vld [vmem:[#allocation0 + $0x381] ss:$8 sm:$0xf0]   ;;  %883 = vst [vmem:[#allocation0 + $0x480] sm:$0x3] %v2889_v12 }
  0xa6   :  { %688 = vst [vmem:[#allocation0 + $0x5b8] sm:$0x3] %v2850_v13  ;;  %v2851_v15 = vld [vmem:[%s4550_s0 + $0x16c] sm:$0x3]  ;;  %v2852_v16 = vld [vmem:[%s4550_s0 + $0x16a] sm:$0x3] }
  0xa7   :  { %693 = vst [vmem:[#allocation0 + $0x5b0] sm:$0x3] %v2851_v15  ;;  %v2853_v17 = vld [vmem:[%s4550_s0 + $0x168] sm:$0x3]  ;;  %v2854_v18 = vld [vmem:[%s4550_s0 + $0x166] sm:$0x3] }
  0xa8   :  { %v2210_v19 = vld [vmem:[#allocation0 + $0x381] ss:$8 sm:$0xf]   ;;  %698 = vst [vmem:[#allocation0 + $0x5a8] sm:$0x3] %v2852_v16 }
  0xa9   :  { %703 = vst [vmem:[#allocation0 + $0x5a0] sm:$0x3] %v2853_v17  ;;  %708 = vst [vmem:[#allocation0 + $0x598] sm:$0x3] %v2854_v18  ;;  %v2855_v20 = vld [vmem:[%s4550_s0 + $0x164] sm:$0x3]  ;;  %v2214_v21 = vsel %vm1602_vm0, %v2212_v14, %v2210_v19 }
  0xaa   :  { %713 = vst [vmem:[#allocation0 + $0x590] sm:$0x3] %v2855_v20  ;;  %v2856_v22 = vld [vmem:[%s4550_s0 + $0x162] sm:$0x3]  ;;  %v2857_v23 = vld [vmem:[%s4550_s0 + $0x160] sm:$0x3]  ;;  %2215 = vrot.lane.b32.xlu1 %v2214_v21, %s3112_s10 }
  0xab   :  { %v2818_v24 = vld [vmem:[%s4550_s0 + $0x1ae] sm:$0x3]  ;;  %718 = vst [vmem:[#allocation0 + $0x588] sm:$0x3] %v2856_v22  ;;  %723 = vst [vmem:[#allocation0 + $0x580] sm:$0x3] %v2857_v23 }
  0xac   :  { %528 = vst [vmem:[#allocation0 + $0x6b8] sm:$0x3] %v2818_v24  ;;  %v2819_v25 = vld [vmem:[%s4550_s0 + $0x1ac] sm:$0x3]  ;;  %v2820_v26 = vld [vmem:[%s4550_s0 + $0x1aa] sm:$0x3] }
  0xad   :  { %v2821_v27 = vld [vmem:[%s4550_s0 + $0x1a8] sm:$0x3]  ;;  %533 = vst [vmem:[#allocation0 + $0x6b0] sm:$0x3] %v2819_v25  ;;  %538 = vst [vmem:[#allocation0 + $0x6a8] sm:$0x3] %v2820_v26 }
  0xae   :  { %v2223_v28 = vld [vmem:[#allocation0 + $0x481] ss:$8 sm:$0xf0]   ;;  %543 = vst [vmem:[#allocation0 + $0x6a0] sm:$0x3] %v2821_v27 }
  0xaf   :  { %v2822_v29 = vld [vmem:[%s4550_s0 + $0x1a6] sm:$0x3]  ;;  %v2823_v30 = vld [vmem:[%s4550_s0 + $0x1a4] sm:$0x3]  ;;  %v2824_v31 = vld [vmem:[%s4550_s0 + $0x1a2] sm:$0x3] }
  0xb0   :  { %548 = vst [vmem:[#allocation0 + $0x698] sm:$0x3] %v2822_v29  ;;  %v2825_v32 = vld [vmem:[%s4550_s0 + $0x1a0] sm:$0x3]  ;;  %553 = vst [vmem:[#allocation0 + $0x690] sm:$0x3] %v2823_v30  ;;  %v3956_v29 = vpop.permute.xlu0 %1963  }
  0xb1   :  { %v2221_v33 = vld [vmem:[#allocation0 + $0x481] ss:$8 sm:$0xf]   ;;  %558 = vst [vmem:[#allocation0 + $0x688] sm:$0x3] %v2824_v31 }
  0xb2   :  { %563 = vst [vmem:[#allocation0 + $0x680] sm:$0x3] %v2825_v32  ;;  %v2786_v34 = vld [vmem:[%s4550_s0 + $0x1ee] sm:$0x3]  ;;  %v2225_v35 = vsel %vm1602_vm0, %v2223_v28, %v2221_v33  ;;  %v2787_v36 = vld [vmem:[%s4550_s0 + $0x1ec] sm:$0x3] }
  0xb3   :  { %368 = vst [vmem:[#allocation0 + $0x7b8] sm:$0x3] %v2786_v34  ;;  %v2788_v37 = vld [vmem:[%s4550_s0 + $0x1ea] sm:$0x3]  ;;  %v2789_v38 = vld [vmem:[%s4550_s0 + $0x1e8] sm:$0x3]  ;;  %2226 = vrot.lane.b32.xlu0 %v2225_v35, %s3112_s10 }
  0xb4   :  { %v2234_v39 = vld [vmem:[#allocation0 + $0x581] ss:$8 sm:$0xf0]   ;;  %373 = vst [vmem:[#allocation0 + $0x7b0] sm:$0x3] %v2787_v36 }
  0xb5   :  { %378 = vst [vmem:[#allocation0 + $0x7a8] sm:$0x3] %v2788_v37  ;;  %383 = vst [vmem:[#allocation0 + $0x7a0] sm:$0x3] %v2789_v38  ;;  %v2790_v40 = vld [vmem:[%s4550_s0 + $0x1e6] sm:$0x3] }
  0xb6   :  { %388 = vst [vmem:[#allocation0 + $0x798] sm:$0x3] %v2790_v40  ;;  %v2791_v41 = vld [vmem:[%s4550_s0 + $0x1e4] sm:$0x3]  ;;  %v2792_v42 = vld [vmem:[%s4550_s0 + $0x1e2] sm:$0x3] }
  0xb7   :  { %v2793_v43 = vld [vmem:[%s4550_s0 + $0x1e0] sm:$0x3]  ;;  %393 = vst [vmem:[#allocation0 + $0x790] sm:$0x3] %v2791_v41  ;;  %398 = vst [vmem:[#allocation0 + $0x788] sm:$0x3] %v2792_v42 }
  0xb8   :  { %v2232_v44 = vld [vmem:[#allocation0 + $0x581] ss:$8 sm:$0xf]   ;;  %403 = vst [vmem:[#allocation0 + $0x780] sm:$0x3] %v2793_v43 }
  0xb9   :  { %v2754_v45 = vld [vmem:[%s4550_s0 + $0x22e] sm:$0x3]  ;;  %v2236_v46 = vsel %vm1602_vm0, %v2234_v39, %v2232_v44  ;;  %v2245_v47 = vld [vmem:[#allocation0 + $0x681] ss:$8 sm:$0xf0]   ;;  %v3981_v39 = vpop.permute.xlu1 %1984  }
  0xba   :  { %208 = vst [vmem:[#allocation0 + $0x8b8] sm:$0x3] %v2754_v45  ;;  %v2755_v48 = vld [vmem:[%s4550_s0 + $0x22c] sm:$0x3]  ;;  %2237 = vrot.lane.b32.xlu1 %v2236_v46, %s3112_s10  ;;  %v2756_v49 = vld [vmem:[%s4550_s0 + $0x22a] sm:$0x3] }
  0xbb   :  { %213 = vst [vmem:[#allocation0 + $0x8b0] sm:$0x3] %v2755_v48  ;;  %v2757_v50 = vld [vmem:[%s4550_s0 + $0x228] sm:$0x3]  ;;  %v2758_v51 = vld [vmem:[%s4550_s0 + $0x226] sm:$0x3] }
  0xbc   :  { %v2243_v52 = vld [vmem:[#allocation0 + $0x681] ss:$8 sm:$0xf]   ;;  %218 = vst [vmem:[#allocation0 + $0x8a8] sm:$0x3] %v2756_v49 }
  0xbd   :  { %223 = vst [vmem:[#allocation0 + $0x8a0] sm:$0x3] %v2757_v50  ;;  %228 = vst [vmem:[#allocation0 + $0x898] sm:$0x3] %v2758_v51  ;;  %v2759_v53 = vld [vmem:[%s4550_s0 + $0x224] sm:$0x3]  ;;  %v2247_v54 = vsel %vm1602_vm0, %v2245_v47, %v2243_v52  ;;  %v3999_v47 = vpop.permute.xlu0 %1973  }
  0xbe   :  { %233 = vst [vmem:[#allocation0 + $0x890] sm:$0x3] %v2759_v53  ;;  %v2760_v55 = vld [vmem:[%s4550_s0 + $0x222] sm:$0x3]  ;;  %v2761_v56 = vld [vmem:[%s4550_s0 + $0x220] sm:$0x3]  ;;  %2248 = vrot.lane.b32.xlu0 %v2247_v54, %s3112_s10 }
  0xbf   :  { %v2722_v57 = vld [vmem:[%s4550_s0 + $0x26e] sm:$0x3]  ;;  %v2256_v58 = vld [vmem:[#allocation0 + $0x781] ss:$8 sm:$0xf0]  }
  0xc0   :  { %238 = vst [vmem:[#allocation0 + $0x888] sm:$0x3] %v2760_v55  ;;  %243 = vst [vmem:[#allocation0 + $0x880] sm:$0x3] %v2761_v56  ;;  %v2723_v59 = vld [vmem:[%s4550_s0 + $0x26c] sm:$0x3] }
  0xc1   :  { %48 = vst [vmem:[#allocation0 + $0x9b8] sm:$0x3] %v2722_v57  ;;  %53 = vst [vmem:[#allocation0 + $0x9b0] sm:$0x3] %v2723_v59  ;;  %v2724_v60 = vld [vmem:[%s4550_s0 + $0x26a] sm:$0x3] }
  0xc2   :  { %v2725_v61 = vld [vmem:[%s4550_s0 + $0x268] sm:$0x3]  ;;  %v2726_v62 = vld [vmem:[%s4550_s0 + $0x266] sm:$0x3]  ;;  %58 = vst [vmem:[#allocation0 + $0x9a8] sm:$0x3] %v2724_v60  ;;  %v4033_v60 = vpop.permute.xlu1 %1995  }
  0xc3   :  { %v2254_v63 = vld [vmem:[#allocation0 + $0x781] ss:$8 sm:$0xf]   ;;  %63 = vst [vmem:[#allocation0 + $0x9a0] sm:$0x3] %v2725_v61 }
  0xc4   :  { %68 = vst [vmem:[#allocation0 + $0x998] sm:$0x3] %v2726_v62  ;;  %v2727_v0 = vld [vmem:[%s4550_s0 + $0x264] sm:$0x3]  ;;  %v2258_v1 = vsel %vm1602_vm0, %v2256_v58, %v2254_v63  ;;  %v2728_v2 = vld [vmem:[%s4550_s0 + $0x262] sm:$0x3] }
  0xc5   :  { %73 = vst [vmem:[#allocation0 + $0x990] sm:$0x3] %v2727_v0  ;;  %v2729_v3 = vld [vmem:[%s4550_s0 + $0x260] sm:$0x3]  ;;  %v3002_v4 = vld [vmem:[%s4550_s0 + $0x3e] sm:$0x3]  ;;  %2259 = vrot.lane.b32.xlu1 %v2258_v1, %s3112_s10 }
  0xc6   :  { %78 = vst [vmem:[#allocation0 + $0x988] sm:$0x3] %v2728_v2  ;;  %83 = vst [vmem:[#allocation0 + $0x980] sm:$0x3] %v2729_v3  ;;  %v3003_v5 = vld [vmem:[%s4550_s0 + $0x3c] sm:$0x3] }
  0xc7   :  { %1448 = vst [vmem:[#allocation0 + $0xf8] sm:$0x3] %v3002_v4  ;;  %v3004_v6 = vld [vmem:[%s4550_s0 + $0x3a] sm:$0x3]  ;;  %v3005_v7 = vld [vmem:[%s4550_s0 + $0x38] sm:$0x3] }
  0xc8   :  { %v2267_v8 = vld [vmem:[#allocation0 + $0x881] ss:$8 sm:$0xf0]   ;;  %1453 = vst [vmem:[#allocation0 + $0xf0] sm:$0x3] %v3003_v5 }
  0xc9   :  { %1458 = vst [vmem:[#allocation0 + $0xe8] sm:$0x3] %v3004_v6  ;;  %1463 = vst [vmem:[#allocation0 + $0xe0] sm:$0x3] %v3005_v7  ;;  %v3006_v9 = vld [vmem:[%s4550_s0 + $0x36] sm:$0x3] }
  0xca   :  { %1468 = vst [vmem:[#allocation0 + $0xd8] sm:$0x3] %v3006_v9  ;;  %v3007_v10 = vld [vmem:[%s4550_s0 + $0x34] sm:$0x3]  ;;  %v3008_v11 = vld [vmem:[%s4550_s0 + $0x32] sm:$0x3] }
  0xcb   :  { %v3009_v12 = vld [vmem:[%s4550_s0 + $0x30] sm:$0x3]  ;;  %1473 = vst [vmem:[#allocation0 + $0xd0] sm:$0x3] %v3007_v10  ;;  %1478 = vst [vmem:[#allocation0 + $0xc8] sm:$0x3] %v3008_v11  ;;  %v4064_v10 = vpop.permute.xlu0 %2006  }
  0xcc   :  { %v2265_v13 = vld [vmem:[#allocation0 + $0x881] ss:$8 sm:$0xf]   ;;  %1483 = vst [vmem:[#allocation0 + $0xc0] sm:$0x3] %v3009_v12 }
  0xcd   :  { %v2970_v14 = vld [vmem:[%s4550_s0 + $0x7e] sm:$0x3]  ;;  %v2269_v15 = vsel %vm1602_vm0, %v2267_v8, %v2265_v13  ;;  %v2971_v16 = vld [vmem:[%s4550_s0 + $0x7c] sm:$0x3]  ;;  %v2972_v17 = vld [vmem:[%s4550_s0 + $0x7a] sm:$0x3] }
  0xce   :  { %1288 = vst [vmem:[#allocation0 + $0x1f8] sm:$0x3] %v2970_v14  ;;  %v2973_v18 = vld [vmem:[%s4550_s0 + $0x78] sm:$0x3]  ;;  %2270 = vrot.lane.b32.xlu0 %v2269_v15, %s3112_s10  ;;  %1293 = vst [vmem:[#allocation0 + $0x1f0] sm:$0x3] %v2971_v16 }
  0xcf   :  { %v2278_v19 = vld [vmem:[#allocation0 + $0x981] ss:$8 sm:$0xf0]   ;;  %1298 = vst [vmem:[#allocation0 + $0x1e8] sm:$0x3] %v2972_v17 }
  0xd0   :  { %1303 = vst [vmem:[#allocation0 + $0x1e0] sm:$0x3] %v2973_v18  ;;  %v2974_v20 = vld [vmem:[%s4550_s0 + $0x76] sm:$0x3]  ;;  %v2975_v21 = vld [vmem:[%s4550_s0 + $0x74] sm:$0x3] }
  0xd1   :  { %1308 = vst [vmem:[#allocation0 + $0x1d8] sm:$0x3] %v2974_v20  ;;  %v2976_v22 = vld [vmem:[%s4550_s0 + $0x72] sm:$0x3]  ;;  %v2977_v23 = vld [vmem:[%s4550_s0 + $0x70] sm:$0x3] }
  0xd2   :  { %v2276_v24 = vld [vmem:[#allocation0 + $0x981] ss:$8 sm:$0xf]   ;;  %1313 = vst [vmem:[#allocation0 + $0x1d0] sm:$0x3] %v2975_v21 }
  0xd3   :  { %1318 = vst [vmem:[#allocation0 + $0x1c8] sm:$0x3] %v2976_v22  ;;  %1323 = vst [vmem:[#allocation0 + $0x1c0] sm:$0x3] %v2977_v23  ;;  %v2938_v25 = vld [vmem:[%s4550_s0 + $0xbe] sm:$0x3]  ;;  %v2280_v26 = vsel %vm1602_vm0, %v2278_v19, %v2276_v24  ;;  %v4093_v23 = vpop.permute.xlu1 %2017  }
  0xd4   :  { %v2289_v27 = vld [vmem:[#allocation0 + $0xc1] ss:$8 sm:$0xf0]   ;;  %1128 = vst [vmem:[#allocation0 + $0x2f8] sm:$0x3] %v2938_v25  ;;  %2281 = vrot.lane.b32.xlu1 %v2280_v26, %s3112_s10 }
  0xd5   :  { %v2939_v28 = vld [vmem:[%s4550_s0 + $0xbc] sm:$0x3]  ;;  %v2940_v30 = vld [vmem:[%s4550_s0 + $0xba] sm:$0x3]  ;;  %v2941_v31 = vld [vmem:[%s4550_s0 + $0xb8] sm:$0x3] }
  0xd6   :  { %1133 = vst [vmem:[#allocation0 + $0x2f0] sm:$0x3] %v2939_v28  ;;  %v2942_v32 = vld [vmem:[%s4550_s0 + $0xb6] sm:$0x3]  ;;  %1138 = vst [vmem:[#allocation0 + $0x2e8] sm:$0x3] %v2940_v30 }
  0xd7   :  { %v2287_v33 = vld [vmem:[#allocation0 + $0xc1] ss:$8 sm:$0xf]   ;;  %1143 = vst [vmem:[#allocation0 + $0x2e0] sm:$0x3] %v2941_v31 }
  0xd8   :  { %1148 = vst [vmem:[#allocation0 + $0x2d8] sm:$0x3] %v2942_v32  ;;  %v2943_v34 = vld [vmem:[%s4550_s0 + $0xb4] sm:$0x3]  ;;  %v2291_v35 = vsel %vm1602_vm0, %v2289_v27, %v2287_v33  ;;  %v2944_v36 = vld [vmem:[%s4550_s0 + $0xb2] sm:$0x3]  ;;  %v4111_v32 = vpop.permute.xlu0 %2028  }
  0xd9   :  { %1153 = vst [vmem:[#allocation0 + $0x2d0] sm:$0x3] %v2943_v34  ;;  %v2945_v37 = vld [vmem:[%s4550_s0 + $0xb0] sm:$0x3]  ;;  %v2906_v38 = vld [vmem:[%s4550_s0 + $0xfe] sm:$0x3]  ;;  %2292 = vrot.lane.b32.xlu0 %v2291_v35, %s3112_s10 }
  0xda   :  { %v2300_v40 = vld [vmem:[#allocation0 + $0x1c1] ss:$8 sm:$0xf0]   ;;  %1158 = vst [vmem:[#allocation0 + $0x2c8] sm:$0x3] %v2944_v36 }
  0xdb   :  { %1163 = vst [vmem:[#allocation0 + $0x2c0] sm:$0x3] %v2945_v37  ;;  %968 = vst [vmem:[#allocation0 + $0x3f8] sm:$0x3] %v2906_v38  ;;  %v2907_v41 = vld [vmem:[%s4550_s0 + $0xfc] sm:$0x3] }
  0xdc   :  { %973 = vst [vmem:[#allocation0 + $0x3f0] sm:$0x3] %v2907_v41  ;;  %v2908_v42 = vld [vmem:[%s4550_s0 + $0xfa] sm:$0x3]  ;;  %v2909_v43 = vld [vmem:[%s4550_s0 + $0xf8] sm:$0x3] }
  0xdd   :  { %v2910_v44 = vld [vmem:[%s4550_s0 + $0xf6] sm:$0x3]  ;;  %v2298_v45 = vld [vmem:[#allocation0 + $0x1c1] ss:$8 sm:$0xf]  }
  0xde   :  { %978 = vst [vmem:[#allocation0 + $0x3e8] sm:$0x3] %v2908_v42  ;;  %983 = vst [vmem:[#allocation0 + $0x3e0] sm:$0x3] %v2909_v43  ;;  %v2911_v46 = vld [vmem:[%s4550_s0 + $0xf4] sm:$0x3]  ;;  %v2302_v48 = vsel %vm1602_vm0, %v2300_v40, %v2298_v45 }
  0xdf   :  { %988 = vst [vmem:[#allocation0 + $0x3d8] sm:$0x3] %v2910_v44  ;;  %993 = vst [vmem:[#allocation0 + $0x3d0] sm:$0x3] %v2911_v46  ;;  %v2912_v49 = vld [vmem:[%s4550_s0 + $0xf2] sm:$0x3]  ;;  %2303 = vrot.lane.b32.xlu1 %v2302_v48, %s3112_s10  ;;  %v4145_v46 = vpop.permute.xlu1 %2039  }
  0xe0   :  { %v2913_v50 = vld [vmem:[%s4550_s0 + $0xf0] sm:$0x3]  ;;  %v2874_v51 = vld [vmem:[%s4550_s0 + $0x13e] sm:$0x3]  ;;  %998 = vst [vmem:[#allocation0 + $0x3c8] sm:$0x3] %v2912_v49 }
  0xe1   :  { %1003 = vst [vmem:[#allocation0 + $0x3c0] sm:$0x3] %v2913_v50  ;;  %808 = vst [vmem:[#allocation0 + $0x4f8] sm:$0x3] %v2874_v51  ;;  %v2875_v52 = vld [vmem:[%s4550_s0 + $0x13c] sm:$0x3] }
  0xe2   :  { %v2876_v53 = vld [vmem:[%s4550_s0 + $0x13a] sm:$0x3]  ;;  %v2877_v54 = vld [vmem:[%s4550_s0 + $0x138] sm:$0x3]  ;;  %813 = vst [vmem:[#allocation0 + $0x4f0] sm:$0x3] %v2875_v52 }
  0xe3   :  { %v2311_v55 = vld [vmem:[#allocation0 + $0x2c1] ss:$8 sm:$0xf0]   ;;  %818 = vst [vmem:[#allocation0 + $0x4e8] sm:$0x3] %v2876_v53 }
  0xe4   :  { %823 = vst [vmem:[#allocation0 + $0x4e0] sm:$0x3] %v2877_v54  ;;  %v2878_v56 = vld [vmem:[%s4550_s0 + $0x136] sm:$0x3]  ;;  %v2879_v57 = vld [vmem:[%s4550_s0 + $0x134] sm:$0x3] }
  0xe5   :  { %828 = vst [vmem:[#allocation0 + $0x4d8] sm:$0x3] %v2878_v56  ;;  %v2880_v58 = vld [vmem:[%s4550_s0 + $0x132] sm:$0x3]  ;;  %v2881_v59 = vld [vmem:[%s4550_s0 + $0x130] sm:$0x3] }
  0xe6   :  { %v2309_v61 = vld [vmem:[#allocation0 + $0x2c1] ss:$8 sm:$0xf]   ;;  %833 = vst [vmem:[#allocation0 + $0x4d0] sm:$0x3] %v2879_v57 }
  0xe7   :  { %838 = vst [vmem:[#allocation0 + $0x4c8] sm:$0x3] %v2880_v58  ;;  %843 = vst [vmem:[#allocation0 + $0x4c0] sm:$0x3] %v2881_v59  ;;  %v2842_v62 = vld [vmem:[%s4550_s0 + $0x17e] sm:$0x3]  ;;  %v2313_v63 = vsel %vm1602_vm0, %v2311_v55, %v2309_v61 }
  0xe8   :  { %648 = vst [vmem:[#allocation0 + $0x5f8] sm:$0x3] %v2842_v62  ;;  %v2843_v0 = vld [vmem:[%s4550_s0 + $0x17c] sm:$0x3]  ;;  %v2844_v1 = vld [vmem:[%s4550_s0 + $0x17a] sm:$0x3]  ;;  %2314 = vrot.lane.b32.xlu0 %v2313_v63, %s3112_s10  ;;  %v4173_v62 = vpop.permute.xlu0 %2050  }
  0xe9   :  { %v2845_v2 = vld [vmem:[%s4550_s0 + $0x178] sm:$0x3]  ;;  %653 = vst [vmem:[#allocation0 + $0x5f0] sm:$0x3] %v2843_v0  ;;  %658 = vst [vmem:[#allocation0 + $0x5e8] sm:$0x3] %v2844_v1 }
  0xea   :  { %v2322_v3 = vld [vmem:[#allocation0 + $0x3c1] ss:$8 sm:$0xf0]   ;;  %663 = vst [vmem:[#allocation0 + $0x5e0] sm:$0x3] %v2845_v2 }
  0xeb   :  { %v2846_v4 = vld [vmem:[%s4550_s0 + $0x176] sm:$0x3]  ;;  %v2847_v5 = vld [vmem:[%s4550_s0 + $0x174] sm:$0x3]  ;;  %v2848_v6 = vld [vmem:[%s4550_s0 + $0x172] sm:$0x3] }
  0xec   :  { %668 = vst [vmem:[#allocation0 + $0x5d8] sm:$0x3] %v2846_v4  ;;  %v2849_v7 = vld [vmem:[%s4550_s0 + $0x170] sm:$0x3]  ;;  %673 = vst [vmem:[#allocation0 + $0x5d0] sm:$0x3] %v2847_v5 }
  0xed   :  { %v2320_v8 = vld [vmem:[#allocation0 + $0x3c1] ss:$8 sm:$0xf]   ;;  %678 = vst [vmem:[#allocation0 + $0x5c8] sm:$0x3] %v2848_v6 }
  0xee   :  { %683 = vst [vmem:[#allocation0 + $0x5c0] sm:$0x3] %v2849_v7  ;;  %v2810_v9 = vld [vmem:[%s4550_s0 + $0x1be] sm:$0x3]  ;;  %v2324_v11 = vsel %vm1602_vm0, %v2322_v3, %v2320_v8  ;;  %v2811_v13 = vld [vmem:[%s4550_s0 + $0x1bc] sm:$0x3] }
  0xef   :  { %v2333_v12 = vld [vmem:[#allocation0 + $0x4c1] ss:$8 sm:$0xf0]   ;;  %488 = vst [vmem:[#allocation0 + $0x6f8] sm:$0x3] %v2810_v9  ;;  %2325 = vrot.lane.b32.xlu1 %v2324_v11, %s3112_s10  ;;  %v2062_v11 = vpop.permute.xlu1 %2061  }
  0xf0   :  { %493 = vst [vmem:[#allocation0 + $0x6f0] sm:$0x3] %v2811_v13  ;;  %v2812_v14 = vld [vmem:[%s4550_s0 + $0x1ba] sm:$0x3]  ;;  %v2813_v15 = vld [vmem:[%s4550_s0 + $0x1b8] sm:$0x3] }
  0xf1   :  { %v2814_v16 = vld [vmem:[%s4550_s0 + $0x1b6] sm:$0x3]  ;;  %v2331_v17 = vld [vmem:[#allocation0 + $0x4c1] ss:$8 sm:$0xf]  }
  0xf2   :  { %498 = vst [vmem:[#allocation0 + $0x6e8] sm:$0x3] %v2812_v14  ;;  %503 = vst [vmem:[#allocation0 + $0x6e0] sm:$0x3] %v2813_v15  ;;  %v2815_v18 = vld [vmem:[%s4550_s0 + $0x1b4] sm:$0x3]  ;;  %v2335_v19 = vsel %vm1602_vm0, %v2333_v12, %v2331_v17 }
  0xf3   :  { %508 = vst [vmem:[#allocation0 + $0x6d8] sm:$0x3] %v2814_v16  ;;  %513 = vst [vmem:[#allocation0 + $0x6d0] sm:$0x3] %v2815_v18  ;;  %v2816_v20 = vld [vmem:[%s4550_s0 + $0x1b2] sm:$0x3]  ;;  %2336 = vrot.lane.b32.xlu0 %v2335_v19, %s3112_s10  ;;  %v2073_v19 = vpop.permute.xlu0 %2072  }
  0xf4   :  { %v2817_v21 = vld [vmem:[%s4550_s0 + $0x1b0] sm:$0x3]  ;;  %v2778_v22 = vld [vmem:[%s4550_s0 + $0x1fe] sm:$0x3]  ;;  %518 = vst [vmem:[#allocation0 + $0x6c8] sm:$0x3] %v2816_v20 }
  0xf5   :  { %v2344_v24 = vld [vmem:[#allocation0 + $0x5c1] ss:$8 sm:$0xf0]   ;;  %523 = vst [vmem:[#allocation0 + $0x6c0] sm:$0x3] %v2817_v21 }
  0xf6   :  { %328 = vst [vmem:[#allocation0 + $0x7f8] sm:$0x3] %v2778_v22  ;;  %v2779_v25 = vld [vmem:[%s4550_s0 + $0x1fc] sm:$0x3]  ;;  %v2780_v26 = vld [vmem:[%s4550_s0 + $0x1fa] sm:$0x3] }
  0xf7   :  { %333 = vst [vmem:[#allocation0 + $0x7f0] sm:$0x3] %v2779_v25  ;;  %v2781_v27 = vld [vmem:[%s4550_s0 + $0x1f8] sm:$0x3]  ;;  %v2782_v28 = vld [vmem:[%s4550_s0 + $0x1f6] sm:$0x3] }
  0xf8   :  { %v2342_v30 = vld [vmem:[#allocation0 + $0x5c1] ss:$8 sm:$0xf]   ;;  %338 = vst [vmem:[#allocation0 + $0x7e8] sm:$0x3] %v2780_v26 }
  0xf9   :  { %343 = vst [vmem:[#allocation0 + $0x7e0] sm:$0x3] %v2781_v27  ;;  %348 = vst [vmem:[#allocation0 + $0x7d8] sm:$0x3] %v2782_v28  ;;  %v2783_v31 = vld [vmem:[%s4550_s0 + $0x1f4] sm:$0x3]  ;;  %v2346_v33 = vsel %vm1602_vm0, %v2344_v24, %v2342_v30 }
  0xfa   :  { %353 = vst [vmem:[#allocation0 + $0x7d0] sm:$0x3] %v2783_v31  ;;  %v2784_v34 = vld [vmem:[%s4550_s0 + $0x1f2] sm:$0x3]  ;;  %v2785_v35 = vld [vmem:[%s4550_s0 + $0x1f0] sm:$0x3]  ;;  %2347 = vrot.lane.b32.xlu1 %v2346_v33, %s3112_s10  ;;  %v2084_v31 = vpop.permute.xlu1 %2083  }
  0xfb   :  { %v2746_v36 = vld [vmem:[%s4550_s0 + $0x23e] sm:$0x3]  ;;  %358 = vst [vmem:[#allocation0 + $0x7c8] sm:$0x3] %v2784_v34  ;;  %363 = vst [vmem:[#allocation0 + $0x7c0] sm:$0x3] %v2785_v35 }
  0xfc   :  { %168 = vst [vmem:[#allocation0 + $0x8f8] sm:$0x3] %v2746_v36  ;;  %v2747_v37 = vld [vmem:[%s4550_s0 + $0x23c] sm:$0x3]  ;;  %v2748_v38 = vld [vmem:[%s4550_s0 + $0x23a] sm:$0x3] }
  0xfd   :  { %v2749_v40 = vld [vmem:[%s4550_s0 + $0x238] sm:$0x3]  ;;  %173 = vst [vmem:[#allocation0 + $0x8f0] sm:$0x3] %v2747_v37  ;;  %178 = vst [vmem:[#allocation0 + $0x8e8] sm:$0x3] %v2748_v38 }
  0xfe   :  { %v2355_v41 = vld [vmem:[#allocation0 + $0x6c1] ss:$8 sm:$0xf0]   ;;  %183 = vst [vmem:[#allocation0 + $0x8e0] sm:$0x3] %v2749_v40 }
  0xff   :  { %v2750_v42 = vld [vmem:[%s4550_s0 + $0x236] sm:$0x3]  ;;  %v2751_v43 = vld [vmem:[%s4550_s0 + $0x234] sm:$0x3]  ;;  %v2752_v44 = vld [vmem:[%s4550_s0 + $0x232] sm:$0x3] }
 0x100   :  { %188 = vst [vmem:[#allocation0 + $0x8d8] sm:$0x3] %v2750_v42  ;;  %v2753_v45 = vld [vmem:[%s4550_s0 + $0x230] sm:$0x3]  ;;  %193 = vst [vmem:[#allocation0 + $0x8d0] sm:$0x3] %v2751_v43 }
 0x101   :  { %v2353_v48 = vld [vmem:[#allocation0 + $0x6c1] ss:$8 sm:$0xf]   ;;  %198 = vst [vmem:[#allocation0 + $0x8c8] sm:$0x3] %v2752_v44 }
 0x102   :  { %203 = vst [vmem:[#allocation0 + $0x8c0] sm:$0x3] %v2753_v45  ;;  %v2714_v49 = vld [vmem:[%s4550_s0 + $0x27e] sm:$0x3]  ;;  %v2357_v50 = vsel %vm1602_vm0, %v2355_v41, %v2353_v48  ;;  %v2715_v51 = vld [vmem:[%s4550_s0 + $0x27c] sm:$0x3] }
 0x103   :  { %8 = vst [vmem:[#allocation0 + $0x9f8] sm:$0x3] %v2714_v49  ;;  %v2716_v52 = vld [vmem:[%s4550_s0 + $0x27a] sm:$0x3]  ;;  %v2717_v53 = vld [vmem:[%s4550_s0 + $0x278] sm:$0x3]  ;;  %2358 = vrot.lane.b32.xlu0 %v2357_v50, %s3112_s10 }
 0x104   :  { %v2366_v54 = vld [vmem:[#allocation0 + $0x7c1] ss:$8 sm:$0xf0]   ;;  %13 = vst [vmem:[#allocation0 + $0x9f0] sm:$0x3] %v2715_v51 }
 0x105   :  { %18 = vst [vmem:[#allocation0 + $0x9e8] sm:$0x3] %v2716_v52  ;;  %23 = vst [vmem:[#allocation0 + $0x9e0] sm:$0x3] %v2717_v53  ;;  %v2718_v55 = vld [vmem:[%s4550_s0 + $0x276] sm:$0x3] }
 0x106   :  { %28 = vst [vmem:[#allocation0 + $0x9d8] sm:$0x3] %v2718_v55  ;;  %v2719_v56 = vld [vmem:[%s4550_s0 + $0x274] sm:$0x3]  ;;  %v2720_v57 = vld [vmem:[%s4550_s0 + $0x272] sm:$0x3] }
 0x107   :  { %v2721_v58 = vld [vmem:[%s4550_s0 + $0x270] sm:$0x3]  ;;  %33 = vst [vmem:[#allocation0 + $0x9d0] sm:$0x3] %v2719_v56  ;;  %38 = vst [vmem:[#allocation0 + $0x9c8] sm:$0x3] %v2720_v57 }
 0x108   :  { %v2364_v59 = vld [vmem:[#allocation0 + $0x7c1] ss:$8 sm:$0xf]   ;;  %43 = vst [vmem:[#allocation0 + $0x9c0] sm:$0x3] %v2721_v58 }
 0x109   :  { %v1600_v61 = vld [vmem:[#allocation0] ss:$8 sm:$0xf]   ;;  %v2368_v63 = vsel %vm1602_vm0, %v2366_v54, %v2364_v59  ;;  %v2377_v0 = vld [vmem:[#allocation0 + $0x8c1] ss:$8 sm:$0xf0]   ;;  %v2106_v59 = vpop.permute.xlu1 %2105  }
 0x10a   :  { %v1601_v1 = vld [vmem:[#allocation0] ss:$8 sm:$0xf0]   ;;  %2369 = vrot.lane.b32.xlu1 %v2368_v63, %s3112_s10  ;;  %v2375_v5 = vld [vmem:[#allocation0 + $0x8c1] ss:$8 sm:$0xf]  }
 0x10b   :  { %v1603_v2 = vsel %vm1602_vm0, %v1601_v1, %v1600_v61  ;;  %v1670_v3 = vld [vmem:[#allocation0 + $0x200] ss:$8 sm:$0xf]   ;;  %v2379_v8 = vsel %vm1602_vm0, %v2377_v0, %v2375_v5 }
 0x10c   :  { %v1672_v4 = vld [vmem:[#allocation0 + $0x200] ss:$8 sm:$0xf0]   ;;  %1605 = vst.msk [vmem:[%s4551_s1] sm:$0xff] %vm1604_vm1, %v1603_v2   ;;  %2380 = vrot.lane.b32.xlu0 %v2379_v8, %s3112_s10 }
 0x10d   :  { %v1674_v6 = vsel %vm1602_vm0, %v1672_v4, %v1670_v3  ;;  %v1634_v7 = vld [vmem:[#allocation0 + $0x100] ss:$8 sm:$0xf]   ;;  %1966 = vst.msk [vmem:[%s4551_s1] sm:$0xff] %vm1965_vm2, %v3956_v29  }
 0x10e   :  { %3040 = vst.msk [vmem:[%s4551_s1 + $0x40] sm:$0xff] %vm1604_vm1, %v1674_v6   ;;  %v1636_v29 = vld [vmem:[#allocation0 + $0x100] ss:$8 sm:$0xf0]  }
 0x10f   :  { %v1706_v9 = vld [vmem:[#allocation0 + $0x300] ss:$8 sm:$0xf]   ;;  %v2388_v12 = vld [vmem:[#allocation0 + $0x9c1] ss:$8 sm:$0xf0]  }
 0x110   :  { %3073 = vst.msk [vmem:[%s4551_s1 + $0x40] sm:$0xff] %vm1965_vm2, %v3981_v39   ;;  %v1638_v39 = vsel %vm1602_vm0, %v1636_v29, %v1634_v7  ;;  %v1708_v13 = vld [vmem:[#allocation0 + $0x300] ss:$8 sm:$0xf0]  }
 0x111   :  { %3036 = vst.msk [vmem:[%s4551_s1 + $0x20] sm:$0xff] %vm1604_vm1, %v1638_v39   ;;  %v1710_v14 = vsel %vm1602_vm0, %v1708_v13, %v1706_v9  ;;  %v1742_v15 = vld [vmem:[#allocation0 + $0x400] ss:$8 sm:$0xf]  }
 0x112   :  { %v1744_v16 = vld [vmem:[#allocation0 + $0x400] ss:$8 sm:$0xf0]   ;;  %v2386_v17 = vld [vmem:[#allocation0 + $0x9c1] ss:$8 sm:$0xf]  }
 0x113   :  { %3072 = vst.msk [vmem:[%s4551_s1 + $0x20] sm:$0xff] %vm1965_vm2, %v3999_v47   ;;  %v1746_v47 = vsel %vm1602_vm0, %v1744_v16, %v1742_v15  ;;  %v1778_v18 = vld [vmem:[#allocation0 + $0x500] ss:$8 sm:$0xf]   ;;  %v2390_v20 = vsel %vm1602_vm0, %v2388_v12, %v2386_v17 }
 0x114   :  { %3044 = vst.msk [vmem:[%s4551_s1 + $0x60] sm:$0xff] %vm1604_vm1, %v1710_v14   ;;  %3048 = vst.msk [vmem:[%s4551_s1 + $0x80] sm:$0xff] %vm1604_vm1, %v1746_v47   ;;  %v1814_v21 = vld [vmem:[#allocation0 + $0x600] ss:$8 sm:$0xf]   ;;  %2391 = vrot.lane.b32.xlu1 %v2390_v20, %s3112_s10  ;;  %v2128_v47 = vpop.permute.xlu1 %2127  }
 0x115   :  { %3074 = vst.msk [vmem:[%s4551_s1 + $0x60] sm:$0xff] %vm1965_vm2, %v4033_v60   ;;  %v1780_v60 = vld [vmem:[#allocation0 + $0x500] ss:$8 sm:$0xf0]   ;;  %3075 = vst.msk [vmem:[%s4551_s1 + $0x80] sm:$0xff] %vm1965_vm2, %v4064_v10  }
 0x116   :  { %v1782_v10 = vsel %vm1602_vm0, %v1780_v60, %v1778_v18  ;;  %v1816_v22 = vld [vmem:[#allocation0 + $0x600] ss:$8 sm:$0xf0]  }
 0x117   :  { %v1850_v24 = vld [vmem:[#allocation0 + $0x700] ss:$8 sm:$0xf]   ;;  %3052 = vst.msk [vmem:[%s4551_s1 + $0xa0] sm:$0xff] %vm1604_vm1, %v1782_v10   ;;  %v1818_v25 = vsel %vm1602_vm0, %v1816_v22, %v1814_v21 }
 0x118   :  { %v1852_v26 = vld [vmem:[#allocation0 + $0x700] ss:$8 sm:$0xf0]   ;;  %3076 = vst.msk [vmem:[%s4551_s1 + $0xa0] sm:$0xff] %vm1965_vm2, %v4093_v23  }
 0x119   :  { %v1886_v27 = vld [vmem:[#allocation0 + $0x800] ss:$8 sm:$0xf]   ;;  %3056 = vst.msk [vmem:[%s4551_s1 + $0xc0] sm:$0xff] %vm1604_vm1, %v1818_v25   ;;  %v1854_v23 = vsel %vm1602_vm0, %v1852_v26, %v1850_v24 }
 0x11a   :  { %v1888_v28 = vld [vmem:[#allocation0 + $0x800] ss:$8 sm:$0xf0]   ;;  %3077 = vst.msk [vmem:[%s4551_s1 + $0xc0] sm:$0xff] %vm1965_vm2, %v4111_v32  }
 0x11b   :  { %v1922_v30 = vld [vmem:[#allocation0 + $0x900] ss:$8 sm:$0xf]   ;;  %3060 = vst.msk [vmem:[%s4551_s1 + $0xe0] sm:$0xff] %vm1604_vm1, %v1854_v23   ;;  %v1890_v32 = vsel %vm1602_vm0, %v1888_v28, %v1886_v27 }
 0x11c   :  { %v1924_v33 = vld [vmem:[#allocation0 + $0x900] ss:$8 sm:$0xf0]   ;;  %3078 = vst.msk [vmem:[%s4551_s1 + $0xe0] sm:$0xff] %vm1965_vm2, %v4145_v46   ;;  %v2095_v46 = vpop.permute.xlu0 %2094  }
 0x11d   :  { %v1607_v34 = vld [vmem:[#allocation0 + $0x40] ss:$8 sm:$0xf]   ;;  %3064 = vst.msk [vmem:[%s4551_s1 + $0x100] sm:$0xff] %vm1604_vm1, %v1890_v32   ;;  %v1926_v35 = vsel %vm1602_vm0, %v1924_v33, %v1922_v30 }
 0x11e   :  { %v1609_v36 = vld [vmem:[#allocation0 + $0x40] ss:$8 sm:$0xf0]   ;;  %3079 = vst.msk [vmem:[%s4551_s1 + $0x100] sm:$0xff] %vm1965_vm2, %v4173_v62  }
 0x11f   :  { %v1643_v37 = vld [vmem:[#allocation0 + $0x140] ss:$8 sm:$0xf]   ;;  %3068 = vst.msk [vmem:[%s4551_s1 + $0x120] sm:$0xff] %vm1604_vm1, %v1926_v35   ;;  %v1611_v38 = vsel %vm1602_vm0, %v1609_v36, %v1607_v34 }
 0x120   :  { %v1645_v40 = vld [vmem:[#allocation0 + $0x140] ss:$8 sm:$0xf0]   ;;  %3080 = vst.msk [vmem:[%s4551_s1 + $0x120] sm:$0xff] %vm1965_vm2, %v2062_v11   ;;  %v2117_v6 = vpop.permute.xlu0 %2116  }
 0x121   :  { %v1679_v41 = vld [vmem:[#allocation0 + $0x240] ss:$8 sm:$0xf]   ;;  %3033 = vst.msk [vmem:[%s4551_s1 + $0x8] sm:$0xff] %vm1604_vm1, %v1611_v38   ;;  %v1647_v42 = vsel %vm1602_vm0, %v1645_v40, %v1643_v37 }
 0x122   :  { %v1681_v43 = vld [vmem:[#allocation0 + $0x240] ss:$8 sm:$0xf0]   ;;  %3081 = vst.msk [vmem:[%s4551_s1 + $0x8] sm:$0xff] %vm1965_vm2, %v2073_v19  }
 0x123   :  { %v1715_v44 = vld [vmem:[#allocation0 + $0x340] ss:$8 sm:$0xf]   ;;  %3037 = vst.msk [vmem:[%s4551_s1 + $0x28] sm:$0xff] %vm1604_vm1, %v1647_v42   ;;  %v1683_v45 = vsel %vm1602_vm0, %v1681_v43, %v1679_v41 }
 0x124   :  { %v1717_v48 = vld [vmem:[#allocation0 + $0x340] ss:$8 sm:$0xf0]   ;;  %3082 = vst.msk [vmem:[%s4551_s1 + $0x28] sm:$0xff] %vm1965_vm2, %v2084_v31   ;;  %v2139_v32 = vpop.permute.xlu0 %2138  }
 0x125   :  { %v1751_v49 = vld [vmem:[#allocation0 + $0x440] ss:$8 sm:$0xf]   ;;  %3041 = vst.msk [vmem:[%s4551_s1 + $0x48] sm:$0xff] %vm1604_vm1, %v1683_v45   ;;  %v1719_v50 = vsel %vm1602_vm0, %v1717_v48, %v1715_v44 }
 0x126   :  { %v1753_v51 = vld [vmem:[#allocation0 + $0x440] ss:$8 sm:$0xf0]   ;;  %3083 = vst.msk [vmem:[%s4551_s1 + $0x48] sm:$0xff] %vm1965_vm2, %v2095_v46   ;;  %v2150_v46 = vpop.permute.xlu1 %2149  }
 0x127   :  { %v1787_v52 = vld [vmem:[#allocation0 + $0x540] ss:$8 sm:$0xf]   ;;  %3045 = vst.msk [vmem:[%s4551_s1 + $0x68] sm:$0xff] %vm1604_vm1, %v1719_v50   ;;  %v1755_v53 = vsel %vm1602_vm0, %v1753_v51, %v1751_v49 }
 0x128   :  { %v1789_v54 = vld [vmem:[#allocation0 + $0x540] ss:$8 sm:$0xf0]   ;;  %3049 = vst.msk [vmem:[%s4551_s1 + $0x88] sm:$0xff] %vm1604_vm1, %v1755_v53  }
 0x129   :  { %v1823_v55 = vld [vmem:[#allocation0 + $0x640] ss:$8 sm:$0xf]   ;;  %v1791_v56 = vsel %vm1602_vm0, %v1789_v54, %v1787_v52  ;;  %3084 = vst.msk [vmem:[%s4551_s1 + $0x68] sm:$0xff] %vm1965_vm2, %v2106_v59   ;;  %3085 = vst.msk [vmem:[%s4551_s1 + $0x88] sm:$0xff] %vm1965_vm2, %v2117_v6  }
 0x12a   :  { %v1825_v57 = vld [vmem:[#allocation0 + $0x640] ss:$8 sm:$0xf0]   ;;  %3053 = vst.msk [vmem:[%s4551_s1 + $0xa8] sm:$0xff] %vm1604_vm1, %v1791_v56   ;;  %v2172_v6 = vpop.permute.xlu1 %2171  }
 0x12b   :  { %v1859_v58 = vld [vmem:[#allocation0 + $0x740] ss:$8 sm:$0xf]   ;;  %v1827_v61 = vsel %vm1602_vm0, %v1825_v57, %v1823_v55  ;;  %3086 = vst.msk [vmem:[%s4551_s1 + $0xa8] sm:$0xff] %vm1965_vm2, %v2128_v47   ;;  %v2161_v57 = vpop.permute.xlu0 %2160  }
 0x12c   :  { %v1861_v62 = vld [vmem:[#allocation0 + $0x740] ss:$8 sm:$0xf0]   ;;  %3057 = vst.msk [vmem:[%s4551_s1 + $0xc8] sm:$0xff] %vm1604_vm1, %v1827_v61  }
 0x12d   :  { %v1895_v63 = vld [vmem:[#allocation0 + $0x840] ss:$8 sm:$0xf]   ;;  %v1863_v0 = vsel %vm1602_vm0, %v1861_v62, %v1859_v58  ;;  %3087 = vst.msk [vmem:[%s4551_s1 + $0xc8] sm:$0xff] %vm1965_vm2, %v2139_v32  }
 0x12e   :  { %v1897_v1 = vld [vmem:[#allocation0 + $0x840] ss:$8 sm:$0xf0]   ;;  %3061 = vst.msk [vmem:[%s4551_s1 + $0xe8] sm:$0xff] %vm1604_vm1, %v1863_v0  }
 0x12f   :  { %v1931_v2 = vld [vmem:[#allocation0 + $0x940] ss:$8 sm:$0xf]   ;;  %v1899_v3 = vsel %vm1602_vm0, %v1897_v1, %v1895_v63  ;;  %3088 = vst.msk [vmem:[%s4551_s1 + $0xe8] sm:$0xff] %vm1965_vm2, %v2150_v46  }
 0x130   :  { %v1933_v4 = vld [vmem:[#allocation0 + $0x940] ss:$8 sm:$0xf0]   ;;  %3065 = vst.msk [vmem:[%s4551_s1 + $0x108] sm:$0xff] %vm1604_vm1, %v1899_v3  }
 0x131   :  { %v1616_v5 = vld [vmem:[#allocation0 + $0x80] ss:$8 sm:$0xf]   ;;  %v1935_v7 = vsel %vm1602_vm0, %v1933_v4, %v1931_v2  ;;  %3089 = vst.msk [vmem:[%s4551_s1 + $0x108] sm:$0xff] %vm1965_vm2, %v2161_v57  }
 0x132   :  { %v1618_v8 = vld [vmem:[#allocation0 + $0x80] ss:$8 sm:$0xf0]   ;;  %3069 = vst.msk [vmem:[%s4551_s1 + $0x128] sm:$0xff] %vm1604_vm1, %v1935_v7  }
 0x133   :  { %v1652_v29 = vld [vmem:[#allocation0 + $0x180] ss:$8 sm:$0xf]   ;;  %v1620_v9 = vsel %vm1602_vm0, %v1618_v8, %v1616_v5  ;;  %3090 = vst.msk [vmem:[%s4551_s1 + $0x128] sm:$0xff] %vm1965_vm2, %v2172_v6   ;;  %v2183_v8 = vpop.permute.xlu0 %2182  }
 0x134   :  { %v1654_v11 = vld [vmem:[#allocation0 + $0x180] ss:$8 sm:$0xf0]   ;;  %3034 = vst.msk [vmem:[%s4551_s1 + $0x10] sm:$0xff] %vm1604_vm1, %v1620_v9  }
 0x135   :  { %v1688_v12 = vld [vmem:[#allocation0 + $0x280] ss:$8 sm:$0xf]   ;;  %v1656_v39 = vsel %vm1602_vm0, %v1654_v11, %v1652_v29  ;;  %3091 = vst.msk [vmem:[%s4551_s1 + $0x10] sm:$0xff] %vm1965_vm2, %v2183_v8   ;;  %v2194_v29 = vpop.permute.xlu1 %2193  }
 0x136   :  { %v1690_v13 = vld [vmem:[#allocation0 + $0x280] ss:$8 sm:$0xf0]   ;;  %3038 = vst.msk [vmem:[%s4551_s1 + $0x30] sm:$0xff] %vm1604_vm1, %v1656_v39  }
 0x137   :  { %v1724_v14 = vld [vmem:[#allocation0 + $0x380] ss:$8 sm:$0xf]   ;;  %v1692_v15 = vsel %vm1602_vm0, %v1690_v13, %v1688_v12  ;;  %3092 = vst.msk [vmem:[%s4551_s1 + $0x30] sm:$0xff] %vm1965_vm2, %v2194_v29   ;;  %v2205_v9 = vpop.permute.xlu0 %2204  }
 0x138   :  { %v1726_v16 = vld [vmem:[#allocation0 + $0x380] ss:$8 sm:$0xf0]   ;;  %3042 = vst.msk [vmem:[%s4551_s1 + $0x50] sm:$0xff] %vm1604_vm1, %v1692_v15  }
 0x139   :  { %v1760_v17 = vld [vmem:[#allocation0 + $0x480] ss:$8 sm:$0xf]   ;;  %v1728_v18 = vsel %vm1602_vm0, %v1726_v16, %v1724_v14  ;;  %3093 = vst.msk [vmem:[%s4551_s1 + $0x50] sm:$0xff] %vm1965_vm2, %v2205_v9   ;;  %v2216_v11 = vpop.permute.xlu1 %2215  }
 0x13a   :  { %v1762_v19 = vld [vmem:[#allocation0 + $0x480] ss:$8 sm:$0xf0]   ;;  %3046 = vst.msk [vmem:[%s4551_s1 + $0x70] sm:$0xff] %vm1604_vm1, %v1728_v18  }
 0x13b   :  { %v1796_v20 = vld [vmem:[#allocation0 + $0x580] ss:$8 sm:$0xf]   ;;  %v1764_v60 = vsel %vm1602_vm0, %v1762_v19, %v1760_v17  ;;  %3094 = vst.msk [vmem:[%s4551_s1 + $0x70] sm:$0xff] %vm1965_vm2, %v2216_v11   ;;  %v2227_v12 = vpop.permute.xlu0 %2226  }
 0x13c   :  { %v1798_v21 = vld [vmem:[#allocation0 + $0x580] ss:$8 sm:$0xf0]   ;;  %3050 = vst.msk [vmem:[%s4551_s1 + $0x90] sm:$0xff] %vm1604_vm1, %v1764_v60  }
 0x13d   :  { %v1832_v10 = vld [vmem:[#allocation0 + $0x680] ss:$8 sm:$0xf]   ;;  %v1800_v22 = vsel %vm1602_vm0, %v1798_v21, %v1796_v20  ;;  %3095 = vst.msk [vmem:[%s4551_s1 + $0x90] sm:$0xff] %vm1965_vm2, %v2227_v12   ;;  %v2238_v39 = vpop.permute.xlu1 %2237  }
 0x13e   :  { %v1834_v24 = vld [vmem:[#allocation0 + $0x680] ss:$8 sm:$0xf0]   ;;  %3054 = vst.msk [vmem:[%s4551_s1 + $0xb0] sm:$0xff] %vm1604_vm1, %v1800_v22  }
 0x13f   :  { %v1868_v25 = vld [vmem:[#allocation0 + $0x780] ss:$8 sm:$0xf]   ;;  %v1836_v26 = vsel %vm1602_vm0, %v1834_v24, %v1832_v10  ;;  %3096 = vst.msk [vmem:[%s4551_s1 + $0xb0] sm:$0xff] %vm1965_vm2, %v2238_v39   ;;  %v2249_v13 = vpop.permute.xlu0 %2248  }
 0x140   :  { %v1870_v27 = vld [vmem:[#allocation0 + $0x780] ss:$8 sm:$0xf0]   ;;  %3058 = vst.msk [vmem:[%s4551_s1 + $0xd0] sm:$0xff] %vm1604_vm1, %v1836_v26  }
 0x141   :  { %v1904_v23 = vld [vmem:[#allocation0 + $0x880] ss:$8 sm:$0xf]   ;;  %v1872_v28 = vsel %vm1602_vm0, %v1870_v27, %v1868_v25  ;;  %3097 = vst.msk [vmem:[%s4551_s1 + $0xd0] sm:$0xff] %vm1965_vm2, %v2249_v13   ;;  %v2260_v14 = vpop.permute.xlu1 %2259  }
 0x142   :  { %v1906_v30 = vld [vmem:[#allocation0 + $0x880] ss:$8 sm:$0xf0]   ;;  %3062 = vst.msk [vmem:[%s4551_s1 + $0xf0] sm:$0xff] %vm1604_vm1, %v1872_v28  }
 0x143   :  { %v1940_v31 = vld [vmem:[#allocation0 + $0x980] ss:$8 sm:$0xf]   ;;  %v1908_v33 = vsel %vm1602_vm0, %v1906_v30, %v1904_v23  ;;  %3098 = vst.msk [vmem:[%s4551_s1 + $0xf0] sm:$0xff] %vm1965_vm2, %v2260_v14   ;;  %v2271_v15 = vpop.permute.xlu0 %2270  }
 0x144   :  { %v1942_v34 = vld [vmem:[#allocation0 + $0x980] ss:$8 sm:$0xf0]   ;;  %3066 = vst.msk [vmem:[%s4551_s1 + $0x110] sm:$0xff] %vm1604_vm1, %v1908_v33  }
 0x145   :  { %v1625_v35 = vld [vmem:[#allocation0 + $0xc0] ss:$8 sm:$0xf]   ;;  %v1944_v36 = vsel %vm1602_vm0, %v1942_v34, %v1940_v31  ;;  %3099 = vst.msk [vmem:[%s4551_s1 + $0x110] sm:$0xff] %vm1965_vm2, %v2271_v15  }
 0x146   :  { %v1627_v37 = vld [vmem:[#allocation0 + $0xc0] ss:$8 sm:$0xf0]   ;;  %3070 = vst.msk [vmem:[%s4551_s1 + $0x130] sm:$0xff] %vm1604_vm1, %v1944_v36   ;;  %v2282_v16 = vpop.permute.xlu1 %2281  }
 0x147   :  { %v1661_v38 = vld [vmem:[#allocation0 + $0x1c0] ss:$8 sm:$0xf]   ;;  %v1629_v40 = vsel %vm1602_vm0, %v1627_v37, %v1625_v35  ;;  %3100 = vst.msk [vmem:[%s4551_s1 + $0x130] sm:$0xff] %vm1965_vm2, %v2282_v16  }
 0x148   :  { %v1663_v41 = vld [vmem:[#allocation0 + $0x1c0] ss:$8 sm:$0xf0]   ;;  %3035 = vst.msk [vmem:[%s4551_s1 + $0x18] sm:$0xff] %vm1604_vm1, %v1629_v40  }
 0x149   :  { %v1697_v42 = vld [vmem:[#allocation0 + $0x2c0] ss:$8 sm:$0xf]   ;;  %v1665_v43 = vsel %vm1602_vm0, %v1663_v41, %v1661_v38 }
 0x14a   :  { %v1699_v44 = vld [vmem:[#allocation0 + $0x2c0] ss:$8 sm:$0xf0]   ;;  %3039 = vst.msk [vmem:[%s4551_s1 + $0x38] sm:$0xff] %vm1604_vm1, %v1665_v43  }
 0x14b   :  { %v1733_v45 = vld [vmem:[#allocation0 + $0x3c0] ss:$8 sm:$0xf]   ;;  %v1701_v48 = vsel %vm1602_vm0, %v1699_v44, %v1697_v42  ;;  %v2293_v17 = vpop.permute.xlu0 %2292  }
 0x14c   :  { %v1735_v49 = vld [vmem:[#allocation0 + $0x3c0] ss:$8 sm:$0xf0]   ;;  %3043 = vst.msk [vmem:[%s4551_s1 + $0x58] sm:$0xff] %vm1604_vm1, %v1701_v48  }
 0x14d   :  { %v1769_v50 = vld [vmem:[#allocation0 + $0x4c0] ss:$8 sm:$0xf]   ;;  %v1737_v51 = vsel %vm1602_vm0, %v1735_v49, %v1733_v45  ;;  %3101 = vst.msk [vmem:[%s4551_s1 + $0x18] sm:$0xff] %vm1965_vm2, %v2293_v17  }
 0x14e   :  { %v1771_v52 = vld [vmem:[#allocation0 + $0x4c0] ss:$8 sm:$0xf0]   ;;  %3047 = vst.msk [vmem:[%s4551_s1 + $0x78] sm:$0xff] %vm1604_vm1, %v1737_v51  }
 0x14f   :  { %v1805_v53 = vld [vmem:[#allocation0 + $0x5c0] ss:$8 sm:$0xf]   ;;  %v1773_v54 = vsel %vm1602_vm0, %v1771_v52, %v1769_v50 }
 0x150   :  { %v1807_v55 = vld [vmem:[#allocation0 + $0x5c0] ss:$8 sm:$0xf0]   ;;  %3051 = vst.msk [vmem:[%s4551_s1 + $0x98] sm:$0xff] %vm1604_vm1, %v1773_v54  }
 0x151   :  { %v1841_v56 = vld [vmem:[#allocation0 + $0x6c0] ss:$8 sm:$0xf]   ;;  %v1809_v58 = vsel %vm1602_vm0, %v1807_v55, %v1805_v53  ;;  %v2304_v47 = vpop.permute.xlu1 %2303  }
 0x152   :  { %v1843_v59 = vld [vmem:[#allocation0 + $0x6c0] ss:$8 sm:$0xf0]   ;;  %3055 = vst.msk [vmem:[%s4551_s1 + $0xb8] sm:$0xff] %vm1604_vm1, %v1809_v58  }
 0x153   :  { %v1877_v61 = vld [vmem:[#allocation0 + $0x7c0] ss:$8 sm:$0xf]   ;;  %v1845_v62 = vsel %vm1602_vm0, %v1843_v59, %v1841_v56  ;;  %3102 = vst.msk [vmem:[%s4551_s1 + $0x38] sm:$0xff] %vm1965_vm2, %v2304_v47  }
 0x154   :  { %v1879_v63 = vld [vmem:[#allocation0 + $0x7c0] ss:$8 sm:$0xf0]   ;;  %3059 = vst.msk [vmem:[%s4551_s1 + $0xd8] sm:$0xff] %vm1604_vm1, %v1845_v62  }
 0x155   :  { %v1913_v0 = vld [vmem:[#allocation0 + $0x8c0] ss:$8 sm:$0xf]   ;;  %v1881_v1 = vsel %vm1602_vm0, %v1879_v63, %v1877_v61 }
 0x156   :  { %v1915_v2 = vld [vmem:[#allocation0 + $0x8c0] ss:$8 sm:$0xf0]   ;;  %3063 = vst.msk [vmem:[%s4551_s1 + $0xf8] sm:$0xff] %vm1604_vm1, %v1881_v1  }
 0x157   :  { %v1949_v3 = vld [vmem:[#allocation0 + $0x9c0] ss:$8 sm:$0xf]   ;;  %v1917_v4 = vsel %vm1602_vm0, %v1915_v2, %v1913_v0 }
 0x158   :  { %v1951_v5 = vld [vmem:[#allocation0 + $0x9c0] ss:$8 sm:$0xf0]   ;;  %3067 = vst.msk [vmem:[%s4551_s1 + $0x118] sm:$0xff] %vm1604_vm1, %v1917_v4  }
 0x159   :  { %v1953_v7 = vsel %vm1602_vm0, %v1951_v5, %v1949_v3 }
 0x15a   :  { %3071 = vst.msk [vmem:[%s4551_s1 + $0x138] sm:$0xff] %vm1604_vm1, %v1953_v7   ;;  %v2315_v18 = vpop.permute.xlu0 %2314  }
 0x15b   :  { %3103 = vst.msk [vmem:[%s4551_s1 + $0x58] sm:$0xff] %vm1965_vm2, %v2315_v18  }
 0x161   :  { %v2326_v19 = vpop.permute.xlu1 %2325  }
 0x162   :  { %3104 = vst.msk [vmem:[%s4551_s1 + $0x78] sm:$0xff] %vm1965_vm2, %v2326_v19  }
 0x165   :  { %v2337_v20 = vpop.permute.xlu0 %2336  }
 0x166   :  { %3105 = vst.msk [vmem:[%s4551_s1 + $0x98] sm:$0xff] %vm1965_vm2, %v2337_v20  }
 0x16c   :  { %v2348_v60 = vpop.permute.xlu1 %2347  }
 0x16d   :  { %3106 = vst.msk [vmem:[%s4551_s1 + $0xb8] sm:$0xff] %vm1965_vm2, %v2348_v60  }
 0x175   :  { %v2359_v21 = vpop.permute.xlu0 %2358  }
 0x176   :  { %3107 = vst.msk [vmem:[%s4551_s1 + $0xd8] sm:$0xff] %vm1965_vm2, %v2359_v21  }
 0x17c   :  { %v2370_v10 = vpop.permute.xlu1 %2369  }
 0x17d   :  { %3108 = vst.msk [vmem:[%s4551_s1 + $0xf8] sm:$0xff] %vm1965_vm2, %v2370_v10  }
 0x17e   :  { %v2381_v22 = vpop.permute.xlu0 %2380  }
 0x17f   :  { %3109 = vst.msk [vmem:[%s4551_s1 + $0x118] sm:$0xff] %vm1965_vm2, %v2381_v22  }
 0x186   :  { %v2392_v24 = vpop.permute.xlu1 %2391  }
 0x187   :  { %3110 = vst.msk [vmem:[%s4551_s1 + $0x138] sm:$0xff] %vm1965_vm2, %v2392_v24  }

// kernel: cnn_forward.3
= control target key start
LH: loop header
LB: loop body
LE: loop exit
PB: predicated region body
PF: predicated region fallthrough
CT: control target
= control target key end

     0   :  { %v3118_v0 = vmov 0   ;;  %vm270_vm0 = vcmask 130048   ;;  %vm2467_vm1 = vcmask 1041408   ;;  %vm2440_vm2 = vcmask 1041409   ;;  %s5050_s0 = inlined_call_operand.vmem [shape: bf16[4,400,98], index: 0, kind: input, shape index: {}]   ;;  %s5051_s1 = inlined_call_operand.vmem [shape: bf16[32,400], index: 1, kind: input, shape index: {}]   ;;  %s5052_s2 = inlined_call_operand.vmem [shape: f32[32,1], index: 2, kind: input, shape index: {}]   ;;  %s5053_s5 = inlined_call_operand.vmem [shape: f32[10,1], index: 5, kind: input, shape index: {}]   ;;  %s5054_s4 = inlined_call_operand.vmem [shape: f32[98,2], index: 4, kind: input, shape index: {}]   ;;  %s5055_s3 = inlined_call_operand.vmem [shape: f32[10,32,98], index: 3, kind: input, shape index: {}]   ;;  %s5056_s6 = inlined_call_operand.vmem [shape: f32[10,2], index: 6, kind: output, shape index: {}]  }
   0x1   :  { %326 = vmatprep.subr.bf16.mxu1 %v3118_v0  ;;  %v3006_v1 = vld [vmem:[%s5050_s0 + $0x40] sm:$0xff]   ;;  %3004 = vset.pattern.permute.xlu0 %v3118_v0  ;;  %v3009_v4 = vld [vmem:[%s5050_s0 + $0x48] sm:$0xff]   ;;  %v3012_v7 = vld [vmem:[%s5050_s0 + $0x50] sm:$0xff]   ;;  %vm2443_vm3 = vcmask 1042434   ;;  %vm2446_vm4 = vcmask 1043459   ;;  %vm2449_vm5 = vcmask 1044484  }
   0x2   :  { %v3007_v2 = vld [vmem:[%s5050_s0 + $0x80] sm:$0xff]   ;;  %3005 = vset.pattern.permute.xlu1 %v3118_v0  ;;  %2823 = vmatprep.subr.bf16.mxu0 %v3006_v1  ;;  %v3010_v5 = vld [vmem:[%s5050_s0 + $0x88] sm:$0xff]   ;;  %v3013_v8 = vld [vmem:[%s5050_s0 + $0x90] sm:$0xff]   ;;  %vm2452_vm6 = vcmask 1045509   ;;  %vm2455_vm7 = vcmask 1046534   ;;  %vm2458_vm8 = vcmask 1047559  }
   0x3   :  { %v3008_v3 = vld [vmem:[%s5050_s0] sm:$0xff]   ;;  %327 = vmatpush1.bf16.msra.mxu1 %v3007_v2  ;;  %v3011_v6 = vld [vmem:[%s5050_s0 + $0x8] sm:$0xff]   ;;  %v3014_v9 = vld [vmem:[%s5050_s0 + $0x10] sm:$0xff]   ;;  %vm2462_vm9 = vcmask 801792   ;;  %vm2548_vm10 = vcmask 9216   ;;  %vm2546_vm11 = vcmask 15360  }
   0x4   :  { %2824 = vmatpush3.bf16.msra.mxu0 %v3008_v3  ;;  %328 = vmatprep.subr.bf16.mxu1 %v3118_v0  ;;  %v3015_v10 = vld [vmem:[%s5050_s0 + $0x58] sm:$0xff]   ;;  %v3018_v13 = vld [vmem:[%s5050_s0 + $0x60] sm:$0xff]   ;;  %v3021_v16 = vld [vmem:[%s5050_s0 + $0x68] sm:$0xff]  }
   0x5   :  { %2825 = vmatprep.subr.bf16.mxu0 %v3009_v4  ;;  %v3016_v11 = vld [vmem:[%s5050_s0 + $0x98] sm:$0xff]   ;;  %v3019_v14 = vld [vmem:[%s5050_s0 + $0xa0] sm:$0xff]   ;;  %v3022_v17 = vld [vmem:[%s5050_s0 + $0xa8] sm:$0xff]  }
   0x6   :  { %v3017_v12 = vld [vmem:[%s5050_s0 + $0x18] sm:$0xff]   ;;  %v3020_v15 = vld [vmem:[%s5050_s0 + $0x20] sm:$0xff]   ;;  %v3023_v18 = vld [vmem:[%s5050_s0 + $0x28] sm:$0xff]  }
   0x7   :  { %329 = vmatpush1.bf16.msra.mxu1 %v3010_v5  ;;  %v3024_v19 = vld [vmem:[%s5050_s0 + $0x70] sm:$0xff]   ;;  %v3027_v23 = vld [vmem:[%s5050_s0 + $0x78] sm:$0xff]   ;;  %v3037_v27 = vld [vmem:[%s5050_s0 + $0x108] sm:$0xff]  }
   0x8   :  { %2826 = vmatpush3.bf16.msra.mxu0 %v3011_v6  ;;  %330 = vmatprep.subr.bf16.mxu1 %v3118_v0  ;;  %v3025_v20 = vld [vmem:[%s5050_s0 + $0xb0] sm:$0xff]   ;;  %v3028_v24 = vld [vmem:[%s5050_s0 + $0xb8] sm:$0xff]   ;;  %v3033_v29 = vld [vmem:[%s5050_s0 + $0xc0] sm:$0xff]  }
   0x9   :  { %2827 = vmatprep.subr.bf16.mxu0 %v3012_v7  ;;  %v3026_v21 = vld [vmem:[%s5050_s0 + $0x30] sm:$0xff]   ;;  %v3241_v25 = vld [vmem:[%s5051_s1 + $0xc] ss:$16 sps:$4 sm:$0xff]   ;;  %v3270_v32 = vld [vmem:[%s5051_s1 + $0x8] ss:$16 sps:$4 sm:$0xff]  }
   0xa   :  { %v3229_v22 = vld [vmem:[%s5051_s1 + $0x4] ss:$16 sps:$4 sm:$0xff]   ;;  %v3029_v26 = vld [vmem:[%s5050_s0 + $0x38] sm:$0xff]   ;;  %2587 = vmatprep.mubr.msk.bf16.mxu1 %vm270_vm0, %v3241_v25  ;;  %v3255_v28 = vld [vmem:[%s5051_s1] ss:$16 sps:$4 sm:$0xff]  }
   0xb   :  { %331 = vmatpush1.bf16.msra.mxu1 %v3013_v8  ;;  %309 = vmatprep.mubr.bf16.mxu0 %v3229_v22  ;;  %v3039_v30 = vld [vmem:[%s5050_s0 + $0xc8] sm:$0xff]   ;;  %v3040_v31 = vld [vmem:[%s5050_s0 + $0x110] sm:$0xff]   ;;  %v3043_v35 = vld [vmem:[%s5050_s0 + $0x118] sm:$0xff]  }
   0xc   :  { %2828 = vmatpush3.bf16.msra.mxu0 %v3014_v9  ;;  %332 = vmatprep.subr.bf16.mxu1 %v3118_v0  ;;  %v3038_v33 = vld [vmem:[%s5050_s0 + $0x148] sm:$0xff]   ;;  %v3042_v34 = vld [vmem:[%s5050_s0 + $0xd0] sm:$0xff]   ;;  %v3045_v37 = vld [vmem:[%s5050_s0 + $0xd8] sm:$0xff]  }
   0xd   :  { %2829 = vmatprep.subr.bf16.mxu0 %v3015_v10  ;;  %v3041_v36 = vld [vmem:[%s5050_s0 + $0x150] sm:$0xff]   ;;  %v3046_v38 = vld [vmem:[%s5050_s0 + $0x120] sm:$0xff]   ;;  %v3044_v39 = vld [vmem:[%s5050_s0 + $0x158] sm:$0xff]  }
   0xe   :  { %v3048_v40 = vld [vmem:[%s5050_s0 + $0xe0] sm:$0xff]   ;;  %v3049_v42 = vld [vmem:[%s5050_s0 + $0x128] sm:$0xff]   ;;  %v3052_v47 = vld [vmem:[%s5050_s0 + $0x130] sm:$0xff]  }
   0xf   :  { %333 = vmatpush1.bf16.msra.mxu1 %v3016_v11  ;;  %v3047_v41 = vld [vmem:[%s5050_s0 + $0x160] sm:$0xff]   ;;  %v3320_v45 = vld [vmem:[%s5051_s1 + $0x2c] ss:$16 sps:$4 sm:$0xff]   ;;  %v3336_v48 = vld [vmem:[%s5051_s1 + $0x28] ss:$16 sps:$4 sm:$0xff]  }
  0x10   :  { %2830 = vmatpush3.bf16.msra.mxu0 %v3017_v12  ;;  %334 = vmatprep.subr.bf16.mxu1 %v3118_v0  ;;  %v3310_v43 = vld [vmem:[%s5051_s1 + $0x24] ss:$16 sps:$4 sm:$0xff]   ;;  %v3315_v44 = vld [vmem:[%s5051_s1 + $0x20] ss:$16 sps:$4 sm:$0xff]   ;;  %v3051_v46 = vld [vmem:[%s5050_s0 + $0xe8] sm:$0xff]  }
  0x11   :  { %2831 = vmatprep.subr.bf16.mxu0 %v3018_v13  ;;  %v3050_v49 = vld [vmem:[%s5050_s0 + $0x168] sm:$0xff]   ;;  %v3054_v50 = vld [vmem:[%s5050_s0 + $0xf0] sm:$0xff]   ;;  %v3060_v51 = vld [vmem:[%s5050_s0 + $0x138] sm:$0xff]  }
  0x12   :  { %v3053_v52 = vld [vmem:[%s5050_s0 + $0x170] sm:$0xff]   ;;  %v3063_v53 = vld [vmem:[%s5050_s0 + $0xf8] sm:$0xff]   ;;  %v3064_v54 = vld [vmem:[%s5050_s0 + $0x140] sm:$0xff]  }
  0x13   :  { %335 = vmatpush1.bf16.msra.mxu1 %v3019_v14  ;;  %v3061_v55 = vld [vmem:[%s5050_s0 + $0x178] sm:$0xff]   ;;  %v3066_v56 = vld [vmem:[%s5050_s0 + $0x100] sm:$0xff]   ;;  %v3068_v57 = vld [vmem:[%s5050_s0 + $0x1d0] sm:$0xff]  }
  0x14   :  { %2832 = vmatpush3.bf16.msra.mxu0 %v3020_v15  ;;  %336 = vmatprep.subr.bf16.mxu1 %v3118_v0  ;;  %v3065_v58 = vld [vmem:[%s5050_s0 + $0x180] sm:$0xff]   ;;  %v3070_v59 = vld [vmem:[%s5050_s0 + $0x190] sm:$0xff]   ;;  %v3071_v60 = vld [vmem:[%s5050_s0 + $0x1d8] sm:$0xff]  }
  0x15   :  { %2833 = vmatprep.subr.bf16.mxu0 %v3021_v16  ;;  %v3067_v61 = vld [vmem:[%s5050_s0 + $0x188] sm:$0xff]   ;;  %v3073_v62 = vld [vmem:[%s5050_s0 + $0x198] sm:$0xff]   ;;  %v3074_v63 = vld [vmem:[%s5050_s0 + $0x1e0] sm:$0xff]  }
  0x16   :  { %v3069_v1 = vld [vmem:[%s5050_s0 + $0x210] sm:$0xff]   ;;  %v3076_v2 = vld [vmem:[%s5050_s0 + $0x1a0] sm:$0xff]   ;;  %v3077_v3 = vld [vmem:[%s5050_s0 + $0x1e8] sm:$0xff]  }
  0x17   :  { %337 = vmatpush1.bf16.msra.mxu1 %v3022_v17  ;;  %v3072_v4 = vld [vmem:[%s5050_s0 + $0x218] sm:$0xff]   ;;  %v3079_v5 = vld [vmem:[%s5050_s0 + $0x1a8] sm:$0xff]   ;;  %v3080_v6 = vld [vmem:[%s5050_s0 + $0x1f0] sm:$0xff]  }
  0x18   :  { %2834 = vmatpush3.bf16.msra.mxu0 %v3023_v18  ;;  %338 = vmatprep.subr.bf16.mxu1 %v3118_v0  ;;  %v3075_v7 = vld [vmem:[%s5050_s0 + $0x220] sm:$0xff]   ;;  %v3082_v8 = vld [vmem:[%s5050_s0 + $0x1b0] sm:$0xff]   ;;  %v3083_v9 = vld [vmem:[%s5050_s0 + $0x1f8] sm:$0xff]  }
  0x19   :  { %2835 = vmatprep.subr.bf16.mxu0 %v3024_v19  ;;  %v3078_v10 = vld [vmem:[%s5050_s0 + $0x228] sm:$0xff]   ;;  %v3085_v11 = vld [vmem:[%s5050_s0 + $0x1b8] sm:$0xff]   ;;  %v3086_v12 = vld [vmem:[%s5050_s0 + $0x200] sm:$0xff]  }
  0x1a   :  { %v3081_v13 = vld [vmem:[%s5050_s0 + $0x230] sm:$0xff]   ;;  %v3088_v14 = vld [vmem:[%s5050_s0 + $0x1c0] sm:$0xff]   ;;  %v3089_v15 = vld [vmem:[%s5050_s0 + $0x208] sm:$0xff]  }
  0x1b   :  { %339 = vmatpush1.bf16.msra.mxu1 %v3025_v20  ;;  %v3084_v16 = vld [vmem:[%s5050_s0 + $0x238] sm:$0xff]   ;;  %v3091_v17 = vld [vmem:[%s5050_s0 + $0x1c8] sm:$0xff]   ;;  %v3087_v19 = vld [vmem:[%s5050_s0 + $0x240] sm:$0xff]  }
  0x1c   :  { %2836 = vmatpush3.bf16.msra.mxu0 %v3026_v21  ;;  %340 = vmatprep.subr.bf16.mxu1 %v3118_v0  ;;  %v3093_v18 = vld [vmem:[%s5050_s0 + $0x298] sm:$0xff]   ;;  %v3096_v21 = vld [vmem:[%s5050_s0 + $0x2a0] sm:$0xff]  }
  0x1d   :  { %2837 = vmatprep.subr.bf16.mxu0 %v3027_v23  ;;  %v3094_v20 = vld [vmem:[%s5050_s0 + $0x258] sm:$0xff]   ;;  %v3090_v23 = vld [vmem:[%s5050_s0 + $0x248] sm:$0xff]  }
  0x1f   :  { %341 = vmatpush1.bf16.msra.mxu1 %v3028_v24  ;;  %v3097_v24 = vld [vmem:[%s5050_s0 + $0x260] sm:$0xff]  }
  0x20   :  { %2838 = vmatpush3.bf16.msra.mxu0 %v3029_v26  ;;  %342 = vmatprep.subr.bf16.mxu1 %v3118_v0  ;;  %v3099_v26 = vld [vmem:[%s5050_s0 + $0x2a8] sm:$0xff]  }
  0x21   :  { %2851 = vmatprep.subr.bf16.mxu0 %v3037_v27  ;;  %v3092_v27 = vld [vmem:[%s5050_s0 + $0x250] sm:$0xff]  }
  0x23   :  { %310 = vmatmul.mubr.bf16.vlgmr.msra.gmra.mrb[0].mxu0 %v3255_v28  ;;  %343 = vmatpush1.bf16.msra.mxu1 %v3033_v29  ;;  %v3100_v29 = vld [vmem:[%s5050_s0 + $0x268] sm:$0xff]  }
  0x24   :  { %625 = vmatprep.subr.bf16.mxu1 %v3118_v0  ;;  %2852 = vmatpush3.bf16.msra.mxu0 %v3039_v30  ;;  %v1284_v30 = vld [vmem:[%s5052_s2] sm:$0xff] }
  0x25   :  { %2853 = vmatprep.subr.bf16.mxu0 %v3040_v31  ;;  %317 = vmatprep.mubr.bf16.mxu0 %v3310_v43  ;;  %v3102_v31 = vld [vmem:[%s5050_s0 + $0x2b0] sm:$0xff]  }
  0x26   :  { %359 = vmatmul.mubr.bf16.vlgmr.msra.gmra.mrb[0].mxu1 %v3270_v32  ;;  %1290 = vperm.xlu0 %3004, %v1284_v30   ;;  %v2414_v30 = vld [vmem:[%s5054_s4 + $0x50] sm:$0xff] }
  0x27   :  { %626 = vmatpush1.bf16.msra.mxu1 %v3038_v33  ;;  %2588 = vmatprep.mubr.msk.bf16.mxu1 %vm270_vm0, %v3320_v45  ;;  %v1286_v33 = vld [vmem:[%s5052_s2 + $0x10] sm:$0xff] }
  0x28   :  { %627 = vmatprep.subr.bf16.mxu1 %v3118_v0  ;;  %2854 = vmatpush3.bf16.msra.mxu0 %v3042_v34  ;;  %v3095_v34 = vld [vmem:[%s5050_s0 + $0x2d8] sm:$0xff]  }
  0x29   :  { %2855 = vmatprep.subr.bf16.mxu0 %v3043_v35  ;;  %1300 = vperm.xlu1 %3005, %v1286_v33   ;;  %v3103_v35 = vld [vmem:[%s5050_s0 + $0x270] sm:$0xff]  }
  0x2b   :  { %628 = vmatpush1.bf16.msra.mxu1 %v3041_v36  ;;  %318 = vmatmul.mubr.bf16.gmra.mrb[4].mxu0 %v3315_v44  ;;  %v1285_v36 = vld [vmem:[%s5052_s2 + $0x8] sm:$0xff] }
  0x2c   :  { %629 = vmatprep.subr.bf16.mxu1 %v3118_v0  ;;  %2856 = vmatpush3.bf16.msra.mxu0 %v3045_v37  ;;  %v3105_v37 = vld [vmem:[%s5050_s0 + $0x2b8] sm:$0xff]  }
  0x2d   :  { %2857 = vmatprep.subr.bf16.mxu0 %v3046_v38  ;;  %608 = vmatprep.mubr.bf16.mxu0 %v3229_v22  ;;  %v1287_v38 = vld [vmem:[%s5052_s2 + $0x18] sm:$0xff] }
  0x2e   :  { %367 = vmatmul.mubr.bf16.gmra.mrb[4].mxu1 %v3336_v48  ;;  %1295 = vperm.xlu0 %3004, %v1285_v36  }
  0x2f   :  { %630 = vmatpush1.bf16.msra.mxu1 %v3044_v39  ;;  %2664 = vmatprep.mubr.msk.bf16.mxu1 %vm270_vm0, %v3241_v25  ;;  %v3106_v39 = vld [vmem:[%s5050_s0 + $0x278] sm:$0xff]  }
  0x30   :  { %631 = vmatprep.subr.bf16.mxu1 %v3118_v0  ;;  %2858 = vmatpush3.bf16.msra.mxu0 %v3048_v40  ;;  %v2417_v40 = vld [vmem:[%s5053_s5] sm:$0xff] }
  0x31   :  { %2859 = vmatprep.subr.bf16.mxu0 %v3049_v42  ;;  %1305 = vperm.xlu1 %3005, %v1287_v38   ;;  %v3101_v42 = vld [vmem:[%s5050_s0 + $0x2e8] sm:$0xff]  }
  0x32   :  { %2421 = vperm.xlu0 %3004, %v2417_v40  }
  0x33   :  { %632 = vmatpush1.bf16.msra.mxu1 %v3047_v41  ;;  %v3108_v41 = vld [vmem:[%s5050_s0 + $0x2c0] sm:$0xff]  }
  0x34   :  { %633 = vmatprep.subr.bf16.mxu1 %v3118_v0  ;;  %2860 = vmatpush3.bf16.msra.mxu0 %v3051_v46  ;;  %v3109_v46 = vld [vmem:[%s5050_s0 + $0x280] sm:$0xff]  }
  0x35   :  { %2861 = vmatprep.subr.bf16.mxu0 %v3052_v47  ;;  %v3111_v47 = vld [vmem:[%s5050_s0 + $0x2c8] sm:$0xff]  }
  0x37   :  { %634 = vmatpush1.bf16.msra.mxu1 %v3050_v49  ;;  %v3104_v49 = vld [vmem:[%s5050_s0 + $0x2f0] sm:$0xff]  }
  0x38   :  { %635 = vmatprep.subr.bf16.mxu1 %v3118_v0  ;;  %2862 = vmatpush3.bf16.msra.mxu0 %v3054_v50  ;;  %v3112_v50 = vld [vmem:[%s5050_s0 + $0x288] sm:$0xff]  }
  0x39   :  { %2863 = vmatprep.subr.bf16.mxu0 %v3060_v51  ;;  %v3114_v51 = vld [vmem:[%s5050_s0 + $0x2d0] sm:$0xff]  }
  0x3b   :  { %636 = vmatpush1.bf16.msra.mxu1 %v3053_v52  ;;  %v3107_v52 = vld [vmem:[%s5050_s0 + $0x2f8] sm:$0xff]  }
  0x3c   :  { %637 = vmatprep.subr.bf16.mxu1 %v3118_v0  ;;  %2864 = vmatpush3.bf16.msra.mxu0 %v3063_v53  ;;  %v3115_v53 = vld [vmem:[%s5050_s0 + $0x290] sm:$0xff]  }
  0x3d   :  { %2865 = vmatprep.subr.bf16.mxu0 %v3064_v54  ;;  %v3110_v54 = vld [vmem:[%s5050_s0 + $0x300] sm:$0xff]  }
  0x3f   :  { %638 = vmatpush1.bf16.msra.mxu1 %v3061_v55  ;;  %v3113_v55 = vld [vmem:[%s5050_s0 + $0x308] sm:$0xff]  }
  0x40   :  { %639 = vmatprep.subr.bf16.mxu1 %v3118_v0  ;;  %2866 = vmatpush3.bf16.msra.mxu0 %v3066_v56  ;;  %v3116_v56 = vld [vmem:[%s5050_s0 + $0x310] sm:$0xff]  }
  0x41   :  { %2879 = vmatprep.subr.bf16.mxu0 %v3068_v57  ;;  %v3117_v57 = vld [vmem:[%s5050_s0 + $0x318] sm:$0xff]  }
  0x43   :  { %640 = vmatpush1.bf16.msra.mxu1 %v3065_v58  ;;  %609 = vmatmul.mubr.bf16.vlgmr.msra.gmra.mrb[8].mxu0 %v3255_v28 }
  0x44   :  { %641 = vmatprep.subr.bf16.mxu1 %v3118_v0  ;;  %2880 = vmatpush3.bf16.msra.mxu0 %v3070_v59 }
  0x45   :  { %616 = vmatprep.mubr.bf16.mxu0 %v3310_v43  ;;  %2881 = vmatprep.subr.bf16.mxu0 %v3071_v60 }
  0x47   :  { %642 = vmatpush1.bf16.msra.mxu1 %v3067_v61 }
  0x48   :  { %928 = vmatprep.subr.bf16.mxu1 %v3118_v0  ;;  %2882 = vmatpush3.bf16.msra.mxu0 %v3073_v62 }
  0x49   :  { %2883 = vmatprep.subr.bf16.mxu0 %v3074_v63 }
  0x4a   :  { %658 = vmatmul.mubr.bf16.vlgmr.msra.gmra.mrb[8].mxu1 %v3270_v32 }
  0x4b   :  { %929 = vmatpush1.bf16.msra.mxu1 %v3069_v1  ;;  %617 = vmatmul.mubr.bf16.gmra.mrb[12].mxu0 %v3315_v44 }
  0x4c   :  { %930 = vmatprep.subr.bf16.mxu1 %v3118_v0  ;;  %2665 = vmatprep.mubr.msk.bf16.mxu1 %vm270_vm0, %v3320_v45 }
  0x4d   :  { %2884 = vmatpush3.bf16.msra.mxu0 %v3076_v2  ;;  %911 = vmatprep.mubr.bf16.mxu0 %v3229_v22 }
  0x4e   :  { %2885 = vmatprep.subr.bf16.mxu0 %v3077_v3 }
  0x4f   :  { %931 = vmatpush1.bf16.msra.mxu1 %v3072_v4  ;;  %v2407_v4 = vld [vmem:[%s5054_s4 + $0x18] sm:$0xff] }
  0x50   :  { %932 = vmatprep.subr.bf16.mxu1 %v3118_v0 }
  0x51   :  { %2886 = vmatpush3.bf16.msra.mxu0 %v3079_v5 }
  0x52   :  { %666 = vmatmul.mubr.bf16.gmra.mrb[12].mxu1 %v3336_v48  ;;  %2887 = vmatprep.subr.bf16.mxu0 %v3080_v6  ;;  %v2408_v6 = vld [vmem:[%s5054_s4 + $0x20] sm:$0xff] }
  0x53   :  { %933 = vmatpush1.bf16.msra.mxu1 %v3075_v7  ;;  %2741 = vmatprep.mubr.msk.bf16.mxu1 %vm270_vm0, %v3241_v25  ;;  %v2409_v7 = vld [vmem:[%s5054_s4 + $0x28] sm:$0xff] }
  0x54   :  { %934 = vmatprep.subr.bf16.mxu1 %v3118_v0 }
  0x55   :  { %2888 = vmatpush3.bf16.msra.mxu0 %v3082_v8  ;;  %v2987_v8 = vpack.c.bf16 %v2409_v7, %v2408_v6 }
  0x56   :  { %2889 = vmatprep.subr.bf16.mxu0 %v3083_v9  ;;  %v2410_v9 = vld [vmem:[%s5054_s4 + $0x30] sm:$0xff] }
  0x57   :  { %935 = vmatpush1.bf16.msra.mxu1 %v3078_v10  ;;  %v2411_v10 = vld [vmem:[%s5054_s4 + $0x38] sm:$0xff] }
  0x58   :  { %936 = vmatprep.subr.bf16.mxu1 %v3118_v0 }
  0x59   :  { %2890 = vmatpush3.bf16.msra.mxu0 %v3085_v11 }
  0x5a   :  { %2891 = vmatprep.subr.bf16.mxu0 %v3086_v12 }
  0x5b   :  { %937 = vmatpush1.bf16.msra.mxu1 %v3081_v13 }
  0x5c   :  { %938 = vmatprep.subr.bf16.mxu1 %v3118_v0 }
  0x5d   :  { %2892 = vmatpush3.bf16.msra.mxu0 %v3088_v14 }
  0x5e   :  { %2893 = vmatprep.subr.bf16.mxu0 %v3089_v15  ;;  %v2991_v15 = vpack.c.bf16 %v2411_v10, %v2410_v9 }
  0x5f   :  { %939 = vmatpush1.bf16.msra.mxu1 %v3084_v16 }
  0x60   :  { %940 = vmatprep.subr.bf16.mxu1 %v3118_v0 }
  0x61   :  { %2894 = vmatpush3.bf16.msra.mxu0 %v3091_v17 }
  0x62   :  { %2907 = vmatprep.subr.bf16.mxu0 %v3093_v18  ;;  %v2412_v18 = vld [vmem:[%s5054_s4 + $0x40] sm:$0xff] }
  0x63   :  { %941 = vmatpush1.bf16.msra.mxu1 %v3087_v19  ;;  %v2413_v19 = vld [vmem:[%s5054_s4 + $0x48] sm:$0xff] }
  0x64   :  { %942 = vmatprep.subr.bf16.mxu1 %v3118_v0  ;;  %912 = vmatmul.mubr.bf16.vlgmr.msra.gmra.mrb[16].mxu0 %v3255_v28 }
  0x65   :  { %2908 = vmatpush3.bf16.msra.mxu0 %v3094_v20  ;;  %919 = vmatprep.mubr.bf16.mxu0 %v3310_v43 }
  0x66   :  { %2909 = vmatprep.subr.bf16.mxu0 %v3096_v21 }
  0x67   :  { %943 = vmatpush1.bf16.msra.mxu1 %v3090_v23 }
  0x68   :  { %944 = vmatprep.subr.bf16.mxu1 %v3118_v0 }
  0x69   :  { %2910 = vmatpush3.bf16.msra.mxu0 %v3097_v24 }
  0x6a   :  { %2911 = vmatprep.subr.bf16.mxu0 %v3099_v26 }
  0x6b   :  { %945 = vmatpush1.bf16.msra.mxu1 %v3092_v27 }
  0x6c   :  { %1231 = vmatprep.subr.bf16.mxu1 %v3118_v0  ;;  %920 = vmatmul.mubr.bf16.gmra.mrb[20].mxu0 %v3315_v44 }
  0x6d   :  { %2912 = vmatpush3.bf16.msra.mxu0 %v3100_v29  ;;  %1214 = vmatprep.mubr.bf16.mxu0 %v3229_v22  ;;  %v3098_v22 = vld [vmem:[%s5050_s0 + $0x2e0] sm:$0xff]   ;;  %v2995_v29 = vpack.c.bf16 %v2413_v19, %v2412_v18 }
  0x6e   :  { %961 = vmatmul.mubr.bf16.vlgmr.msra.gmra.mrb[16].mxu1 %v3270_v32  ;;  %2913 = vmatprep.subr.bf16.mxu0 %v3102_v31  ;;  %v2415_v31 = vld [vmem:[%s5054_s4 + $0x58] sm:$0xff] }
  0x6f   :  { %1232 = vmatpush1.bf16.msra.mxu1 %v3095_v34  ;;  %2742 = vmatprep.mubr.msk.bf16.mxu1 %vm270_vm0, %v3320_v45  ;;  %v2999_v33 = vpack.c.bf16 %v2415_v31, %v2414_v30  ;;  %v2416_v34 = vld [vmem:[%s5054_s4 + $0x60] sm:$0x3] }
  0x70   :  { %1233 = vmatprep.subr.bf16.mxu1 %v3118_v0 }
  0x71   :  { %2914 = vmatpush3.bf16.msra.mxu0 %v3103_v35 }
  0x72   :  { %2915 = vmatprep.subr.bf16.mxu0 %v3105_v37 }
  0x73   :  { %1234 = vmatpush1.bf16.msra.mxu1 %v3098_v22 }
  0x74   :  { %1235 = vmatprep.subr.bf16.mxu1 %v3118_v0 }
  0x75   :  { %2916 = vmatpush3.bf16.msra.mxu0 %v3106_v39 }
  0x76   :  { %969 = vmatmul.mubr.bf16.gmra.mrb[20].mxu1 %v3336_v48  ;;  %2917 = vmatprep.subr.bf16.mxu0 %v3108_v41 }
  0x77   :  { %1236 = vmatpush1.bf16.msra.mxu1 %v3101_v42  ;;  %2818 = vmatprep.mubr.msk.bf16.mxu1 %vm270_vm0, %v3241_v25  ;;  %v2418_v25 = vld [vmem:[%s5053_s5 + $0x8] sm:$0x3] }
  0x78   :  { %1237 = vmatprep.subr.bf16.mxu1 %v3118_v0  ;;  %2426 = vperm.xlu1 %3005, %v2418_v25  }
  0x79   :  { %2918 = vmatpush3.bf16.msra.mxu0 %v3109_v46 }
  0x7a   :  { %2919 = vmatprep.subr.bf16.mxu0 %v3111_v47 }
  0x7b   :  { %1238 = vmatpush1.bf16.msra.mxu1 %v3104_v49 }
  0x7c   :  { %1239 = vmatprep.subr.bf16.mxu1 %v3118_v0 }
  0x7d   :  { %2920 = vmatpush3.bf16.msra.mxu0 %v3112_v50 }
  0x7e   :  { %2921 = vmatprep.subr.bf16.mxu0 %v3114_v51 }
  0x7f   :  { %1240 = vmatpush1.bf16.msra.mxu1 %v3107_v52 }
  0x80   :  { %1241 = vmatprep.subr.bf16.mxu1 %v3118_v0 }
  0x81   :  { %2922 = vmatpush3.bf16.msra.mxu0 %v3115_v53 }
  0x83   :  { %1242 = vmatpush1.bf16.msra.mxu1 %v3110_v54 }
  0x84   :  { %1243 = vmatprep.subr.bf16.mxu1 %v3118_v0  ;;  %1215 = vmatmul.mubr.bf16.vlgmr.msra.gmra.mrb[24].mxu0 %v3255_v28 }
  0x85   :  { %1222 = vmatprep.mubr.bf16.mxu0 %v3310_v43 }
  0x87   :  { %1244 = vmatpush1.bf16.msra.mxu1 %v3113_v55 }
  0x88   :  { %1245 = vmatprep.subr.bf16.mxu1 %v3118_v0 }
  0x8b   :  { %1246 = vmatpush1.bf16.msra.mxu1 %v3116_v56 }
  0x8c   :  { %1247 = vmatprep.subr.bf16.mxu1 %v3118_v0  ;;  %1223 = vmatmul.mubr.bf16.gmra.mrb[28].mxu0 %v3315_v44 }
  0x8f   :  { %1248 = vmatpush1.bf16.msra.mxu1 %v3117_v57 }
  0x92   :  { %1264 = vmatmul.mubr.bf16.vlgmr.msra.gmra.mrb[24].mxu1 %v3270_v32  ;;  %v2404_v32 = vld [vmem:[%s5054_s4] sm:$0xff] }
  0x93   :  { %2819 = vmatprep.mubr.msk.bf16.mxu1 %vm270_vm0, %v3320_v45  ;;  %v2405_v45 = vld [vmem:[%s5054_s4 + $0x8] sm:$0xff] }
  0x94   :  { %v2979_v3 = vpack.c.bf16 %v2405_v45, %v2404_v32 }
  0x96   :  { %2980 = vmatprep.subr.bf16.mxu0 %v2979_v3 }
  0x97   :  { %2982 = vmatpush3.bf16.msra.mxu0 %v2979_v3 }
  0x9a   :  { %1272 = vmatmul.mubr.bf16.gmra.mrb[28].mxu1 %v3336_v48  ;;  %v2406_v48 = vld [vmem:[%s5054_s4 + $0x10] sm:$0xff] }
  0x9b   :  { %v2983_v5 = vpack.c.bf16 %v2407_v4, %v2406_v48 }
  0x9d   :  { %2984 = vmatprep.subr.bf16.mxu0 %v2983_v5 }
  0x9e   :  { %2986 = vmatpush3.bf16.msra.mxu0 %v2983_v5 }
  0x9f   :  { %2988 = vmatprep.subr.bf16.mxu0 %v2987_v8 }
  0xa2   :  { %2990 = vmatpush3.bf16.msra.mxu0 %v2987_v8 }
  0xa3   :  { %2992 = vmatprep.subr.bf16.mxu0 %v2991_v15 }
  0xa6   :  { %2994 = vmatpush3.bf16.msra.mxu0 %v2991_v15 }
  0xa7   :  { %2996 = vmatprep.subr.bf16.mxu0 %v2995_v29 }
  0xaa   :  { %2998 = vmatpush3.bf16.msra.mxu0 %v2995_v29 }
  0xab   :  { %3000 = vmatprep.subr.bf16.mxu0 %v2999_v33 }
  0xae   :  { %3002 = vmatpush3.bf16.msra.mxu0 %v2999_v33 }
  0xaf   :  { %2974 = vmatprep.subr.msk.mxu0 %vm2467_vm1, %v2416_v34 }
  0xb2   :  { %2975 = vmatpush3.msk.msra.mxu0 %vm2467_vm1, %v2416_v34 }
  0xf6   :  { %v2839_v28 = vpop.f32.mrb[0].mxu0 }
  0xf7   :  { %v2840_v43 = vpop.f32.mrb[1].mxu0 }
  0xf8   :  { %v2841_v58 = vadd.f32 %v2840_v43, %v2839_v28  ;;  %v2842_v59 = vpop.f32.mrb[2].mxu0 }
  0xf9   :  { %v2843_v60 = vpop.f32.mrb[3].mxu0  ;;  %v360_v61 = vpop.f32.mrb[0].mxu1 }
  0xfa   :  { %v2844_v62 = vadd.f32 %v2843_v60, %v2842_v59  ;;  %v3590_v63 = vadd.f32 %v2841_v58, %v360_v61  ;;  %v362_v0 = vpop.f32.mrb[1].mxu1 }
  0xfb   :  { %v363_v1 = vpop.f32.mrb[2].mxu1 }
  0xfc   :  { %v3592_v44 = vadd.f32 %v2844_v62, %v363_v1  ;;  %v365_v2 = vpop.f32.mrb[3].mxu1 }
  0xfe   :  { %v2845_v11 = vpop.f32.mrb[4].mxu0 }
  0xff   :  { %v2846_v12 = vpop.f32.mrb[5].mxu0 }
 0x100   :  { %v2847_v13 = vadd.f32 %v2846_v12, %v2845_v11  ;;  %v2848_v14 = vpop.f32.mrb[6].mxu0 }
 0x101   :  { %v368_v16 = vpop.f32.mrb[4].mxu1  ;;  %v2849_v17 = vpop.f32.mrb[7].mxu0 }
 0x102   :  { %v3624_v20 = vadd.f32 %v2847_v13, %v368_v16  ;;  %v2850_v21 = vadd.f32 %v2849_v17, %v2848_v14  ;;  %v370_v23 = vpop.f32.mrb[5].mxu1 }
 0x103   :  { %v371_v24 = vpop.f32.mrb[6].mxu1 }
 0x104   :  { %v3626_v26 = vadd.f32 %v2850_v21, %v371_v24  ;;  %v373_v27 = vpop.f32.mrb[7].mxu1 }
 0x116   :  { %v2867_v35 = vpop.f32.mrb[8].mxu0 }
 0x117   :  { %v2868_v36 = vpop.f32.mrb[9].mxu0 }
 0x118   :  { %v2869_v37 = vadd.f32 %v2868_v36, %v2867_v35  ;;  %v2870_v38 = vpop.f32.mrb[10].mxu0  ;;  %v1326_v35 = vlaneseq }
 0x119   :  { %v2871_v22 = vpop.f32.mrb[11].mxu0 }
 0x11a   :  { %v2872_v39 = vadd.f32 %v2871_v22, %v2870_v38 }
 0x11d   :  { %v659_v40 = vpop.f32.mrb[8].mxu1 }
 0x11e   :  { %v660_v41 = vadd.f32 %v2869_v37, %v659_v40  ;;  %v661_v42 = vpop.f32.mrb[9].mxu1  ;;  %v2873_v46 = vpop.f32.mrb[12].mxu0 }
 0x11f   :  { %v662_v47 = vpop.f32.mrb[10].mxu1  ;;  %v2874_v49 = vpop.f32.mrb[13].mxu0 }
 0x120   :  { %v674_v50 = vmax.f32 %v3590_v63, %v660_v41  ;;  %v663_v51 = vadd.f32 %v2872_v39, %v662_v47  ;;  %v664_v52 = vpop.f32.mrb[11].mxu1  ;;  %v2875_v25 = vadd.f32 %v2874_v49, %v2873_v46  ;;  %v2876_v53 = vpop.f32.mrb[14].mxu0  ;;  %v1327_v41 = vshrl.u32 %v1326_v35, 7  ;;  %v1352_v35 = vld [vmem:[%s5055_s3 + $0x41] sm:$0x1] }
 0x121   :  { %v2877_v54 = vpop.f32.mrb[15].mxu0  ;;  %v1291_v39 = vpop.permute.xlu0 %1290 }
 0x122   :  { %v675_v55 = vmax.f32 %v3592_v44, %v663_v51  ;;  %v2878_v56 = vadd.f32 %v2877_v54, %v2876_v53  ;;  %v3645_v52 = vsub.s32 0, %v1327_v41  ;;  %v3649_v54 = vsub.s32 2, %v1327_v41 }
 0x125   :  { %v667_v57 = vpop.f32.mrb[12].mxu1 }
 0x126   :  { %v668_v28 = vadd.f32 %v2875_v25, %v667_v57  ;;  %v669_v43 = vpop.f32.mrb[13].mxu1  ;;  %v3647_v25 = vsub.s32 1, %v1327_v41  ;;  %v1296_v57 = vpop.permute.xlu0 %1295 }
 0x127   :  { %v670_v58 = vpop.f32.mrb[14].mxu1  ;;  %v3655_v43 = vsub.s32 5, %v1327_v41 }
 0x128   :  { %v676_v59 = vmax.f32 %v3624_v20, %v668_v28  ;;  %v671_v60 = vadd.f32 %v2878_v56, %v670_v58  ;;  %v672_v61 = vpop.f32.mrb[15].mxu1  ;;  %v3653_v28 = vsub.s32 4, %v1327_v41  ;;  %v3657_v58 = vsub.s32 6, %v1327_v41 }
 0x12a   :  { %v677_v62 = vmax.f32 %v3626_v26, %v671_v60 }
 0x137   :  { %v2895_v0 = vpop.f32.mrb[16].mxu0 }
 0x138   :  { %v2896_v63 = vpop.f32.mrb[17].mxu0 }
 0x139   :  { %v2897_v1 = vadd.f32 %v2896_v63, %v2895_v0  ;;  %v2898_v2 = vpop.f32.mrb[18].mxu0  ;;  %v1301_v63 = vpop.permute.xlu1 %1300 }
 0x13a   :  { %v2899_v32 = vpop.f32.mrb[19].mxu0 }
 0x13b   :  { %v2900_v45 = vadd.f32 %v2899_v32, %v2898_v2  ;;  %v1318_v2 = vld [vmem:[%s5055_s3 + $0x40] sm:$0x1] }
 0x13f   :  { %v2901_v48 = vpop.f32.mrb[20].mxu0 }
 0x140   :  { %v2902_v3 = vpop.f32.mrb[21].mxu0 }
 0x141   :  { %v962_v44 = vpop.f32.mrb[16].mxu1  ;;  %v2903_v4 = vadd.f32 %v2902_v3, %v2901_v48  ;;  %v2904_v5 = vpop.f32.mrb[22].mxu0 }
 0x142   :  { %v963_v6 = vadd.f32 %v2897_v1, %v962_v44  ;;  %v964_v7 = vpop.f32.mrb[17].mxu1  ;;  %v2905_v8 = vpop.f32.mrb[23].mxu0  ;;  %v1317_v1 = vld [vmem:[%s5055_s3 + $0x20] sm:$0x1] }
 0x143   :  { %v965_v9 = vpop.f32.mrb[18].mxu1  ;;  %v2906_v10 = vadd.f32 %v2905_v8, %v2904_v5  ;;  %v1320_v5 = vld [vmem:[%s5055_s3 + $0x80] sm:$0x1] }
 0x144   :  { %v977_v11 = vmax.f32 %v674_v50, %v963_v6  ;;  %v966_v12 = vadd.f32 %v2900_v45, %v965_v9  ;;  %v967_v13 = vpop.f32.mrb[19].mxu1 }
 0x146   :  { %v978_v14 = vmax.f32 %v675_v55, %v966_v12  ;;  %v3651_v55 = vsub.s32 3, %v1327_v41 }
 0x149   :  { %v970_v15 = vpop.f32.mrb[20].mxu1 }
 0x14a   :  { %v971_v16 = vadd.f32 %v2903_v4, %v970_v15  ;;  %v972_v17 = vpop.f32.mrb[21].mxu1  ;;  %v1319_v4 = vld [vmem:[%s5055_s3 + $0x60] sm:$0x1] }
 0x14b   :  { %v973_v18 = vpop.f32.mrb[22].mxu1  ;;  %v1322_v17 = vld [vmem:[%s5055_s3 + $0xc0] sm:$0x1] }
 0x14c   :  { %v3641_v19 = vmax.f32 %v676_v59, %v971_v16  ;;  %v974_v20 = vadd.f32 %v2906_v10, %v973_v18  ;;  %v975_v21 = vpop.f32.mrb[23].mxu1  ;;  %v3659_v59 = vsub.s32 7, %v1327_v41  ;;  %v1321_v16 = vld [vmem:[%s5055_s3 + $0xa0] sm:$0x1]  ;;  %v1354_v41 = vld [vmem:[%s5055_s3 + $0x81] sm:$0x1] }
 0x14d   :  { %v1323_v18 = vld [vmem:[%s5055_s3 + $0xe0] sm:$0x1] }
 0x14e   :  { %v3643_v23 = vmax.f32 %v677_v62, %v974_v20  ;;  %v1316_v62 = vld [vmem:[%s5055_s3] sm:$0x1] }
 0x157   :  { %v2923_v24 = vpop.f32.mrb[24].mxu0 }
 0x158   :  { %v2924_v26 = vpop.f32.mrb[25].mxu0 }
 0x159   :  { %v2925_v27 = vadd.f32 %v2924_v26, %v2923_v24  ;;  %v2926_v29 = vpop.f32.mrb[26].mxu0 }
 0x15a   :  { %v2927_v30 = vpop.f32.mrb[27].mxu0 }
 0x15b   :  { %v2928_v31 = vadd.f32 %v2927_v30, %v2926_v29 }
 0x15f   :  { %v2929_v33 = vpop.f32.mrb[28].mxu0 }
 0x160   :  { %v2930_v34 = vpop.f32.mrb[29].mxu0 }
 0x161   :  { %v2931_v36 = vadd.f32 %v2930_v34, %v2929_v33  ;;  %v2932_v37 = vpop.f32.mrb[30].mxu0  ;;  %v1350_v33 = vld [vmem:[%s5055_s3 + $0x1] sm:$0x1] }
 0x162   :  { %v2933_v38 = vpop.f32.mrb[31].mxu0  ;;  %v1351_v34 = vld [vmem:[%s5055_s3 + $0x21] sm:$0x1] }
 0x163   :  { %v2934_v22 = vadd.f32 %v2933_v38, %v2932_v37 }
 0x165   :  { %v1265_v40 = vpop.f32.mrb[24].mxu1 }
 0x166   :  { %v1266_v42 = vadd.f32 %v2925_v27, %v1265_v40  ;;  %v1267_v46 = vpop.f32.mrb[25].mxu1  ;;  %v1353_v40 = vld [vmem:[%s5055_s3 + $0x61] sm:$0x1] }
 0x167   :  { %v1268_v47 = vpop.f32.mrb[26].mxu1 }
 0x168   :  { %v1280_v49 = vmax.f32 %v977_v11, %v1266_v42  ;;  %v1269_v50 = vadd.f32 %v2928_v31, %v1268_v47  ;;  %v1270_v51 = vpop.f32.mrb[27].mxu1 }
 0x169   :  { %v1356_v51 = vld [vmem:[%s5055_s3 + $0xc1] sm:$0x1] }
 0x16a   :  { %v1308_v53 = vadd.f32 %v1291_v39, %v1280_v49  ;;  %v1281_v56 = vmax.f32 %v978_v14, %v1269_v50  ;;  %v1306_v39 = vpop.permute.xlu1 %1305  ;;  %v1355_v50 = vld [vmem:[%s5055_s3 + $0xa1] sm:$0x1] }
 0x16c   :  { %v1312_v60 = vmax.f32 %v1308_v53, 0.0  ;;  %v1309_v61 = vadd.f32 %v1296_v57, %v1281_v56  ;;  %v1357_v53 = vld [vmem:[%s5055_s3 + $0xe1] sm:$0x1] }
 0x16d   :  { %v1273_v0 = vpop.f32.mrb[28].mxu1 }
 0x16e   :  { %v3671_v32 = vrot.slane %v1312_v60, %v3645_v52  ;;  %v3674_v45 = vrot.slane %v1312_v60, %v3647_v25  ;;  %v3677_v48 = vrot.slane %v1312_v60, %v3649_v54  ;;  %v3680_v3 = vrot.slane %v1312_v60, %v3651_v55  ;;  %v1275_v44 = vpop.f32.mrb[29].mxu1 }
 0x16f   :  { %v3689_v6 = vrot.slane %v1312_v60, %v3653_v28  ;;  %v3692_v7 = vrot.slane %v1312_v60, %v3655_v43  ;;  %v3695_v8 = vrot.slane %v1312_v60, %v3657_v58  ;;  %v3698_v9 = vrot.slane %v1312_v60, %v3659_v59  ;;  %v1276_v10 = vpop.f32.mrb[30].mxu1 }
 0x170   :  { %v1313_v11 = vmax.f32 %v1309_v61, 0.0  ;;  %v1274_v12 = vadd.f32 %v2931_v36, %v1273_v0  ;;  %v1277_v13 = vadd.f32 %v2934_v22, %v1276_v10  ;;  %v1278_v14 = vpop.f32.mrb[31].mxu1  ;;  %v1330_v15 = vmul.f32 %v3671_v32, %v1316_v62 }
 0x171   :  { %v1331_v20 = vmul.f32 %v3671_v32, %v1317_v1  ;;  %v1332_v21 = vmul.f32 %v3671_v32, %v1318_v2  ;;  %v1333_v24 = vmul.f32 %v3671_v32, %v1319_v4  ;;  %v1334_v26 = vmul.f32 %v3671_v32, %v1320_v5 }
 0x172   :  { %v3715_v27 = vrot.slane %v1313_v11, %v3645_v52  ;;  %v3718_v29 = vrot.slane %v1313_v11, %v3647_v25  ;;  %v3721_v30 = vrot.slane %v1313_v11, %v3649_v54  ;;  %v3724_v31 = vrot.slane %v1313_v11, %v3651_v55 }
 0x173   :  { %v3736_v36 = vrot.slane %v1313_v11, %v3653_v28  ;;  %v3739_v37 = vrot.slane %v1313_v11, %v3655_v43  ;;  %v3742_v38 = vrot.slane %v1313_v11, %v3657_v58  ;;  %v3745_v22 = vrot.slane %v1313_v11, %v3659_v59 }
 0x174   :  { %v1282_v42 = vmax.f32 %v3641_v19, %v1274_v12  ;;  %v1283_v46 = vmax.f32 %v3643_v23, %v1277_v13  ;;  %v1335_v47 = vmul.f32 %v3671_v32, %v1321_v16  ;;  %v1336_v49 = vmul.f32 %v3671_v32, %v1322_v17 }
 0x175   :  { %v1337_v19 = vmul.f32 %v3671_v32, %v1323_v18  ;;  %v1364_v23 = vmul.f32 %v3674_v45, %v1350_v33  ;;  %v1365_v56 = vmul.f32 %v3674_v45, %v1351_v34  ;;  %v1366_v57 = vmul.f32 %v3674_v45, %v1352_v35  ;;  %v1385_v35 = vld [vmem:[%s5055_s3 + $0x22] sm:$0x1] }
 0x176   :  { %v1310_v60 = vadd.f32 %v1301_v63, %v1282_v42  ;;  %v1311_v61 = vadd.f32 %v1306_v39, %v1283_v46  ;;  %v1367_v62 = vmul.f32 %v3674_v45, %v1353_v40  ;;  %v1368_v0 = vmul.f32 %v3674_v45, %v1354_v41  ;;  %v1386_v39 = vld [vmem:[%s5055_s3 + $0x42] sm:$0x1] }
 0x177   :  { %v1369_v1 = vmul.f32 %v3674_v45, %v1355_v50  ;;  %v1370_v2 = vmul.f32 %v3674_v45, %v1356_v51  ;;  %v1371_v44 = vmul.f32 %v3674_v45, %v1357_v53  ;;  %v1374_v4 = vadd.f32 %v1364_v23, %v1330_v15  ;;  %v1384_v15 = vld [vmem:[%s5055_s3 + $0x2] sm:$0x1] }
 0x178   :  { %v1314_v5 = vmax.f32 %v1310_v60, 0.0  ;;  %v1315_v10 = vmax.f32 %v1311_v61, 0.0  ;;  %v1375_v11 = vadd.f32 %v1365_v56, %v1331_v20  ;;  %v1376_v12 = vadd.f32 %v1366_v57, %v1332_v21  ;;  %v1387_v40 = vld [vmem:[%s5055_s3 + $0x62] sm:$0x1] }
 0x179   :  { %v1377_v13 = vadd.f32 %v1367_v62, %v1333_v24  ;;  %v1378_v14 = vadd.f32 %v1368_v0, %v1334_v26  ;;  %v1379_v16 = vadd.f32 %v1369_v1, %v1335_v47  ;;  %v1380_v63 = vadd.f32 %v1370_v2, %v1336_v49  ;;  %v1388_v49 = vld [vmem:[%s5055_s3 + $0x82] sm:$0x1]  ;;  %v1420_v62 = vld [vmem:[%s5055_s3 + $0x43] sm:$0x1] }
 0x17a   :  { %v3776_v17 = vrot.slane %v1314_v5, %v3645_v52  ;;  %v3779_v18 = vrot.slane %v1314_v5, %v3647_v25  ;;  %v3782_v33 = vrot.slane %v1314_v5, %v3649_v54  ;;  %v3785_v34 = vrot.slane %v1314_v5, %v3651_v55  ;;  %v1389_v50 = vld [vmem:[%s5055_s3 + $0xa2] sm:$0x1]  ;;  %v1421_v0 = vld [vmem:[%s5055_s3 + $0x63] sm:$0x1] }
 0x17b   :  { %v3791_v20 = vrot.slane %v1314_v5, %v3653_v28  ;;  %v3794_v21 = vrot.slane %v1314_v5, %v3655_v43  ;;  %v3797_v24 = vrot.slane %v1314_v5, %v3657_v58  ;;  %v3800_v26 = vrot.slane %v1314_v5, %v3659_v59  ;;  %v1391_v53 = vld [vmem:[%s5055_s3 + $0xe2] sm:$0x1] }
 0x17c   :  { %v3812_v41 = vrot.slane %v1315_v10, %v3645_v52  ;;  %v3815_v42 = vrot.slane %v1315_v10, %v3647_v25  ;;  %v3818_v46 = vrot.slane %v1315_v10, %v3649_v54  ;;  %v3821_v47 = vrot.slane %v1315_v10, %v3651_v55  ;;  %v1390_v52 = vld [vmem:[%s5055_s3 + $0xc2] sm:$0x1] }
 0x17d   :  { %v3833_v25 = vrot.slane %v1315_v10, %v3653_v28  ;;  %v3836_v54 = vrot.slane %v1315_v10, %v3655_v43  ;;  %v3839_v55 = vrot.slane %v1315_v10, %v3657_v58  ;;  %v3842_v51 = vrot.slane %v1315_v10, %v3659_v59  ;;  %v1418_v43 = vld [vmem:[%s5055_s3 + $0x3] sm:$0x1] }
 0x17e   :  { %v1381_v23 = vadd.f32 %v1371_v44, %v1337_v19  ;;  %v1398_v56 = vmul.f32 %v3677_v48, %v1384_v15  ;;  %v1399_v57 = vmul.f32 %v3677_v48, %v1385_v35  ;;  %v1400_v28 = vmul.f32 %v3677_v48, %v1386_v39  ;;  %v1419_v19 = vld [vmem:[%s5055_s3 + $0x23] sm:$0x1] }
 0x17f   :  { %v1401_v58 = vmul.f32 %v3677_v48, %v1387_v40  ;;  %v1402_v59 = vmul.f32 %v3677_v48, %v1388_v49  ;;  %v1403_v60 = vmul.f32 %v3677_v48, %v1389_v50  ;;  %v1404_v61 = vmul.f32 %v3677_v48, %v1390_v52  ;;  %v1422_v10 = vld [vmem:[%s5055_s3 + $0x83] sm:$0x1] }
 0x180   :  { %v1405_v1 = vmul.f32 %v3677_v48, %v1391_v53  ;;  %v1408_v2 = vadd.f32 %v1398_v56, %v1374_v4  ;;  %v1409_v44 = vadd.f32 %v1399_v57, %v1375_v11  ;;  %v1410_v5 = vadd.f32 %v1400_v28, %v1376_v12  ;;  %v1423_v15 = vld [vmem:[%s5055_s3 + $0xa3] sm:$0x1]  ;;  %v1452_v56 = vld [vmem:[%s5055_s3 + $0x4] sm:$0x1] }
 0x181   :  { %v1424_v35 = vld [vmem:[%s5055_s3 + $0xc3] sm:$0x1]  ;;  %v1411_v39 = vadd.f32 %v1401_v58, %v1377_v13  ;;  %v1412_v40 = vadd.f32 %v1402_v59, %v1378_v14  ;;  %v1413_v49 = vadd.f32 %v1403_v60, %v1379_v16  ;;  %v1414_v50 = vadd.f32 %v1404_v61, %v1380_v63  ;;  %v1454_v57 = vld [vmem:[%s5055_s3 + $0x44] sm:$0x1] }
 0x182   :  { %v1425_v4 = vld [vmem:[%s5055_s3 + $0xe3] sm:$0x1]  ;;  %v1415_v11 = vadd.f32 %v1405_v1, %v1381_v23  ;;  %v1432_v12 = vmul.f32 %v3680_v3, %v1418_v43  ;;  %v1433_v52 = vmul.f32 %v3680_v3, %v1419_v19  ;;  %v1434_v53 = vmul.f32 %v3680_v3, %v1420_v62  ;;  %v1453_v23 = vld [vmem:[%s5055_s3 + $0x24] sm:$0x1] }
 0x183   :  { %v1435_v13 = vmul.f32 %v3680_v3, %v1421_v0  ;;  %v1436_v14 = vmul.f32 %v3680_v3, %v1422_v10  ;;  %v1437_v16 = vmul.f32 %v3680_v3, %v1423_v15  ;;  %v1438_v63 = vmul.f32 %v3680_v3, %v1424_v35  ;;  %v1455_v28 = vld [vmem:[%s5055_s3 + $0x64] sm:$0x1] }
 0x184   :  { %v1439_v43 = vmul.f32 %v3680_v3, %v1425_v4  ;;  %v1442_v58 = vadd.f32 %v1432_v12, %v1408_v2  ;;  %v1443_v59 = vadd.f32 %v1433_v52, %v1409_v44  ;;  %v1444_v60 = vadd.f32 %v1434_v53, %v1410_v5  ;;  %v1456_v61 = vld [vmem:[%s5055_s3 + $0x84] sm:$0x1]  ;;  %v1486_v12 = vld [vmem:[%s5055_s3 + $0x5] sm:$0x1] }
 0x185   :  { %v1457_v19 = vld [vmem:[%s5055_s3 + $0xa4] sm:$0x1]  ;;  %v1445_v0 = vadd.f32 %v1435_v13, %v1411_v39  ;;  %v1446_v1 = vadd.f32 %v1436_v14, %v1412_v40  ;;  %v1447_v10 = vadd.f32 %v1437_v16, %v1413_v49  ;;  %v1448_v15 = vadd.f32 %v1438_v63, %v1414_v50  ;;  %v1488_v52 = vld [vmem:[%s5055_s3 + $0x45] sm:$0x1] }
 0x186   :  { %v1458_v62 = vld [vmem:[%s5055_s3 + $0xc4] sm:$0x1]  ;;  %v1449_v44 = vadd.f32 %v1439_v43, %v1415_v11  ;;  %v1466_v5 = vmul.f32 %v3689_v6, %v1452_v56  ;;  %v1467_v35 = vmul.f32 %v3689_v6, %v1453_v23  ;;  %v1468_v4 = vmul.f32 %v3689_v6, %v1454_v57  ;;  %v1487_v11 = vld [vmem:[%s5055_s3 + $0x25] sm:$0x1] }
 0x187   :  { %v1459_v2 = vld [vmem:[%s5055_s3 + $0xe4] sm:$0x1]  ;;  %v1469_v39 = vmul.f32 %v3689_v6, %v1455_v28  ;;  %v1470_v40 = vmul.f32 %v3689_v6, %v1456_v61  ;;  %v1471_v49 = vmul.f32 %v3689_v6, %v1457_v19  ;;  %v1472_v50 = vmul.f32 %v3689_v6, %v1458_v62  ;;  %v1489_v53 = vld [vmem:[%s5055_s3 + $0x65] sm:$0x1] }
 0x188   :  { %v1473_v56 = vmul.f32 %v3689_v6, %v1459_v2  ;;  %v1476_v13 = vadd.f32 %v1466_v5, %v1442_v58  ;;  %v1477_v14 = vadd.f32 %v1467_v35, %v1443_v59  ;;  %v1478_v16 = vadd.f32 %v1468_v4, %v1444_v60  ;;  %v1490_v63 = vld [vmem:[%s5055_s3 + $0x85] sm:$0x1]  ;;  %v1520_v5 = vld [vmem:[%s5055_s3 + $0x6] sm:$0x1] }
 0x189   :  { %v1491_v23 = vld [vmem:[%s5055_s3 + $0xa5] sm:$0x1]  ;;  %v1479_v28 = vadd.f32 %v1469_v39, %v1445_v0  ;;  %v1480_v43 = vadd.f32 %v1470_v40, %v1446_v1  ;;  %v1481_v61 = vadd.f32 %v1471_v49, %v1447_v10  ;;  %v1482_v19 = vadd.f32 %v1472_v50, %v1448_v15  ;;  %v1522_v35 = vld [vmem:[%s5055_s3 + $0x46] sm:$0x1] }
 0x18a   :  { %v1492_v57 = vld [vmem:[%s5055_s3 + $0xc5] sm:$0x1]  ;;  %v1483_v59 = vadd.f32 %v1473_v56, %v1449_v44  ;;  %v1500_v60 = vmul.f32 %v3692_v7, %v1486_v12  ;;  %v1501_v62 = vmul.f32 %v3692_v7, %v1487_v11  ;;  %v1502_v2 = vmul.f32 %v3692_v7, %v1488_v52  ;;  %v1521_v44 = vld [vmem:[%s5055_s3 + $0x26] sm:$0x1] }
 0x18b   :  { %v1493_v58 = vld [vmem:[%s5055_s3 + $0xe5] sm:$0x1]  ;;  %v1503_v0 = vmul.f32 %v3692_v7, %v1489_v53  ;;  %v1504_v1 = vmul.f32 %v3692_v7, %v1490_v63  ;;  %v1505_v10 = vmul.f32 %v3692_v7, %v1491_v23  ;;  %v1506_v15 = vmul.f32 %v3692_v7, %v1492_v57  ;;  %v1523_v4 = vld [vmem:[%s5055_s3 + $0x66] sm:$0x1] }
 0x18c   :  { %v1507_v12 = vmul.f32 %v3692_v7, %v1493_v58  ;;  %v1510_v39 = vadd.f32 %v1500_v60, %v1476_v13  ;;  %v1511_v40 = vadd.f32 %v1501_v62, %v1477_v14  ;;  %v1512_v49 = vadd.f32 %v1502_v2, %v1478_v16  ;;  %v1524_v50 = vld [vmem:[%s5055_s3 + $0x86] sm:$0x1]  ;;  %v1554_v60 = vld [vmem:[%s5055_s3 + $0x7] sm:$0x1] }
 0x18d   :  { %v1525_v11 = vld [vmem:[%s5055_s3 + $0xa6] sm:$0x1]  ;;  %v1513_v53 = vadd.f32 %v1503_v0, %v1479_v28  ;;  %v1514_v56 = vadd.f32 %v1504_v1, %v1480_v43  ;;  %v1515_v63 = vadd.f32 %v1505_v10, %v1481_v61  ;;  %v1516_v23 = vadd.f32 %v1506_v15, %v1482_v19  ;;  %v1556_v62 = vld [vmem:[%s5055_s3 + $0x47] sm:$0x1] }
 0x18e   :  { %v1526_v52 = vld [vmem:[%s5055_s3 + $0xc6] sm:$0x1]  ;;  %v1517_v14 = vadd.f32 %v1507_v12, %v1483_v59  ;;  %v1534_v16 = vmul.f32 %v3695_v8, %v1520_v5  ;;  %v1535_v57 = vmul.f32 %v3695_v8, %v1521_v44  ;;  %v1536_v58 = vmul.f32 %v3695_v8, %v1522_v35  ;;  %v1555_v59 = vld [vmem:[%s5055_s3 + $0x27] sm:$0x1] }
 0x18f   :  { %v1527_v13 = vld [vmem:[%s5055_s3 + $0xe6] sm:$0x1]  ;;  %v1537_v28 = vmul.f32 %v3695_v8, %v1523_v4  ;;  %v1538_v43 = vmul.f32 %v3695_v8, %v1524_v50  ;;  %v1539_v61 = vmul.f32 %v3695_v8, %v1525_v11  ;;  %v1540_v19 = vmul.f32 %v3695_v8, %v1526_v52  ;;  %v1557_v2 = vld [vmem:[%s5055_s3 + $0x67] sm:$0x1] }
 0x190   :  { %v1541_v5 = vmul.f32 %v3695_v8, %v1527_v13  ;;  %v1544_v0 = vadd.f32 %v1534_v16, %v1510_v39  ;;  %v1545_v1 = vadd.f32 %v1535_v57, %v1511_v40  ;;  %v1546_v10 = vadd.f32 %v1536_v58, %v1512_v49  ;;  %v1558_v15 = vld [vmem:[%s5055_s3 + $0x87] sm:$0x1]  ;;  %v1588_v16 = vld [vmem:[%s5055_s3 + $0x8] sm:$0x1] }
 0x191   :  { %v1559_v44 = vld [vmem:[%s5055_s3 + $0xa7] sm:$0x1]  ;;  %v1547_v4 = vadd.f32 %v1537_v28, %v1513_v53  ;;  %v1548_v12 = vadd.f32 %v1538_v43, %v1514_v56  ;;  %v1549_v50 = vadd.f32 %v1539_v61, %v1515_v63  ;;  %v1550_v11 = vadd.f32 %v1540_v19, %v1516_v23  ;;  %v1590_v57 = vld [vmem:[%s5055_s3 + $0x48] sm:$0x1] }
 0x192   :  { %v1560_v35 = vld [vmem:[%s5055_s3 + $0xc7] sm:$0x1]  ;;  %v1551_v40 = vadd.f32 %v1541_v5, %v1517_v14  ;;  %v1568_v49 = vmul.f32 %v3698_v9, %v1554_v60  ;;  %v1569_v52 = vmul.f32 %v3698_v9, %v1555_v59  ;;  %v1570_v13 = vmul.f32 %v3698_v9, %v1556_v62  ;;  %v1589_v14 = vld [vmem:[%s5055_s3 + $0x28] sm:$0x1] }
 0x193   :  { %v1561_v39 = vld [vmem:[%s5055_s3 + $0xe7] sm:$0x1]  ;;  %v1571_v53 = vmul.f32 %v3698_v9, %v1557_v2  ;;  %v1572_v56 = vmul.f32 %v3698_v9, %v1558_v15  ;;  %v1573_v63 = vmul.f32 %v3698_v9, %v1559_v44  ;;  %v1574_v23 = vmul.f32 %v3698_v9, %v1560_v35  ;;  %v1591_v58 = vld [vmem:[%s5055_s3 + $0x68] sm:$0x1] }
 0x194   :  { %v1575_v60 = vmul.f32 %v3698_v9, %v1561_v39  ;;  %v1578_v28 = vadd.f32 %v1568_v49, %v1544_v0  ;;  %v1579_v43 = vadd.f32 %v1569_v52, %v1545_v1  ;;  %v1580_v61 = vadd.f32 %v1570_v13, %v1546_v10  ;;  %v1592_v19 = vld [vmem:[%s5055_s3 + $0x88] sm:$0x1]  ;;  %v1622_v49 = vld [vmem:[%s5055_s3 + $0x9] sm:$0x1] }
 0x195   :  { %v1593_v59 = vld [vmem:[%s5055_s3 + $0xa8] sm:$0x1]  ;;  %v1581_v2 = vadd.f32 %v1571_v53, %v1547_v4  ;;  %v1582_v5 = vadd.f32 %v1572_v56, %v1548_v12  ;;  %v1583_v15 = vadd.f32 %v1573_v63, %v1549_v50  ;;  %v1584_v44 = vadd.f32 %v1574_v23, %v1550_v11  ;;  %v1624_v52 = vld [vmem:[%s5055_s3 + $0x49] sm:$0x1] }
 0x196   :  { %v1594_v62 = vld [vmem:[%s5055_s3 + $0xc8] sm:$0x1]  ;;  %v1585_v1 = vadd.f32 %v1575_v60, %v1551_v40  ;;  %v1602_v10 = vmul.f32 %v3715_v27, %v1588_v16  ;;  %v1603_v35 = vmul.f32 %v3715_v27, %v1589_v14  ;;  %v1604_v39 = vmul.f32 %v3715_v27, %v1590_v57  ;;  %v1623_v40 = vld [vmem:[%s5055_s3 + $0x29] sm:$0x1] }
 0x197   :  { %v1595_v0 = vld [vmem:[%s5055_s3 + $0xe8] sm:$0x1]  ;;  %v1605_v4 = vmul.f32 %v3715_v27, %v1591_v58  ;;  %v1606_v12 = vmul.f32 %v3715_v27, %v1592_v19  ;;  %v1607_v50 = vmul.f32 %v3715_v27, %v1593_v59  ;;  %v1608_v11 = vmul.f32 %v3715_v27, %v1594_v62  ;;  %v1625_v13 = vld [vmem:[%s5055_s3 + $0x69] sm:$0x1] }
 0x198   :  { %v1609_v16 = vmul.f32 %v3715_v27, %v1595_v0  ;;  %v1612_v53 = vadd.f32 %v1602_v10, %v1578_v28  ;;  %v1613_v56 = vadd.f32 %v1603_v35, %v1579_v43  ;;  %v1614_v63 = vadd.f32 %v1604_v39, %v1580_v61  ;;  %v1626_v23 = vld [vmem:[%s5055_s3 + $0x89] sm:$0x1]  ;;  %v1656_v10 = vld [vmem:[%s5055_s3 + $0xa] sm:$0x1] }
 0x199   :  { %v1627_v14 = vld [vmem:[%s5055_s3 + $0xa9] sm:$0x1]  ;;  %v1615_v58 = vadd.f32 %v1605_v4, %v1581_v2  ;;  %v1616_v60 = vadd.f32 %v1606_v12, %v1582_v5  ;;  %v1617_v19 = vadd.f32 %v1607_v50, %v1583_v15  ;;  %v1618_v59 = vadd.f32 %v1608_v11, %v1584_v44  ;;  %v1658_v35 = vld [vmem:[%s5055_s3 + $0x4a] sm:$0x1] }
 0x19a   :  { %v1628_v57 = vld [vmem:[%s5055_s3 + $0xc9] sm:$0x1]  ;;  %v1619_v43 = vadd.f32 %v1609_v16, %v1585_v1  ;;  %v1636_v61 = vmul.f32 %v3718_v29, %v1622_v49  ;;  %v1637_v62 = vmul.f32 %v3718_v29, %v1623_v40  ;;  %v1638_v0 = vmul.f32 %v3718_v29, %v1624_v52  ;;  %v1657_v1 = vld [vmem:[%s5055_s3 + $0x2a] sm:$0x1] }
 0x19b   :  { %v1629_v28 = vld [vmem:[%s5055_s3 + $0xe9] sm:$0x1]  ;;  %v1639_v2 = vmul.f32 %v3718_v29, %v1625_v13  ;;  %v1640_v5 = vmul.f32 %v3718_v29, %v1626_v23  ;;  %v1641_v15 = vmul.f32 %v3718_v29, %v1627_v14  ;;  %v1642_v44 = vmul.f32 %v3718_v29, %v1628_v57  ;;  %v1659_v39 = vld [vmem:[%s5055_s3 + $0x6a] sm:$0x1] }
 0x19c   :  { %v1643_v49 = vmul.f32 %v3718_v29, %v1629_v28  ;;  %v1646_v4 = vadd.f32 %v1636_v61, %v1612_v53  ;;  %v1647_v12 = vadd.f32 %v1637_v62, %v1613_v56  ;;  %v1648_v50 = vadd.f32 %v1638_v0, %v1614_v63  ;;  %v1660_v11 = vld [vmem:[%s5055_s3 + $0x8a] sm:$0x1]  ;;  %v1690_v61 = vld [vmem:[%s5055_s3 + $0xb] sm:$0x1] }
 0x19d   :  { %v1661_v40 = vld [vmem:[%s5055_s3 + $0xaa] sm:$0x1]  ;;  %v1649_v13 = vadd.f32 %v1639_v2, %v1615_v58  ;;  %v1650_v16 = vadd.f32 %v1640_v5, %v1616_v60  ;;  %v1651_v23 = vadd.f32 %v1641_v15, %v1617_v19  ;;  %v1652_v14 = vadd.f32 %v1642_v44, %v1618_v59  ;;  %v1692_v62 = vld [vmem:[%s5055_s3 + $0x4b] sm:$0x1] }
 0x19e   :  { %v1662_v52 = vld [vmem:[%s5055_s3 + $0xca] sm:$0x1]  ;;  %v1653_v56 = vadd.f32 %v1643_v49, %v1619_v43  ;;  %v1670_v63 = vmul.f32 %v3721_v30, %v1656_v10  ;;  %v1671_v57 = vmul.f32 %v3721_v30, %v1657_v1  ;;  %v1672_v28 = vmul.f32 %v3721_v30, %v1658_v35  ;;  %v1691_v43 = vld [vmem:[%s5055_s3 + $0x2b] sm:$0x1] }
 0x19f   :  { %v1663_v53 = vld [vmem:[%s5055_s3 + $0xea] sm:$0x1]  ;;  %v1673_v58 = vmul.f32 %v3721_v30, %v1659_v39  ;;  %v1674_v60 = vmul.f32 %v3721_v30, %v1660_v11  ;;  %v1675_v19 = vmul.f32 %v3721_v30, %v1661_v40  ;;  %v1676_v59 = vmul.f32 %v3721_v30, %v1662_v52  ;;  %v1693_v0 = vld [vmem:[%s5055_s3 + $0x6b] sm:$0x1] }
 0x1a0   :  { %v1677_v10 = vmul.f32 %v3721_v30, %v1663_v53  ;;  %v1680_v2 = vadd.f32 %v1670_v63, %v1646_v4  ;;  %v1681_v5 = vadd.f32 %v1671_v57, %v1647_v12  ;;  %v1682_v15 = vadd.f32 %v1672_v28, %v1648_v50  ;;  %v1694_v44 = vld [vmem:[%s5055_s3 + $0x8b] sm:$0x1]  ;;  %v1724_v63 = vld [vmem:[%s5055_s3 + $0xc] sm:$0x1] }
 0x1a1   :  { %v1695_v1 = vld [vmem:[%s5055_s3 + $0xab] sm:$0x1]  ;;  %v1683_v39 = vadd.f32 %v1673_v58, %v1649_v13  ;;  %v1684_v49 = vadd.f32 %v1674_v60, %v1650_v16  ;;  %v1685_v11 = vadd.f32 %v1675_v19, %v1651_v23  ;;  %v1686_v40 = vadd.f32 %v1676_v59, %v1652_v14  ;;  %v1726_v57 = vld [vmem:[%s5055_s3 + $0x4c] sm:$0x1] }
 0x1a2   :  { %v1696_v35 = vld [vmem:[%s5055_s3 + $0xcb] sm:$0x1]  ;;  %v1687_v12 = vadd.f32 %v1677_v10, %v1653_v56  ;;  %v1704_v50 = vmul.f32 %v3724_v31, %v1690_v61  ;;  %v1705_v52 = vmul.f32 %v3724_v31, %v1691_v43  ;;  %v1706_v53 = vmul.f32 %v3724_v31, %v1692_v62  ;;  %v1725_v56 = vld [vmem:[%s5055_s3 + $0x2c] sm:$0x1] }
 0x1a3   :  { %v1697_v4 = vld [vmem:[%s5055_s3 + $0xeb] sm:$0x1]  ;;  %v1707_v13 = vmul.f32 %v3724_v31, %v1693_v0  ;;  %v1708_v16 = vmul.f32 %v3724_v31, %v1694_v44  ;;  %v1709_v23 = vmul.f32 %v3724_v31, %v1695_v1  ;;  %v1710_v14 = vmul.f32 %v3724_v31, %v1696_v35  ;;  %v1727_v28 = vld [vmem:[%s5055_s3 + $0x6c] sm:$0x1] }
 0x1a4   :  { %v1711_v61 = vmul.f32 %v3724_v31, %v1697_v4  ;;  %v1714_v58 = vadd.f32 %v1704_v50, %v1680_v2  ;;  %v1715_v60 = vadd.f32 %v1705_v52, %v1681_v5  ;;  %v1716_v19 = vadd.f32 %v1706_v53, %v1682_v15  ;;  %v1728_v59 = vld [vmem:[%s5055_s3 + $0x8c] sm:$0x1]  ;;  %v1758_v50 = vld [vmem:[%s5055_s3 + $0xd] sm:$0x1] }
 0x1a5   :  { %v1729_v43 = vld [vmem:[%s5055_s3 + $0xac] sm:$0x1]  ;;  %v1717_v0 = vadd.f32 %v1707_v13, %v1683_v39  ;;  %v1718_v10 = vadd.f32 %v1708_v16, %v1684_v49  ;;  %v1719_v44 = vadd.f32 %v1709_v23, %v1685_v11  ;;  %v1720_v1 = vadd.f32 %v1710_v14, %v1686_v40  ;;  %v1760_v52 = vld [vmem:[%s5055_s3 + $0x4d] sm:$0x1] }
 0x1a6   :  { %v1730_v62 = vld [vmem:[%s5055_s3 + $0xcc] sm:$0x1]  ;;  %v1721_v5 = vadd.f32 %v1711_v61, %v1687_v12  ;;  %v1738_v15 = vmul.f32 %v3736_v36, %v1724_v63  ;;  %v1739_v35 = vmul.f32 %v3736_v36, %v1725_v56  ;;  %v1740_v4 = vmul.f32 %v3736_v36, %v1726_v57  ;;  %v1759_v12 = vld [vmem:[%s5055_s3 + $0x2d] sm:$0x1] }
 0x1a7   :  { %v1731_v2 = vld [vmem:[%s5055_s3 + $0xec] sm:$0x1]  ;;  %v1741_v39 = vmul.f32 %v3736_v36, %v1727_v28  ;;  %v1742_v49 = vmul.f32 %v3736_v36, %v1728_v59  ;;  %v1743_v11 = vmul.f32 %v3736_v36, %v1729_v43  ;;  %v1744_v40 = vmul.f32 %v3736_v36, %v1730_v62  ;;  %v1761_v53 = vld [vmem:[%s5055_s3 + $0x6d] sm:$0x1] }
 0x1a8   :  { %v1745_v63 = vmul.f32 %v3736_v36, %v1731_v2  ;;  %v1748_v13 = vadd.f32 %v1738_v15, %v1714_v58  ;;  %v1749_v16 = vadd.f32 %v1739_v35, %v1715_v60  ;;  %v1750_v23 = vadd.f32 %v1740_v4, %v1716_v19  ;;  %v1762_v14 = vld [vmem:[%s5055_s3 + $0x8d] sm:$0x1]  ;;  %v1792_v15 = vld [vmem:[%s5055_s3 + $0xe] sm:$0x1] }
 0x1a9   :  { %v1763_v56 = vld [vmem:[%s5055_s3 + $0xad] sm:$0x1]  ;;  %v1751_v28 = vadd.f32 %v1741_v39, %v1717_v0  ;;  %v1752_v61 = vadd.f32 %v1742_v49, %v1718_v10  ;;  %v1753_v59 = vadd.f32 %v1743_v11, %v1719_v44  ;;  %v1754_v43 = vadd.f32 %v1744_v40, %v1720_v1  ;;  %v1794_v35 = vld [vmem:[%s5055_s3 + $0x4e] sm:$0x1] }
 0x1aa   :  { %v1764_v57 = vld [vmem:[%s5055_s3 + $0xcd] sm:$0x1]  ;;  %v1755_v60 = vadd.f32 %v1745_v63, %v1721_v5  ;;  %v1772_v19 = vmul.f32 %v3739_v37, %v1758_v50  ;;  %v1773_v62 = vmul.f32 %v3739_v37, %v1759_v12  ;;  %v1774_v2 = vmul.f32 %v3739_v37, %v1760_v52  ;;  %v1793_v5 = vld [vmem:[%s5055_s3 + $0x2e] sm:$0x1] }
 0x1ab   :  { %v1765_v58 = vld [vmem:[%s5055_s3 + $0xed] sm:$0x1]  ;;  %v1775_v0 = vmul.f32 %v3739_v37, %v1761_v53  ;;  %v1776_v10 = vmul.f32 %v3739_v37, %v1762_v14  ;;  %v1777_v44 = vmul.f32 %v3739_v37, %v1763_v56  ;;  %v1778_v1 = vmul.f32 %v3739_v37, %v1764_v57  ;;  %v1795_v4 = vld [vmem:[%s5055_s3 + $0x6e] sm:$0x1] }
 0x1ac   :  { %v1779_v50 = vmul.f32 %v3739_v37, %v1765_v58  ;;  %v1782_v39 = vadd.f32 %v1772_v19, %v1748_v13  ;;  %v1783_v49 = vadd.f32 %v1773_v62, %v1749_v16  ;;  %v1784_v11 = vadd.f32 %v1774_v2, %v1750_v23  ;;  %v1796_v40 = vld [vmem:[%s5055_s3 + $0x8e] sm:$0x1]  ;;  %v1826_v19 = vld [vmem:[%s5055_s3 + $0xf] sm:$0x1] }
 0x1ad   :  { %v1797_v12 = vld [vmem:[%s5055_s3 + $0xae] sm:$0x1]  ;;  %v1785_v53 = vadd.f32 %v1775_v0, %v1751_v28  ;;  %v1786_v63 = vadd.f32 %v1776_v10, %v1752_v61  ;;  %v1787_v14 = vadd.f32 %v1777_v44, %v1753_v59  ;;  %v1788_v56 = vadd.f32 %v1778_v1, %v1754_v43  ;;  %v1828_v62 = vld [vmem:[%s5055_s3 + $0x4f] sm:$0x1] }
 0x1ae   :  { %v1798_v52 = vld [vmem:[%s5055_s3 + $0xce] sm:$0x1]  ;;  %v1789_v16 = vadd.f32 %v1779_v50, %v1755_v60  ;;  %v1806_v23 = vmul.f32 %v3742_v38, %v1792_v15  ;;  %v1807_v57 = vmul.f32 %v3742_v38, %v1793_v5  ;;  %v1808_v58 = vmul.f32 %v3742_v38, %v1794_v35  ;;  %v1827_v60 = vld [vmem:[%s5055_s3 + $0x2f] sm:$0x1] }
 0x1af   :  { %v1799_v13 = vld [vmem:[%s5055_s3 + $0xee] sm:$0x1]  ;;  %v1809_v28 = vmul.f32 %v3742_v38, %v1795_v4  ;;  %v1810_v61 = vmul.f32 %v3742_v38, %v1796_v40  ;;  %v1811_v59 = vmul.f32 %v3742_v38, %v1797_v12  ;;  %v1812_v43 = vmul.f32 %v3742_v38, %v1798_v52  ;;  %v1829_v2 = vld [vmem:[%s5055_s3 + $0x6f] sm:$0x1] }
 0x1b0   :  { %v1813_v15 = vmul.f32 %v3742_v38, %v1799_v13  ;;  %v1816_v0 = vadd.f32 %v1806_v23, %v1782_v39  ;;  %v1817_v10 = vadd.f32 %v1807_v57, %v1783_v49  ;;  %v1818_v44 = vadd.f32 %v1808_v58, %v1784_v11  ;;  %v1830_v1 = vld [vmem:[%s5055_s3 + $0x8f] sm:$0x1]  ;;  %v1860_v23 = vld [vmem:[%s5055_s3 + $0x10] sm:$0x1] }
 0x1b1   :  { %v1831_v5 = vld [vmem:[%s5055_s3 + $0xaf] sm:$0x1]  ;;  %v1819_v4 = vadd.f32 %v1809_v28, %v1785_v53  ;;  %v1820_v50 = vadd.f32 %v1810_v61, %v1786_v63  ;;  %v1821_v40 = vadd.f32 %v1811_v59, %v1787_v14  ;;  %v1822_v12 = vadd.f32 %v1812_v43, %v1788_v56  ;;  %v1862_v57 = vld [vmem:[%s5055_s3 + $0x50] sm:$0x1] }
 0x1b2   :  { %v1832_v35 = vld [vmem:[%s5055_s3 + $0xcf] sm:$0x1]  ;;  %v1823_v49 = vadd.f32 %v1813_v15, %v1789_v16  ;;  %v1840_v11 = vmul.f32 %v3745_v22, %v1826_v19  ;;  %v1841_v52 = vmul.f32 %v3745_v22, %v1827_v60  ;;  %v1842_v13 = vmul.f32 %v3745_v22, %v1828_v62  ;;  %v1861_v16 = vld [vmem:[%s5055_s3 + $0x30] sm:$0x1] }
 0x1b3   :  { %v1833_v39 = vld [vmem:[%s5055_s3 + $0xef] sm:$0x1]  ;;  %v1843_v53 = vmul.f32 %v3745_v22, %v1829_v2  ;;  %v1844_v63 = vmul.f32 %v3745_v22, %v1830_v1  ;;  %v1845_v14 = vmul.f32 %v3745_v22, %v1831_v5  ;;  %v1846_v56 = vmul.f32 %v3745_v22, %v1832_v35  ;;  %v1863_v58 = vld [vmem:[%s5055_s3 + $0x70] sm:$0x1] }
 0x1b4   :  { %v1847_v19 = vmul.f32 %v3745_v22, %v1833_v39  ;;  %v1850_v28 = vadd.f32 %v1840_v11, %v1816_v0  ;;  %v1851_v61 = vadd.f32 %v1841_v52, %v1817_v10  ;;  %v1852_v59 = vadd.f32 %v1842_v13, %v1818_v44  ;;  %v1864_v43 = vld [vmem:[%s5055_s3 + $0x90] sm:$0x1]  ;;  %v1894_v11 = vld [vmem:[%s5055_s3 + $0x11] sm:$0x1] }
 0x1b5   :  { %v1865_v60 = vld [vmem:[%s5055_s3 + $0xb0] sm:$0x1]  ;;  %v1853_v2 = vadd.f32 %v1843_v53, %v1819_v4  ;;  %v1854_v15 = vadd.f32 %v1844_v63, %v1820_v50  ;;  %v1855_v1 = vadd.f32 %v1845_v14, %v1821_v40  ;;  %v1856_v5 = vadd.f32 %v1846_v56, %v1822_v12  ;;  %v1896_v52 = vld [vmem:[%s5055_s3 + $0x51] sm:$0x1] }
 0x1b6   :  { %v1866_v62 = vld [vmem:[%s5055_s3 + $0xd0] sm:$0x1]  ;;  %v1857_v10 = vadd.f32 %v1847_v19, %v1823_v49  ;;  %v1874_v44 = vmul.f32 %v3776_v17, %v1860_v23  ;;  %v1875_v35 = vmul.f32 %v3776_v17, %v1861_v16  ;;  %v1876_v39 = vmul.f32 %v3776_v17, %v1862_v57  ;;  %v1895_v49 = vld [vmem:[%s5055_s3 + $0x31] sm:$0x1] }
 0x1b7   :  { %v1867_v0 = vld [vmem:[%s5055_s3 + $0xf0] sm:$0x1]  ;;  %v1877_v4 = vmul.f32 %v3776_v17, %v1863_v58  ;;  %v1878_v50 = vmul.f32 %v3776_v17, %v1864_v43  ;;  %v1879_v40 = vmul.f32 %v3776_v17, %v1865_v60  ;;  %v1880_v12 = vmul.f32 %v3776_v17, %v1866_v62  ;;  %v1897_v13 = vld [vmem:[%s5055_s3 + $0x71] sm:$0x1] }
 0x1b8   :  { %v1881_v23 = vmul.f32 %v3776_v17, %v1867_v0  ;;  %v1884_v53 = vadd.f32 %v1874_v44, %v1850_v28  ;;  %v1885_v63 = vadd.f32 %v1875_v35, %v1851_v61  ;;  %v1886_v14 = vadd.f32 %v1876_v39, %v1852_v59  ;;  %v1898_v56 = vld [vmem:[%s5055_s3 + $0x91] sm:$0x1]  ;;  %v1928_v44 = vld [vmem:[%s5055_s3 + $0x12] sm:$0x1] }
 0x1b9   :  { %v1899_v16 = vld [vmem:[%s5055_s3 + $0xb1] sm:$0x1]  ;;  %v1887_v58 = vadd.f32 %v1877_v4, %v1853_v2  ;;  %v1888_v19 = vadd.f32 %v1878_v50, %v1854_v15  ;;  %v1889_v43 = vadd.f32 %v1879_v40, %v1855_v1  ;;  %v1890_v60 = vadd.f32 %v1880_v12, %v1856_v5  ;;  %v1930_v35 = vld [vmem:[%s5055_s3 + $0x52] sm:$0x1] }
 0x1ba   :  { %v1900_v57 = vld [vmem:[%s5055_s3 + $0xd1] sm:$0x1]  ;;  %v1891_v61 = vadd.f32 %v1881_v23, %v1857_v10  ;;  %v1908_v59 = vmul.f32 %v3779_v18, %v1894_v11  ;;  %v1909_v62 = vmul.f32 %v3779_v18, %v1895_v49  ;;  %v1910_v0 = vmul.f32 %v3779_v18, %v1896_v52  ;;  %v1929_v10 = vld [vmem:[%s5055_s3 + $0x32] sm:$0x1] }
 0x1bb   :  { %v1901_v28 = vld [vmem:[%s5055_s3 + $0xf1] sm:$0x1]  ;;  %v1911_v2 = vmul.f32 %v3779_v18, %v1897_v13  ;;  %v1912_v15 = vmul.f32 %v3779_v18, %v1898_v56  ;;  %v1913_v1 = vmul.f32 %v3779_v18, %v1899_v16  ;;  %v1914_v5 = vmul.f32 %v3779_v18, %v1900_v57  ;;  %v1931_v39 = vld [vmem:[%s5055_s3 + $0x72] sm:$0x1] }
 0x1bc   :  { %v1915_v11 = vmul.f32 %v3779_v18, %v1901_v28  ;;  %v1918_v4 = vadd.f32 %v1908_v59, %v1884_v53  ;;  %v1919_v50 = vadd.f32 %v1909_v62, %v1885_v63  ;;  %v1920_v40 = vadd.f32 %v1910_v0, %v1886_v14  ;;  %v1932_v12 = vld [vmem:[%s5055_s3 + $0x92] sm:$0x1]  ;;  %v1962_v59 = vld [vmem:[%s5055_s3 + $0x13] sm:$0x1] }
 0x1bd   :  { %v1933_v49 = vld [vmem:[%s5055_s3 + $0xb2] sm:$0x1]  ;;  %v1921_v13 = vadd.f32 %v1911_v2, %v1887_v58  ;;  %v1922_v23 = vadd.f32 %v1912_v15, %v1888_v19  ;;  %v1923_v56 = vadd.f32 %v1913_v1, %v1889_v43  ;;  %v1924_v16 = vadd.f32 %v1914_v5, %v1890_v60  ;;  %v1964_v62 = vld [vmem:[%s5055_s3 + $0x53] sm:$0x1] }
 0x1be   :  { %v1934_v52 = vld [vmem:[%s5055_s3 + $0xd2] sm:$0x1]  ;;  %v1925_v63 = vadd.f32 %v1915_v11, %v1891_v61  ;;  %v1942_v14 = vmul.f32 %v3782_v33, %v1928_v44  ;;  %v1943_v57 = vmul.f32 %v3782_v33, %v1929_v10  ;;  %v1944_v28 = vmul.f32 %v3782_v33, %v1930_v35  ;;  %v1963_v61 = vld [vmem:[%s5055_s3 + $0x33] sm:$0x1] }
 0x1bf   :  { %v1935_v53 = vld [vmem:[%s5055_s3 + $0xf2] sm:$0x1]  ;;  %v1945_v58 = vmul.f32 %v3782_v33, %v1931_v39  ;;  %v1946_v19 = vmul.f32 %v3782_v33, %v1932_v12  ;;  %v1947_v43 = vmul.f32 %v3782_v33, %v1933_v49  ;;  %v1948_v60 = vmul.f32 %v3782_v33, %v1934_v52  ;;  %v1965_v0 = vld [vmem:[%s5055_s3 + $0x73] sm:$0x1] }
 0x1c0   :  { %v1949_v44 = vmul.f32 %v3782_v33, %v1935_v53  ;;  %v1952_v2 = vadd.f32 %v1942_v14, %v1918_v4  ;;  %v1953_v15 = vadd.f32 %v1943_v57, %v1919_v50  ;;  %v1954_v1 = vadd.f32 %v1944_v28, %v1920_v40  ;;  %v1966_v5 = vld [vmem:[%s5055_s3 + $0x93] sm:$0x1]  ;;  %v1996_v14 = vld [vmem:[%s5055_s3 + $0x14] sm:$0x1] }
 0x1c1   :  { %v1967_v10 = vld [vmem:[%s5055_s3 + $0xb3] sm:$0x1]  ;;  %v1955_v39 = vadd.f32 %v1945_v58, %v1921_v13  ;;  %v1956_v11 = vadd.f32 %v1946_v19, %v1922_v23  ;;  %v1957_v12 = vadd.f32 %v1947_v43, %v1923_v56  ;;  %v1958_v49 = vadd.f32 %v1948_v60, %v1924_v16  ;;  %v1998_v57 = vld [vmem:[%s5055_s3 + $0x54] sm:$0x1] }
 0x1c2   :  { %v1968_v35 = vld [vmem:[%s5055_s3 + $0xd3] sm:$0x1]  ;;  %v1959_v50 = vadd.f32 %v1949_v44, %v1925_v63  ;;  %v1976_v40 = vmul.f32 %v3785_v34, %v1962_v59  ;;  %v1977_v52 = vmul.f32 %v3785_v34, %v1963_v61  ;;  %v1978_v53 = vmul.f32 %v3785_v34, %v1964_v62  ;;  %v1997_v63 = vld [vmem:[%s5055_s3 + $0x34] sm:$0x1] }
 0x1c3   :  { %v1969_v4 = vld [vmem:[%s5055_s3 + $0xf3] sm:$0x1]  ;;  %v1979_v13 = vmul.f32 %v3785_v34, %v1965_v0  ;;  %v1980_v23 = vmul.f32 %v3785_v34, %v1966_v5  ;;  %v1981_v56 = vmul.f32 %v3785_v34, %v1967_v10  ;;  %v1982_v16 = vmul.f32 %v3785_v34, %v1968_v35  ;;  %v1999_v28 = vld [vmem:[%s5055_s3 + $0x74] sm:$0x1] }
 0x1c4   :  { %v1983_v59 = vmul.f32 %v3785_v34, %v1969_v4  ;;  %v1986_v58 = vadd.f32 %v1976_v40, %v1952_v2  ;;  %v1987_v19 = vadd.f32 %v1977_v52, %v1953_v15  ;;  %v1988_v43 = vadd.f32 %v1978_v53, %v1954_v1  ;;  %v2000_v60 = vld [vmem:[%s5055_s3 + $0x94] sm:$0x1]  ;;  %v2030_v40 = vld [vmem:[%s5055_s3 + $0x15] sm:$0x1] }
 0x1c5   :  { %v2001_v61 = vld [vmem:[%s5055_s3 + $0xb4] sm:$0x1]  ;;  %v1989_v0 = vadd.f32 %v1979_v13, %v1955_v39  ;;  %v1990_v44 = vadd.f32 %v1980_v23, %v1956_v11  ;;  %v1991_v5 = vadd.f32 %v1981_v56, %v1957_v12  ;;  %v1992_v10 = vadd.f32 %v1982_v16, %v1958_v49  ;;  %v2032_v52 = vld [vmem:[%s5055_s3 + $0x55] sm:$0x1] }
 0x1c6   :  { %v2002_v62 = vld [vmem:[%s5055_s3 + $0xd4] sm:$0x1]  ;;  %v1993_v15 = vadd.f32 %v1983_v59, %v1959_v50  ;;  %v2010_v1 = vmul.f32 %v3791_v20, %v1996_v14  ;;  %v2011_v35 = vmul.f32 %v3791_v20, %v1997_v63  ;;  %v2012_v4 = vmul.f32 %v3791_v20, %v1998_v57  ;;  %v2031_v50 = vld [vmem:[%s5055_s3 + $0x35] sm:$0x1] }
 0x1c7   :  { %v2003_v2 = vld [vmem:[%s5055_s3 + $0xf4] sm:$0x1]  ;;  %v2013_v39 = vmul.f32 %v3791_v20, %v1999_v28  ;;  %v2014_v11 = vmul.f32 %v3791_v20, %v2000_v60  ;;  %v2015_v12 = vmul.f32 %v3791_v20, %v2001_v61  ;;  %v2016_v49 = vmul.f32 %v3791_v20, %v2002_v62  ;;  %v2033_v53 = vld [vmem:[%s5055_s3 + $0x75] sm:$0x1] }
 0x1c8   :  { %v2017_v14 = vmul.f32 %v3791_v20, %v2003_v2  ;;  %v2020_v13 = vadd.f32 %v2010_v1, %v1986_v58  ;;  %v2021_v23 = vadd.f32 %v2011_v35, %v1987_v19  ;;  %v2022_v56 = vadd.f32 %v2012_v4, %v1988_v43  ;;  %v2034_v16 = vld [vmem:[%s5055_s3 + $0x95] sm:$0x1]  ;;  %v2064_v1 = vld [vmem:[%s5055_s3 + $0x16] sm:$0x1] }
 0x1c9   :  { %v2035_v63 = vld [vmem:[%s5055_s3 + $0xb5] sm:$0x1]  ;;  %v2023_v28 = vadd.f32 %v2013_v39, %v1989_v0  ;;  %v2024_v59 = vadd.f32 %v2014_v11, %v1990_v44  ;;  %v2025_v60 = vadd.f32 %v2015_v12, %v1991_v5  ;;  %v2026_v61 = vadd.f32 %v2016_v49, %v1992_v10  ;;  %v2066_v35 = vld [vmem:[%s5055_s3 + $0x56] sm:$0x1] }
 0x1ca   :  { %v2036_v57 = vld [vmem:[%s5055_s3 + $0xd5] sm:$0x1]  ;;  %v2027_v19 = vadd.f32 %v2017_v14, %v1993_v15  ;;  %v2044_v43 = vmul.f32 %v3794_v21, %v2030_v40  ;;  %v2045_v62 = vmul.f32 %v3794_v21, %v2031_v50  ;;  %v2046_v2 = vmul.f32 %v3794_v21, %v2032_v52  ;;  %v2065_v15 = vld [vmem:[%s5055_s3 + $0x36] sm:$0x1] }
 0x1cb   :  { %v2037_v58 = vld [vmem:[%s5055_s3 + $0xf5] sm:$0x1]  ;;  %v2047_v0 = vmul.f32 %v3794_v21, %v2033_v53  ;;  %v2048_v44 = vmul.f32 %v3794_v21, %v2034_v16  ;;  %v2049_v5 = vmul.f32 %v3794_v21, %v2035_v63  ;;  %v2050_v10 = vmul.f32 %v3794_v21, %v2036_v57  ;;  %v2067_v4 = vld [vmem:[%s5055_s3 + $0x76] sm:$0x1] }
 0x1cc   :  { %v2051_v40 = vmul.f32 %v3794_v21, %v2037_v58  ;;  %v2054_v39 = vadd.f32 %v2044_v43, %v2020_v13  ;;  %v2055_v11 = vadd.f32 %v2045_v62, %v2021_v23  ;;  %v2056_v12 = vadd.f32 %v2046_v2, %v2022_v56  ;;  %v2068_v49 = vld [vmem:[%s5055_s3 + $0x96] sm:$0x1]  ;;  %v2098_v43 = vld [vmem:[%s5055_s3 + $0x17] sm:$0x1] }
 0x1cd   :  { %v2069_v50 = vld [vmem:[%s5055_s3 + $0xb6] sm:$0x1]  ;;  %v2057_v53 = vadd.f32 %v2047_v0, %v2023_v28  ;;  %v2058_v14 = vadd.f32 %v2048_v44, %v2024_v59  ;;  %v2059_v16 = vadd.f32 %v2049_v5, %v2025_v60  ;;  %v2060_v63 = vadd.f32 %v2050_v10, %v2026_v61  ;;  %v2100_v62 = vld [vmem:[%s5055_s3 + $0x57] sm:$0x1] }
 0x1ce   :  { %v2070_v52 = vld [vmem:[%s5055_s3 + $0xd6] sm:$0x1]  ;;  %v2061_v23 = vadd.f32 %v2051_v40, %v2027_v19  ;;  %v2078_v56 = vmul.f32 %v3797_v24, %v2064_v1  ;;  %v2079_v57 = vmul.f32 %v3797_v24, %v2065_v15  ;;  %v2080_v58 = vmul.f32 %v3797_v24, %v2066_v35  ;;  %v2099_v19 = vld [vmem:[%s5055_s3 + $0x37] sm:$0x1] }
 0x1cf   :  { %v2071_v13 = vld [vmem:[%s5055_s3 + $0xf6] sm:$0x1]  ;;  %v2081_v28 = vmul.f32 %v3797_v24, %v2067_v4  ;;  %v2082_v59 = vmul.f32 %v3797_v24, %v2068_v49  ;;  %v2083_v60 = vmul.f32 %v3797_v24, %v2069_v50  ;;  %v2084_v61 = vmul.f32 %v3797_v24, %v2070_v52  ;;  %v2101_v2 = vld [vmem:[%s5055_s3 + $0x77] sm:$0x1] }
 0x1d0   :  { %v2085_v1 = vmul.f32 %v3797_v24, %v2071_v13  ;;  %v2088_v0 = vadd.f32 %v2078_v56, %v2054_v39  ;;  %v2089_v44 = vadd.f32 %v2079_v57, %v2055_v11  ;;  %v2090_v5 = vadd.f32 %v2080_v58, %v2056_v12  ;;  %v2102_v10 = vld [vmem:[%s5055_s3 + $0x97] sm:$0x1]  ;;  %v2132_v56 = vld [vmem:[%s5055_s3 + $0x18] sm:$0x1] }
 0x1d1   :  { %v2103_v15 = vld [vmem:[%s5055_s3 + $0xb7] sm:$0x1]  ;;  %v2091_v4 = vadd.f32 %v2081_v28, %v2057_v53  ;;  %v2092_v40 = vadd.f32 %v2082_v59, %v2058_v14  ;;  %v2093_v49 = vadd.f32 %v2083_v60, %v2059_v16  ;;  %v2094_v50 = vadd.f32 %v2084_v61, %v2060_v63  ;;  %v2134_v57 = vld [vmem:[%s5055_s3 + $0x58] sm:$0x1] }
 0x1d2   :  { %v2104_v35 = vld [vmem:[%s5055_s3 + $0xd7] sm:$0x1]  ;;  %v2095_v11 = vadd.f32 %v2085_v1, %v2061_v23  ;;  %v2112_v12 = vmul.f32 %v3800_v26, %v2098_v43  ;;  %v2113_v52 = vmul.f32 %v3800_v26, %v2099_v19  ;;  %v2114_v13 = vmul.f32 %v3800_v26, %v2100_v62  ;;  %v2133_v23 = vld [vmem:[%s5055_s3 + $0x38] sm:$0x1] }
 0x1d3   :  { %v2105_v39 = vld [vmem:[%s5055_s3 + $0xf7] sm:$0x1]  ;;  %v2115_v53 = vmul.f32 %v3800_v26, %v2101_v2  ;;  %v2116_v14 = vmul.f32 %v3800_v26, %v2102_v10  ;;  %v2117_v16 = vmul.f32 %v3800_v26, %v2103_v15  ;;  %v2118_v63 = vmul.f32 %v3800_v26, %v2104_v35  ;;  %v2135_v58 = vld [vmem:[%s5055_s3 + $0x78] sm:$0x1] }
 0x1d4   :  { %v2119_v43 = vmul.f32 %v3800_v26, %v2105_v39  ;;  %v2122_v28 = vadd.f32 %v2112_v12, %v2088_v0  ;;  %v2123_v59 = vadd.f32 %v2113_v52, %v2089_v44  ;;  %v2124_v60 = vadd.f32 %v2114_v13, %v2090_v5  ;;  %v2136_v61 = vld [vmem:[%s5055_s3 + $0x98] sm:$0x1]  ;;  %v2166_v12 = vld [vmem:[%s5055_s3 + $0x19] sm:$0x1] }
 0x1d5   :  { %v2137_v19 = vld [vmem:[%s5055_s3 + $0xb8] sm:$0x1]  ;;  %v2125_v2 = vadd.f32 %v2115_v53, %v2091_v4  ;;  %v2126_v1 = vadd.f32 %v2116_v14, %v2092_v40  ;;  %v2127_v10 = vadd.f32 %v2117_v16, %v2093_v49  ;;  %v2128_v15 = vadd.f32 %v2118_v63, %v2094_v50  ;;  %v2168_v52 = vld [vmem:[%s5055_s3 + $0x59] sm:$0x1] }
 0x1d6   :  { %v2138_v62 = vld [vmem:[%s5055_s3 + $0xd8] sm:$0x1]  ;;  %v2129_v44 = vadd.f32 %v2119_v43, %v2095_v11  ;;  %v2146_v5 = vmul.f32 %v3812_v41, %v2132_v56  ;;  %v2147_v35 = vmul.f32 %v3812_v41, %v2133_v23  ;;  %v2148_v39 = vmul.f32 %v3812_v41, %v2134_v57  ;;  %v2167_v11 = vld [vmem:[%s5055_s3 + $0x39] sm:$0x1] }
 0x1d7   :  { %v2139_v0 = vld [vmem:[%s5055_s3 + $0xf8] sm:$0x1]  ;;  %v2149_v4 = vmul.f32 %v3812_v41, %v2135_v58  ;;  %v2150_v40 = vmul.f32 %v3812_v41, %v2136_v61  ;;  %v2151_v49 = vmul.f32 %v3812_v41, %v2137_v19  ;;  %v2152_v50 = vmul.f32 %v3812_v41, %v2138_v62  ;;  %v2169_v13 = vld [vmem:[%s5055_s3 + $0x79] sm:$0x1] }
 0x1d8   :  { %v2153_v56 = vmul.f32 %v3812_v41, %v2139_v0  ;;  %v2156_v53 = vadd.f32 %v2146_v5, %v2122_v28  ;;  %v2157_v14 = vadd.f32 %v2147_v35, %v2123_v59  ;;  %v2158_v16 = vadd.f32 %v2148_v39, %v2124_v60  ;;  %v2170_v63 = vld [vmem:[%s5055_s3 + $0x99] sm:$0x1]  ;;  %v2200_v5 = vld [vmem:[%s5055_s3 + $0x1a] sm:$0x1] }
 0x1d9   :  { %v2171_v23 = vld [vmem:[%s5055_s3 + $0xb9] sm:$0x1]  ;;  %v2159_v58 = vadd.f32 %v2149_v4, %v2125_v2  ;;  %v2160_v43 = vadd.f32 %v2150_v40, %v2126_v1  ;;  %v2161_v61 = vadd.f32 %v2151_v49, %v2127_v10  ;;  %v2162_v19 = vadd.f32 %v2152_v50, %v2128_v15  ;;  %v2202_v35 = vld [vmem:[%s5055_s3 + $0x5a] sm:$0x1] }
 0x1da   :  { %v2172_v57 = vld [vmem:[%s5055_s3 + $0xd9] sm:$0x1]  ;;  %v2163_v59 = vadd.f32 %v2153_v56, %v2129_v44  ;;  %v2180_v60 = vmul.f32 %v3815_v42, %v2166_v12  ;;  %v2181_v62 = vmul.f32 %v3815_v42, %v2167_v11  ;;  %v2182_v0 = vmul.f32 %v3815_v42, %v2168_v52  ;;  %v2201_v44 = vld [vmem:[%s5055_s3 + $0x3a] sm:$0x1] }
 0x1db   :  { %v2173_v28 = vld [vmem:[%s5055_s3 + $0xf9] sm:$0x1]  ;;  %v2183_v2 = vmul.f32 %v3815_v42, %v2169_v13  ;;  %v2184_v1 = vmul.f32 %v3815_v42, %v2170_v63  ;;  %v2185_v10 = vmul.f32 %v3815_v42, %v2171_v23  ;;  %v2186_v15 = vmul.f32 %v3815_v42, %v2172_v57  ;;  %v2203_v39 = vld [vmem:[%s5055_s3 + $0x7a] sm:$0x1] }
 0x1dc   :  { %v2187_v12 = vmul.f32 %v3815_v42, %v2173_v28  ;;  %v2190_v4 = vadd.f32 %v2180_v60, %v2156_v53  ;;  %v2191_v40 = vadd.f32 %v2181_v62, %v2157_v14  ;;  %v2192_v49 = vadd.f32 %v2182_v0, %v2158_v16  ;;  %v2204_v50 = vld [vmem:[%s5055_s3 + $0x9a] sm:$0x1]  ;;  %v2234_v60 = vld [vmem:[%s5055_s3 + $0x1b] sm:$0x1] }
 0x1dd   :  { %v2205_v11 = vld [vmem:[%s5055_s3 + $0xba] sm:$0x1]  ;;  %v2193_v13 = vadd.f32 %v2183_v2, %v2159_v58  ;;  %v2194_v56 = vadd.f32 %v2184_v1, %v2160_v43  ;;  %v2195_v63 = vadd.f32 %v2185_v10, %v2161_v61  ;;  %v2196_v23 = vadd.f32 %v2186_v15, %v2162_v19  ;;  %v2236_v62 = vld [vmem:[%s5055_s3 + $0x5b] sm:$0x1] }
 0x1de   :  { %v2206_v52 = vld [vmem:[%s5055_s3 + $0xda] sm:$0x1]  ;;  %v2197_v14 = vadd.f32 %v2187_v12, %v2163_v59  ;;  %v2214_v16 = vmul.f32 %v3818_v46, %v2200_v5  ;;  %v2215_v57 = vmul.f32 %v3818_v46, %v2201_v44  ;;  %v2216_v28 = vmul.f32 %v3818_v46, %v2202_v35  ;;  %v2235_v59 = vld [vmem:[%s5055_s3 + $0x3b] sm:$0x1] }
 0x1df   :  { %v2207_v53 = vld [vmem:[%s5055_s3 + $0xfa] sm:$0x1]  ;;  %v2217_v58 = vmul.f32 %v3818_v46, %v2203_v39  ;;  %v2218_v43 = vmul.f32 %v3818_v46, %v2204_v50  ;;  %v2219_v61 = vmul.f32 %v3818_v46, %v2205_v11  ;;  %v2220_v19 = vmul.f32 %v3818_v46, %v2206_v52  ;;  %v2237_v0 = vld [vmem:[%s5055_s3 + $0x7b] sm:$0x1] }
 0x1e0   :  { %v2221_v5 = vmul.f32 %v3818_v46, %v2207_v53  ;;  %v2224_v2 = vadd.f32 %v2214_v16, %v2190_v4  ;;  %v2225_v1 = vadd.f32 %v2215_v57, %v2191_v40  ;;  %v2226_v10 = vadd.f32 %v2216_v28, %v2192_v49  ;;  %v2238_v15 = vld [vmem:[%s5055_s3 + $0x9b] sm:$0x1]  ;;  %v2268_v16 = vld [vmem:[%s5055_s3 + $0x1c] sm:$0x1] }
 0x1e1   :  { %v2239_v44 = vld [vmem:[%s5055_s3 + $0xbb] sm:$0x1]  ;;  %v2227_v39 = vadd.f32 %v2217_v58, %v2193_v13  ;;  %v2228_v12 = vadd.f32 %v2218_v43, %v2194_v56  ;;  %v2229_v50 = vadd.f32 %v2219_v61, %v2195_v63  ;;  %v2230_v11 = vadd.f32 %v2220_v19, %v2196_v23  ;;  %v2270_v57 = vld [vmem:[%s5055_s3 + $0x5c] sm:$0x1] }
 0x1e2   :  { %v2240_v35 = vld [vmem:[%s5055_s3 + $0xdb] sm:$0x1]  ;;  %v2231_v40 = vadd.f32 %v2221_v5, %v2197_v14  ;;  %v2248_v49 = vmul.f32 %v3821_v47, %v2234_v60  ;;  %v2249_v52 = vmul.f32 %v3821_v47, %v2235_v59  ;;  %v2250_v53 = vmul.f32 %v3821_v47, %v2236_v62  ;;  %v2269_v14 = vld [vmem:[%s5055_s3 + $0x3c] sm:$0x1] }
 0x1e3   :  { %v2241_v4 = vld [vmem:[%s5055_s3 + $0xfb] sm:$0x1]  ;;  %v2251_v13 = vmul.f32 %v3821_v47, %v2237_v0  ;;  %v2252_v56 = vmul.f32 %v3821_v47, %v2238_v15  ;;  %v2253_v63 = vmul.f32 %v3821_v47, %v2239_v44  ;;  %v2254_v23 = vmul.f32 %v3821_v47, %v2240_v35  ;;  %v2271_v28 = vld [vmem:[%s5055_s3 + $0x7c] sm:$0x1] }
 0x1e4   :  { %v2255_v60 = vmul.f32 %v3821_v47, %v2241_v4  ;;  %v2258_v58 = vadd.f32 %v2248_v49, %v2224_v2  ;;  %v2259_v43 = vadd.f32 %v2249_v52, %v2225_v1  ;;  %v2260_v61 = vadd.f32 %v2250_v53, %v2226_v10  ;;  %v2272_v19 = vld [vmem:[%s5055_s3 + $0x9c] sm:$0x1]  ;;  %v2302_v49 = vld [vmem:[%s5055_s3 + $0x1d] sm:$0x1] }
 0x1e5   :  { %v2273_v59 = vld [vmem:[%s5055_s3 + $0xbc] sm:$0x1]  ;;  %v2261_v0 = vadd.f32 %v2251_v13, %v2227_v39  ;;  %v2262_v5 = vadd.f32 %v2252_v56, %v2228_v12  ;;  %v2263_v15 = vadd.f32 %v2253_v63, %v2229_v50  ;;  %v2264_v44 = vadd.f32 %v2254_v23, %v2230_v11  ;;  %v2304_v52 = vld [vmem:[%s5055_s3 + $0x5d] sm:$0x1] }
 0x1e6   :  { %v2274_v62 = vld [vmem:[%s5055_s3 + $0xdc] sm:$0x1]  ;;  %v2265_v1 = vadd.f32 %v2255_v60, %v2231_v40  ;;  %v2282_v10 = vmul.f32 %v3833_v25, %v2268_v16  ;;  %v2283_v35 = vmul.f32 %v3833_v25, %v2269_v14  ;;  %v2284_v4 = vmul.f32 %v3833_v25, %v2270_v57  ;;  %v2303_v40 = vld [vmem:[%s5055_s3 + $0x3d] sm:$0x1] }
 0x1e7   :  { %v2275_v2 = vld [vmem:[%s5055_s3 + $0xfc] sm:$0x1]  ;;  %v2285_v39 = vmul.f32 %v3833_v25, %v2271_v28  ;;  %v2286_v12 = vmul.f32 %v3833_v25, %v2272_v19  ;;  %v2287_v50 = vmul.f32 %v3833_v25, %v2273_v59  ;;  %v2288_v11 = vmul.f32 %v3833_v25, %v2274_v62  ;;  %v2305_v53 = vld [vmem:[%s5055_s3 + $0x7d] sm:$0x1] }
 0x1e8   :  { %v2289_v16 = vmul.f32 %v3833_v25, %v2275_v2  ;;  %v2292_v13 = vadd.f32 %v2282_v10, %v2258_v58  ;;  %v2293_v56 = vadd.f32 %v2283_v35, %v2259_v43  ;;  %v2294_v63 = vadd.f32 %v2284_v4, %v2260_v61  ;;  %v2306_v23 = vld [vmem:[%s5055_s3 + $0x9d] sm:$0x1]  ;;  %v2336_v10 = vld [vmem:[%s5055_s3 + $0x1e] sm:$0x1] }
 0x1e9   :  { %v2307_v14 = vld [vmem:[%s5055_s3 + $0xbd] sm:$0x1]  ;;  %v2295_v28 = vadd.f32 %v2285_v39, %v2261_v0  ;;  %v2296_v60 = vadd.f32 %v2286_v12, %v2262_v5  ;;  %v2297_v19 = vadd.f32 %v2287_v50, %v2263_v15  ;;  %v2298_v59 = vadd.f32 %v2288_v11, %v2264_v44  ;;  %v2338_v35 = vld [vmem:[%s5055_s3 + $0x5e] sm:$0x1] }
 0x1ea   :  { %v2308_v57 = vld [vmem:[%s5055_s3 + $0xdd] sm:$0x1]  ;;  %v2299_v43 = vadd.f32 %v2289_v16, %v2265_v1  ;;  %v2316_v61 = vmul.f32 %v3836_v54, %v2302_v49  ;;  %v2317_v62 = vmul.f32 %v3836_v54, %v2303_v40  ;;  %v2318_v2 = vmul.f32 %v3836_v54, %v2304_v52  ;;  %v2337_v1 = vld [vmem:[%s5055_s3 + $0x3e] sm:$0x1] }
 0x1eb   :  { %v2309_v58 = vld [vmem:[%s5055_s3 + $0xfd] sm:$0x1]  ;;  %v2319_v0 = vmul.f32 %v3836_v54, %v2305_v53  ;;  %v2320_v5 = vmul.f32 %v3836_v54, %v2306_v23  ;;  %v2321_v15 = vmul.f32 %v3836_v54, %v2307_v14  ;;  %v2322_v44 = vmul.f32 %v3836_v54, %v2308_v57  ;;  %v2339_v4 = vld [vmem:[%s5055_s3 + $0x7e] sm:$0x1] }
 0x1ec   :  { %v2323_v49 = vmul.f32 %v3836_v54, %v2309_v58  ;;  %v2326_v39 = vadd.f32 %v2316_v61, %v2292_v13  ;;  %v2327_v12 = vadd.f32 %v2317_v62, %v2293_v56  ;;  %v2328_v50 = vadd.f32 %v2318_v2, %v2294_v63  ;;  %v2340_v11 = vld [vmem:[%s5055_s3 + $0x9e] sm:$0x1]  ;;  %v2370_v61 = vld [vmem:[%s5055_s3 + $0x1f] sm:$0x1] }
 0x1ed   :  { %v2341_v40 = vld [vmem:[%s5055_s3 + $0xbe] sm:$0x1]  ;;  %v2329_v53 = vadd.f32 %v2319_v0, %v2295_v28  ;;  %v2330_v16 = vadd.f32 %v2320_v5, %v2296_v60  ;;  %v2331_v23 = vadd.f32 %v2321_v15, %v2297_v19  ;;  %v2332_v14 = vadd.f32 %v2322_v44, %v2298_v59  ;;  %v2372_v62 = vld [vmem:[%s5055_s3 + $0x5f] sm:$0x1] }
 0x1ee   :  { %v2342_v52 = vld [vmem:[%s5055_s3 + $0xde] sm:$0x1]  ;;  %v2333_v56 = vadd.f32 %v2323_v49, %v2299_v43  ;;  %v2350_v63 = vmul.f32 %v3839_v55, %v2336_v10  ;;  %v2351_v57 = vmul.f32 %v3839_v55, %v2337_v1  ;;  %v2352_v58 = vmul.f32 %v3839_v55, %v2338_v35  ;;  %v2371_v43 = vld [vmem:[%s5055_s3 + $0x3f] sm:$0x1] }
 0x1ef   :  { %v2343_v13 = vld [vmem:[%s5055_s3 + $0xfe] sm:$0x1]  ;;  %v2353_v28 = vmul.f32 %v3839_v55, %v2339_v4  ;;  %v2354_v60 = vmul.f32 %v3839_v55, %v2340_v11  ;;  %v2355_v19 = vmul.f32 %v3839_v55, %v2341_v40  ;;  %v2356_v59 = vmul.f32 %v3839_v55, %v2342_v52  ;;  %v2373_v2 = vld [vmem:[%s5055_s3 + $0x7f] sm:$0x1] }
 0x1f0   :  { %v2357_v10 = vmul.f32 %v3839_v55, %v2343_v13  ;;  %v2360_v0 = vadd.f32 %v2350_v63, %v2326_v39  ;;  %v2361_v5 = vadd.f32 %v2351_v57, %v2327_v12  ;;  %v2362_v15 = vadd.f32 %v2352_v58, %v2328_v50  ;;  %v2374_v44 = vld [vmem:[%s5055_s3 + $0x9f] sm:$0x1] }
 0x1f1   :  { %v2375_v1 = vld [vmem:[%s5055_s3 + $0xbf] sm:$0x1]  ;;  %v2363_v4 = vadd.f32 %v2353_v28, %v2329_v53  ;;  %v2364_v49 = vadd.f32 %v2354_v60, %v2330_v16  ;;  %v2365_v11 = vadd.f32 %v2355_v19, %v2331_v23  ;;  %v2366_v40 = vadd.f32 %v2356_v59, %v2332_v14 }
 0x1f2   :  { %v2376_v35 = vld [vmem:[%s5055_s3 + $0xdf] sm:$0x1]  ;;  %v2367_v12 = vadd.f32 %v2357_v10, %v2333_v56  ;;  %v2384_v50 = vmul.f32 %v3842_v51, %v2370_v61  ;;  %v2385_v52 = vmul.f32 %v3842_v51, %v2371_v43  ;;  %v2386_v13 = vmul.f32 %v3842_v51, %v2372_v62  ;;  %v1325_v10 = vld [vmem:[%s5055_s3 + $0x120] sm:$0x1] }
 0x1f3   :  { %v2377_v39 = vld [vmem:[%s5055_s3 + $0xff] sm:$0x1]  ;;  %v2387_v63 = vmul.f32 %v3842_v51, %v2373_v2  ;;  %v2388_v57 = vmul.f32 %v3842_v51, %v2374_v44  ;;  %v2389_v53 = vmul.f32 %v3842_v51, %v2375_v1  ;;  %v2390_v16 = vmul.f32 %v3842_v51, %v2376_v35  ;;  %v1324_v2 = vld [vmem:[%s5055_s3 + $0x100] sm:$0x1]  ;;  %v1359_v1 = vld [vmem:[%s5055_s3 + $0x121] sm:$0x1] }
 0x1f4   :  { %v2391_v23 = vmul.f32 %v3842_v51, %v2377_v39  ;;  %v2394_v14 = vadd.f32 %v2384_v50, %v2360_v0  ;;  %v2395_v58 = vadd.f32 %v2385_v52, %v2361_v5  ;;  %v2396_v28 = vadd.f32 %v2386_v13, %v2362_v15  ;;  %v1358_v0 = vld [vmem:[%s5055_s3 + $0x101] sm:$0x1] }
 0x1f5   :  { %v2397_v56 = vadd.f32 %v2387_v63, %v2363_v4  ;;  %v2398_v60 = vadd.f32 %v2388_v57, %v2364_v49  ;;  %v2399_v61 = vadd.f32 %v2389_v53, %v2365_v11  ;;  %v2400_v19 = vadd.f32 %v2390_v16, %v2366_v40  ;;  %v1392_v11 = vld [vmem:[%s5055_s3 + $0x102] sm:$0x1] }
 0x1f6   :  { %v2401_v59 = vadd.f32 %v2391_v23, %v2367_v12  ;;  %v2439_v43 = vrot.slane %v2395_v58, 7  ;;  %v2442_v62 = vrot.slane %v2396_v28, 6  ;;  %v1338_v39 = vmul.f32 %v3671_v32, %v1324_v2  ;;  %v1393_v12 = vld [vmem:[%s5055_s3 + $0x122] sm:$0x1]  ;;  %v1426_v23 = vld [vmem:[%s5055_s3 + $0x103] sm:$0x1] }
 0x1f7   :  { %v2445_v15 = vrot.slane %v2397_v56, 5  ;;  %v2448_v44 = vrot.slane %v2398_v60, 4  ;;  %v2451_v4 = vrot.slane %v2399_v61, 3  ;;  %v2454_v49 = vrot.slane %v2400_v19, 2  ;;  %v1460_v60 = vld [vmem:[%s5055_s3 + $0x104] sm:$0x1] }
 0x1f8   :  { %v2441_v5 = vsel %vm2440_vm2, %v2439_v43, %v2394_v14  ;;  %v1339_v52 = vmul.f32 %v3671_v32, %v1325_v10  ;;  %v1372_v13 = vmul.f32 %v3674_v45, %v1358_v0  ;;  %v1373_v63 = vmul.f32 %v3674_v45, %v1359_v1  ;;  %v1427_v14 = vld [vmem:[%s5055_s3 + $0x123] sm:$0x1]  ;;  %v1461_v61 = vld [vmem:[%s5055_s3 + $0x124] sm:$0x1]  ;;  %v1495_v2 = vld [vmem:[%s5055_s3 + $0x125] sm:$0x1] }
 0x1f9   :  { %v2444_v35 = vsel %vm2443_vm3, %v2442_v62, %v2441_v5  ;;  %v2457_v53 = vrot.slane %v2401_v59, 1  ;;  %v1406_v16 = vmul.f32 %v3677_v48, %v1392_v11  ;;  %v1407_v56 = vmul.f32 %v3677_v48, %v1393_v12  ;;  %v1494_v48 = vld [vmem:[%s5055_s3 + $0x105] sm:$0x1]  ;;  %v1562_v11 = vld [vmem:[%s5055_s3 + $0x107] sm:$0x1] }
 0x1fa   :  { %v2447_v40 = vsel %vm2446_vm4, %v2445_v15, %v2444_v35  ;;  %v1382_v28 = vadd.f32 %v1372_v13, %v1338_v39  ;;  %v1383_v32 = vadd.f32 %v1373_v63, %v1339_v52  ;;  %v1440_v43 = vmul.f32 %v3680_v3, %v1426_v23  ;;  %v1596_v52 = vld [vmem:[%s5055_s3 + $0x108] sm:$0x1] }
 0x1fb   :  { %v2450_v50 = vsel %vm2449_vm5, %v2448_v44, %v2447_v40  ;;  %v1441_v62 = vmul.f32 %v3680_v3, %v1427_v14  ;;  %v1474_v5 = vmul.f32 %v3689_v6, %v1460_v60  ;;  %v1475_v15 = vmul.f32 %v3689_v6, %v1461_v61  ;;  %v1528_v44 = vld [vmem:[%s5055_s3 + $0x106] sm:$0x1]  ;;  %v1563_v6 = vld [vmem:[%s5055_s3 + $0x127] sm:$0x1] }
 0x1fc   :  { %v2453_v57 = vsel %vm2452_vm6, %v2451_v4, %v2450_v50  ;;  %v1416_v19 = vadd.f32 %v1406_v16, %v1382_v28  ;;  %v1417_v59 = vadd.f32 %v1407_v56, %v1383_v32  ;;  %v1529_v3 = vld [vmem:[%s5055_s3 + $0x126] sm:$0x1]  ;;  %v1508_v4 = vmul.f32 %v3692_v7, %v1494_v48  ;;  %v1630_v16 = vld [vmem:[%s5055_s3 + $0x109] sm:$0x1]  ;;  %v1664_v32 = vld [vmem:[%s5055_s3 + $0x10a] sm:$0x1] }
 0x1fd   :  { %v2456_v58 = vsel %vm2455_vm7, %v2454_v49, %v2453_v57  ;;  %v1509_v49 = vmul.f32 %v3692_v7, %v1495_v2  ;;  %v1542_v12 = vmul.f32 %v3695_v8, %v1528_v44  ;;  %v1543_v50 = vmul.f32 %v3695_v8, %v1529_v3  ;;  %v1597_v7 = vld [vmem:[%s5055_s3 + $0x128] sm:$0x1]  ;;  %v1631_v8 = vld [vmem:[%s5055_s3 + $0x129] sm:$0x1]  ;;  %v1732_v2 = vld [vmem:[%s5055_s3 + $0x10c] sm:$0x1] }
 0x1fe   :  { %v2459_v45 = vsel %vm2458_vm8, %v2457_v53, %v2456_v58  ;;  %v1450_v10 = vadd.f32 %v1440_v43, %v1416_v19  ;;  %v1451_v0 = vadd.f32 %v1441_v62, %v1417_v59  ;;  %v1576_v57 = vmul.f32 %v3698_v9, %v1562_v11  ;;  %v1698_v19 = vld [vmem:[%s5055_s3 + $0x10b] sm:$0x1]  ;;  %v1766_v44 = vld [vmem:[%s5055_s3 + $0x10d] sm:$0x1] }
 0x1ff   :  { %2976 = vmatprep.mubr.msk.f32.mxu0 %vm2462_vm9, %v2459_v45  ;;  %v1577_v53 = vmul.f32 %v3698_v9, %v1563_v6  ;;  %v1610_v58 = vmul.f32 %v3715_v27, %v1596_v52  ;;  %v1611_v28 = vmul.f32 %v3715_v27, %v1597_v7  ;;  %v1665_v9 = vld [vmem:[%s5055_s3 + $0x12a] sm:$0x1]  ;;  %v1644_v60 = vmul.f32 %v3718_v29, %v1630_v16  ;;  %v1699_v27 = vld [vmem:[%s5055_s3 + $0x12b] sm:$0x1] }
 0x200   :  { %v1484_v1 = vadd.f32 %v1474_v5, %v1450_v10  ;;  %v1485_v35 = vadd.f32 %v1475_v15, %v1451_v0  ;;  %v1645_v61 = vmul.f32 %v3718_v29, %v1631_v8  ;;  %v1678_v62 = vmul.f32 %v3721_v30, %v1664_v32  ;;  %v1733_v29 = vld [vmem:[%s5055_s3 + $0x12c] sm:$0x1] }
 0x201   :  { %v1679_v48 = vmul.f32 %v3721_v30, %v1665_v9  ;;  %v1712_v5 = vmul.f32 %v3724_v31, %v1698_v19  ;;  %v1713_v15 = vmul.f32 %v3724_v31, %v1699_v27  ;;  %v1767_v30 = vld [vmem:[%s5055_s3 + $0x12d] sm:$0x1]  ;;  %v1801_v31 = vld [vmem:[%s5055_s3 + $0x12e] sm:$0x1]  ;;  %v1936_v9 = vld [vmem:[%s5055_s3 + $0x112] sm:$0x1] }
 0x202   :  { %v1518_v40 = vadd.f32 %v1508_v4, %v1484_v1  ;;  %v1519_v39 = vadd.f32 %v1509_v49, %v1485_v35  ;;  %v1746_v35 = vmul.f32 %v3736_v36, %v1732_v2  ;;  %v1747_v4 = vmul.f32 %v3736_v36, %v1733_v29  ;;  %v1800_v49 = vld [vmem:[%s5055_s3 + $0x10e] sm:$0x1]  ;;  %v1835_v36 = vld [vmem:[%s5055_s3 + $0x12f] sm:$0x1]  ;;  %v1970_v19 = vld [vmem:[%s5055_s3 + $0x113] sm:$0x1] }
 0x203   :  { %v1814_v7 = vmul.f32 %v3742_v38, %v1800_v49  ;;  %v1849_v8 = vmul.f32 %v3745_v22, %v1835_v36  ;;  %v2140_v36 = vld [vmem:[%s5055_s3 + $0x118] sm:$0x1] }
 0x204   :  { %v1552_v13 = vadd.f32 %v1542_v12, %v1518_v40  ;;  %v1553_v63 = vadd.f32 %v1543_v50, %v1519_v39  ;;  %v1780_v40 = vmul.f32 %v3739_v37, %v1766_v44  ;;  %v1781_v39 = vmul.f32 %v3739_v37, %v1767_v30  ;;  %v1834_v12 = vld [vmem:[%s5055_s3 + $0x10f] sm:$0x1]  ;;  %v1869_v37 = vld [vmem:[%s5055_s3 + $0x130] sm:$0x1] }
 0x205   :  { %v1848_v16 = vmul.f32 %v3745_v22, %v1834_v12  ;;  %v1883_v32 = vmul.f32 %v3776_v17, %v1869_v37  ;;  %v1937_v22 = vld [vmem:[%s5055_s3 + $0x132] sm:$0x1] }
 0x206   :  { %v1586_v23 = vadd.f32 %v1576_v57, %v1552_v13  ;;  %v1587_v14 = vadd.f32 %v1577_v53, %v1553_v63  ;;  %v1815_v13 = vmul.f32 %v3742_v38, %v1801_v31  ;;  %v1868_v63 = vld [vmem:[%s5055_s3 + $0x110] sm:$0x1]  ;;  %v1903_v38 = vld [vmem:[%s5055_s3 + $0x131] sm:$0x1] }
 0x208   :  { %v1620_v56 = vadd.f32 %v1610_v58, %v1586_v23  ;;  %v1621_v45 = vadd.f32 %v1611_v28, %v1587_v14  ;;  %v1902_v23 = vld [vmem:[%s5055_s3 + $0x111] sm:$0x1]  ;;  %v1882_v28 = vmul.f32 %v3776_v17, %v1868_v63  ;;  %v1971_v17 = vld [vmem:[%s5055_s3 + $0x133] sm:$0x1]  ;;  %v2174_v63 = vld [vmem:[%s5055_s3 + $0x119] sm:$0x1] }
 0x20a   :  { %v1654_v59 = vadd.f32 %v1644_v60, %v1620_v56  ;;  %v1655_v43 = vadd.f32 %v1645_v61, %v1621_v45  ;;  %v1916_v60 = vmul.f32 %v3779_v18, %v1902_v23  ;;  %v1917_v61 = vmul.f32 %v3779_v18, %v1903_v38  ;;  %v2005_v18 = vld [vmem:[%s5055_s3 + $0x134] sm:$0x1] }
 0x20c   :  { %v1688_v10 = vadd.f32 %v1678_v62, %v1654_v59  ;;  %v1689_v0 = vadd.f32 %v1679_v48, %v1655_v43  ;;  %v1950_v43 = vmul.f32 %v3782_v33, %v1936_v9  ;;  %v1951_v62 = vmul.f32 %v3782_v33, %v1937_v22  ;;  %v2004_v48 = vld [vmem:[%s5055_s3 + $0x114] sm:$0x1]  ;;  %v2039_v33 = vld [vmem:[%s5055_s3 + $0x135] sm:$0x1] }
 0x20d   :  { %v2018_v30 = vmul.f32 %v3791_v20, %v2004_v48  ;;  %v2053_v31 = vmul.f32 %v3794_v21, %v2039_v33 }
 0x20e   :  { %v1722_v3 = vadd.f32 %v1712_v5, %v1688_v10  ;;  %v1723_v1 = vadd.f32 %v1713_v15, %v1689_v0  ;;  %v1984_v10 = vmul.f32 %v3785_v34, %v1970_v19  ;;  %v1985_v0 = vmul.f32 %v3785_v34, %v1971_v17  ;;  %v2038_v5 = vld [vmem:[%s5055_s3 + $0x115] sm:$0x1]  ;;  %v2073_v34 = vld [vmem:[%s5055_s3 + $0x136] sm:$0x1] }
 0x20f   :  { %v2052_v49 = vmul.f32 %v3794_v21, %v2038_v5  ;;  %v2087_v12 = vmul.f32 %v3797_v24, %v2073_v34  ;;  %v2141_v21 = vld [vmem:[%s5055_s3 + $0x138] sm:$0x1]  ;;  %v2378_v5 = vld [vmem:[%s5055_s3 + $0x11f] sm:$0x1] }
 0x210   :  { %v1756_v11 = vadd.f32 %v1746_v35, %v1722_v3  ;;  %v1757_v6 = vadd.f32 %v1747_v4, %v1723_v1  ;;  %v2019_v3 = vmul.f32 %v3791_v20, %v2005_v18  ;;  %v2072_v1 = vld [vmem:[%s5055_s3 + $0x116] sm:$0x1]  ;;  %v2107_v20 = vld [vmem:[%s5055_s3 + $0x137] sm:$0x1]  ;;  %v2344_v18 = vld [vmem:[%s5055_s3 + $0x11e] sm:$0x1]  ;;  %v2392_v34 = vmul.f32 %v3842_v51, %v2378_v5 }
 0x212   :  { %v1790_v50 = vadd.f32 %v1780_v40, %v1756_v11  ;;  %v1791_v52 = vadd.f32 %v1781_v39, %v1757_v6  ;;  %v2106_v11 = vld [vmem:[%s5055_s3 + $0x117] sm:$0x1]  ;;  %v2086_v39 = vmul.f32 %v3797_v24, %v2072_v1  ;;  %v2175_v24 = vld [vmem:[%s5055_s3 + $0x139] sm:$0x1] }
 0x214   :  { %v1824_v57 = vadd.f32 %v1814_v7, %v1790_v50  ;;  %v1825_v53 = vadd.f32 %v1815_v13, %v1791_v52  ;;  %v2120_v7 = vmul.f32 %v3800_v26, %v2106_v11  ;;  %v2121_v13 = vmul.f32 %v3800_v26, %v2107_v20  ;;  %v2209_v26 = vld [vmem:[%s5055_s3 + $0x13a] sm:$0x1]  ;;  %v2427_v11 = vpop.permute.xlu1 %2426 }
 0x216   :  { %v1858_v14 = vadd.f32 %v1848_v16, %v1824_v57  ;;  %v1859_v58 = vadd.f32 %v1849_v8, %v1825_v53  ;;  %v2154_v53 = vmul.f32 %v3812_v41, %v2140_v36  ;;  %v2155_v16 = vmul.f32 %v3812_v41, %v2141_v21  ;;  %v2208_v8 = vld [vmem:[%s5055_s3 + $0x11a] sm:$0x1]  ;;  %v2243_v41 = vld [vmem:[%s5055_s3 + $0x13b] sm:$0x1] }
 0x217   :  { %v2222_v22 = vmul.f32 %v3818_v46, %v2208_v8  ;;  %v2257_v17 = vmul.f32 %v3821_v47, %v2243_v41 }
 0x218   :  { %v1892_v56 = vadd.f32 %v1882_v28, %v1858_v14  ;;  %v1893_v45 = vadd.f32 %v1883_v32, %v1859_v58  ;;  %v2188_v14 = vmul.f32 %v3815_v42, %v2174_v63  ;;  %v2189_v58 = vmul.f32 %v3815_v42, %v2175_v24  ;;  %v2242_v28 = vld [vmem:[%s5055_s3 + $0x11b] sm:$0x1]  ;;  %v2277_v42 = vld [vmem:[%s5055_s3 + $0x13c] sm:$0x1] }
 0x219   :  { %v2256_v19 = vmul.f32 %v3821_v47, %v2242_v28  ;;  %v2291_v48 = vmul.f32 %v3833_v25, %v2277_v42  ;;  %v2345_v47 = vld [vmem:[%s5055_s3 + $0x13e] sm:$0x1] }
 0x21a   :  { %v1926_v27 = vadd.f32 %v1916_v60, %v1892_v56  ;;  %v1927_v59 = vadd.f32 %v1917_v61, %v1893_v45  ;;  %v2223_v56 = vmul.f32 %v3818_v46, %v2209_v26  ;;  %v2276_v45 = vld [vmem:[%s5055_s3 + $0x11c] sm:$0x1]  ;;  %v2311_v46 = vld [vmem:[%s5055_s3 + $0x13d] sm:$0x1] }
 0x21c   :  { %v1960_v2 = vadd.f32 %v1950_v43, %v1926_v27  ;;  %v1961_v29 = vadd.f32 %v1951_v62, %v1927_v59  ;;  %v2310_v27 = vld [vmem:[%s5055_s3 + $0x11d] sm:$0x1]  ;;  %v2290_v62 = vmul.f32 %v3833_v25, %v2276_v45  ;;  %v2379_v25 = vld [vmem:[%s5055_s3 + $0x13f] sm:$0x1] }
 0x21e   :  { %v1994_v15 = vadd.f32 %v1984_v10, %v1960_v2  ;;  %v1995_v44 = vadd.f32 %v1985_v0, %v1961_v29  ;;  %v2324_v10 = vmul.f32 %v3836_v54, %v2310_v27  ;;  %v2325_v0 = vmul.f32 %v3836_v54, %v2311_v46 }
 0x21f   :  { %v2393_v54 = vmul.f32 %v3842_v51, %v2379_v25 }
 0x220   :  { %v2028_v35 = vadd.f32 %v2018_v30, %v1994_v15  ;;  %v2029_v4 = vadd.f32 %v2019_v3, %v1995_v44  ;;  %v2358_v44 = vmul.f32 %v3839_v55, %v2344_v18  ;;  %v2359_v30 = vmul.f32 %v3839_v55, %v2345_v47 }
 0x222   :  { %v2062_v6 = vadd.f32 %v2052_v49, %v2028_v35  ;;  %v2063_v40 = vadd.f32 %v2053_v31, %v2029_v4 }
 0x224   :  { %v2096_v50 = vadd.f32 %v2086_v39, %v2062_v6  ;;  %v2097_v52 = vadd.f32 %v2087_v12, %v2063_v40  ;;  %v2422_v6 = vpop.permute.xlu0 %2421 }
 0x226   :  { %v2130_v37 = vadd.f32 %v2120_v7, %v2096_v50  ;;  %v2131_v57 = vadd.f32 %v2121_v13, %v2097_v52 }
 0x228   :  { %v2164_v23 = vadd.f32 %v2154_v53, %v2130_v37  ;;  %v2165_v38 = vadd.f32 %v2155_v16, %v2131_v57 }
 0x22a   :  { %v2198_v32 = vadd.f32 %v2188_v14, %v2164_v23  ;;  %v2199_v9 = vadd.f32 %v2189_v58, %v2165_v38 }
 0x22c   :  { %v2232_v60 = vadd.f32 %v2222_v22, %v2198_v32  ;;  %v2233_v61 = vadd.f32 %v2223_v56, %v2199_v9 }
 0x22e   :  { %v2266_v59 = vadd.f32 %v2256_v19, %v2232_v60  ;;  %v2267_v43 = vadd.f32 %v2257_v17, %v2233_v61 }
 0x230   :  { %v2300_v2 = vadd.f32 %v2290_v62, %v2266_v59  ;;  %v2301_v29 = vadd.f32 %v2291_v48, %v2267_v43 }
 0x232   :  { %v2334_v33 = vadd.f32 %v2324_v10, %v2300_v2  ;;  %v2335_v15 = vadd.f32 %v2325_v0, %v2301_v29 }
 0x234   :  { %v2368_v3 = vadd.f32 %v2358_v44, %v2334_v33  ;;  %v2369_v1 = vadd.f32 %v2359_v30, %v2335_v15 }
 0x236   :  { %v2402_v35 = vadd.f32 %v2392_v34, %v2368_v3  ;;  %v2403_v4 = vadd.f32 %v2393_v54, %v2369_v1 }
 0x238   :  { %v2460_v49 = vrot.slane %v2403_v4, 7 }
 0x23a   :  { %v2461_v31 = vsel %vm2440_vm2, %v2460_v49, %v2402_v35 }
 0x23b   :  { %2977 = vmatmul.mubr.msk.f32.vlgmr.msra.gmra.mrb[32].mxu0 %vm2462_vm9, %v2461_v31 }
 0x30e   :  { %v2978_v20 = vpop.f32.mrb[32].mxu0 }
 0x30f   :  { %v2543_v40 = vadd.f32 %v2978_v20, %v2427_v11  ;;  %v2537_v39 = vpop.f32.mrb[33].mxu0 }
 0x310   :  { %v2538_v55 = vadd.f32 %v2537_v39, %v2422_v6 }
 0x311   :  { %2549 = vst.msk [vmem:[%s5056_s6 + $0x8] sm:$0x3] %vm2548_vm10, %v2543_v40 }
 0x312   :  { %2547 = vst.msk [vmem:[%s5056_s6] sm:$0xff] %vm2546_vm11, %v2538_v55 }

</bundles_post_ra>
